<compile_context>
chip_gen: v5e
topology: v5e:2x2
jax: 0.10.0
libtpu: 0.0.40
codegen_flags: <defaults>
</compile_context>

<pallas_src>
import functools
import math

import jax
import jax.numpy as jnp
from jax import lax
from jax.experimental import pallas as pl
from jax.experimental.pallas import tpu as pltpu

LANE = 128


def _round_up(v, m):
    return (v + m - 1) // m * m


def _pad2(a, rows, cols):
    return jnp.pad(a, ((0, rows - a.shape[0]), (0, cols - a.shape[1])))


# ----------------------------------------------------------------------------
# Fused kernel: grid = (layer, row_block).  Activations live in VMEM scratch;
# each row-block step does linear + MaxK on its rows and accumulates that
# block's contribution to the graph aggregation.
# ----------------------------------------------------------------------------
def _gcn_fused_kernel(x_ref, w_in_ref, b_in_ref, w_lin_ref, b_lin_ref,
                      w_out_ref, b_out_ref, a_ref, o_ref, h_ref, acc_ref,
                      *, k, hid):
    layer = pl.program_id(0)
    rb = pl.program_id(1)
    n_layers = pl.num_programs(0)
    n_blocks = pl.num_programs(1)
    row_block = a_ref.shape[1]
    bf16 = jnp.bfloat16
    neg_inf = jnp.float32(-jnp.inf)

    # --- prologue (first grid step only): h = relu(lin_in(x)) ---------------
    @pl.when((layer == 0) & (rb == 0))
    def _():
        h0 = jnp.dot(x_ref[...], w_in_ref[...],
                     preferred_element_type=jnp.float32)
        h_ref[...] = jnp.maximum(h0 + b_in_ref[...], 0.0).astype(bf16)

    # --- start of layer: zero the aggregation accumulator -------------------
    @pl.when(rb == 0)
    def _():
        acc_ref[...] = jnp.zeros_like(acc_ref)

    # --- row-block body: linear -> MaxK -> partial graph aggregation --------
    start = pl.multiple_of(rb * row_block, row_block)
    hb = h_ref[pl.ds(start, row_block), :]                        # bf16
    z = jnp.dot(hb, w_lin_ref[0], preferred_element_type=jnp.float32)
    z = z + b_lin_ref[0]

    # MaxK: keep top-k per row over the first `hid` (real) columns.  Lane
    # padding is masked to -inf so it never enters the threshold (relies on
    # padded weight/bias columns being exactly zero).
    col_mask = lax.broadcasted_iota(jnp.int32, (1, z.shape[1]), 1) < hid
    zm = jnp.where(col_mask, z, neg_inf)

    def knock_out(_, carry):
        work, _t = carry
        m = jnp.max(work, axis=-1, keepdims=True)
        return jnp.where(work >= m, neg_inf, work), m

    init_t = jnp.full((z.shape[0], 1), neg_inf, jnp.float32)
    _, thresh = lax.fori_loop(0, k, knock_out, (zm, init_t), unroll=True)
    # NOTE: rows with exact ties at the k-th value keep >k entries (each
    # knock-out iteration removes ALL entries equal to the running max) --
    # a divergence from a sort-based top-k, irrelevant for continuous inputs.
    zk = jnp.where(zm >= thresh, zm, 0.0).astype(bf16)   # padded lanes -> 0

    # Dropout is identity at inference.  GraphConv(weight=None, norm='both',
    # zero bias) is a pure normalized-adjacency aggregation; accumulate this
    # row block's contribution A_hat[:, rows_b] @ zk.
    acc_ref[...] += jnp.dot(a_ref[...], zk, preferred_element_type=jnp.float32)

    # --- end of layer: commit the bf16 activation carry ---------------------
    @pl.when(rb == n_blocks - 1)
    def _():
        h_ref[...] = acc_ref[...].astype(bf16)

    # --- epilogue (last grid step only): out = lin_out(h) -------------------
    @pl.when((layer == n_layers - 1) & (rb == n_blocks - 1))
    def _():
        o = jnp.dot(h_ref[...], w_out_ref[...],
                    preferred_element_type=jnp.float32)
        o_ref[...] = o + b_out_ref[...]


# ----------------------------------------------------------------------------
# Wrapper
# ----------------------------------------------------------------------------
def _vmem_limit_bytes(n_p, in_p, hid_p, out_p, row_block):
    resident = (n_p * in_p * 2                       # x (bf16, resident)
                + in_p * hid_p * 2 + hid_p * 4       # lin_in
                + hid_p * out_p * 2 + out_p * 4      # lin_out
                + 2 * (hid_p * hid_p * 2 + hid_p * 4)   # per-layer weights, 2 bufs
                + 2 * n_p * row_block * 2            # streamed A_hat slab, 2 bufs
                + n_p * out_p * 4                    # output block
                + n_p * hid_p * 2                    # bf16 activation carry
                + n_p * hid_p * 4)                   # f32 aggregation accumulator
    want = 2 * resident + (16 << 20)                 # headroom for compiler scratch
    cap = 100 << 20                                  # safe on 128 MiB parts
    try:                                             # cap below physical VMEM (64 MiB v7x)
        cap = min(cap, int(pltpu.get_tpu_info().vmem_capacity_bytes) - (8 << 20))
    except Exception:
        pass
    return int(max(min(want, cap), 32 << 20))


def gcn_forward(ops, *, num_layers, k, hid, n_real, out_size):
    n_p, in_p = ops["x"].shape
    hid_p = ops["w_in"].shape[1]
    out_p = ops["w_out"].shape[1]
    # Row blocks of 256 fill the 256x256 MXU on v6e/v7x; 128 otherwise.
    row_block = 256 if n_p % 256 == 0 else 128
    n_blocks = n_p // row_block

    flops = int(2 * n_p * (in_p * hid_p
                           + num_layers * (hid_p * hid_p + n_p * hid_p)
                           + hid_p * out_p))
    bytes_accessed = int(ops["x"].size * 2
                         + num_layers * ops["a_hat"].size * 2  # streamed per layer
                         + ops["w_in"].size * 2 + ops["w_lin"].size * 2
                         + ops["w_out"].size * 2
                         + ops["b_in"].size * 4 + ops["b_lin"].size * 4
                         + ops["b_out"].size * 4 + n_p * out_p * 4)

    def run(single_buffer_resident):
        kw = ({"pipeline_mode": pl.Buffered(1)} if single_buffer_resident else {})

        def resident(shape):  # layer-invariant operand: DMA once, stay resident
            return pl.BlockSpec(shape, lambda l, b: (0,) * len(shape), **kw)

        return pl.pallas_call(
            functools.partial(_gcn_fused_kernel, k=k, hid=hid),
            out_shape=jax.ShapeDtypeStruct((n_p, out_p), jnp.float32),
            grid=(num_layers, n_blocks),
            in_specs=[
                resident((n_p, in_p)),                                    # x
                resident((in_p, hid_p)),                                  # w_in
                resident((1, hid_p)),                                     # b_in
                pl.BlockSpec((1, hid_p, hid_p), lambda l, b: (l, 0, 0)),  # w_lin[l]
                pl.BlockSpec((1, 1, hid_p), lambda l, b: (l, 0, 0)),      # b_lin[l]
                resident((hid_p, out_p)),                                 # w_out
                resident((1, out_p)),                                     # b_out
                pl.BlockSpec((n_p, row_block), lambda l, b: (0, b)),      # A_hat[:, cols_b] (streamed)
            ],
            out_specs=pl.BlockSpec((n_p, out_p), lambda l, b: (0, 0)),
            scratch_shapes=[pltpu.VMEM((n_p, hid_p), jnp.bfloat16),       # activation carry
                            pltpu.VMEM((n_p, hid_p), jnp.float32)],       # aggregation accumulator
            compiler_params=pltpu.CompilerParams(
                # Both axes carry state (h across layers, acc across row
                # blocks) -> sequential.
                # TODO(synk): v7x dual-TensorCore split of the row-block axis
                # (needs a core-shared per-layer h) not implemented.
                dimension_semantics=("arbitrary", "arbitrary"),
                vmem_limit_bytes=_vmem_limit_bytes(n_p, in_p, hid_p, out_p, row_block),
            ),
            cost_estimate=pl.CostEstimate(flops=flops, transcendentals=0,
                                          bytes_accessed=bytes_accessed),
        )(ops["x"], ops["w_in"], ops["b_in"], ops["w_lin"], ops["b_lin"],
          ops["w_out"], ops["b_out"], ops["a_hat"])

    try:
        out = run(True)    # single-buffer the layer-invariant resident operands
    except Exception:
        out = run(False)   # fall back if pl.Buffered(1) is unsupported here
    return out[:n_real, :out_size]


# ----------------------------------------------------------------------------
# Deterministic operand construction (lane/row padded, MXU operands in bf16)
# ----------------------------------------------------------------------------
def make_operands(key, n, in_size, hid_size, out_size, num_layers):
    n_p = _round_up(n, LANE)
    in_p = _round_up(in_size, LANE)
    # hid >= 129 -> pad to 256 so v6e/v7x MXU tiles are full; else 128 (v5e-matched).
    hid_p = _round_up(hid_size, 256) if hid_size > LANE else _round_up(hid_size, LANE)
    out_p = _round_up(out_size, LANE)
    keys = jax.random.split(key, 6 + 2 * num_layers)

    def xavier(kk, fi, fo):
        bound = math.sqrt(6.0 / (fi + fo))
        return jax.random.uniform(kk, (fi, fo), jnp.float32, -bound, bound)

    def bias(kk, fi, fo):
        bound = 1.0 / math.sqrt(fi)
        return jax.random.uniform(kk, (1, fo), jnp.float32, -bound, bound)

    # NOTE: padded weight/bias columns must stay exactly zero -- the in-kernel
    # MaxK -inf lane mask relies on that invariant.
    w_in = _pad2(xavier(keys[0], in_size, hid_size), in_p, hid_p).astype(jnp.bfloat16)
    b_in = _pad2(bias(keys[1], in_size, hid_size), 1, hid_p)
    w_out = _pad2(xavier(keys[2], hid_size, out_size), hid_p, out_p).astype(jnp.bfloat16)
    b_out = _pad2(bias(keys[3], hid_size, out_size), 1, out_p)
    w_lin = jnp.stack([_pad2(xavier(keys[4 + 2 * i], hid_size, hid_size), hid_p, hid_p)
                       for i in range(num_layers)]).astype(jnp.bfloat16)
    b_lin = jnp.stack([_pad2(bias(keys[5 + 2 * i], hid_size, hid_size), 1, hid_p)
                       for i in range(num_layers)])

    # Symmetric random graph + self-loops; symmetric 'both' normalization,
    # computed on the real n x n block then zero-padded to (n_p, n_p).
    k_graph, k_feat = keys[4 + 2 * num_layers], keys[5 + 2 * num_layers]
    a = (jax.random.uniform(k_graph, (n, n)) < 0.15).astype(jnp.float32)
    a = jnp.maximum(a, a.T)
    a = jnp.maximum(a, jnp.eye(n, dtype=jnp.float32))
    d_inv_sqrt = 1.0 / jnp.sqrt(jnp.sum(a, axis=1))
    a_hat = _pad2(a * d_inv_sqrt[:, None] * d_inv_sqrt[None, :],
                  n_p, n_p).astype(jnp.bfloat16)

    x = _pad2(jax.random.normal(k_feat, (n, in_size), jnp.float32),
              n_p, in_p).astype(jnp.bfloat16)

    return dict(x=x, w_in=w_in, b_in=b_in, w_lin=w_lin, b_lin=b_lin,
                w_out=w_out, b_out=b_out, a_hat=a_hat)


# ----------------------------------------------------------------------------
# Pure-JAX reference (same bf16 operands, f32 accumulation) for correctness
# ----------------------------------------------------------------------------
def ref_forward(ops, *, num_layers, k, hid, n_real, out_size):
    bf, f32 = jnp.bfloat16, jnp.float32
    h = jnp.dot(ops["x"].astype(bf), ops["w_in"], preferred_element_type=f32)
    h = jnp.maximum(h + ops["b_in"], 0.0)
    col = jnp.arange(h.shape[1])[None, :]
    for i in range(num_layers):
        z = jnp.dot(h.astype(bf), ops["w_lin"][i], preferred_element_type=f32)
        z = z + ops["b_lin"][i]
        zm = jnp.where(col < hid, z, -jnp.inf)
        thr = jnp.sort(zm, axis=-1)[:, -k][:, None]
        z = jnp.where(zm >= thr, zm, 0.0)
        h = jnp.dot(ops["a_hat"], z.astype(bf), preferred_element_type=f32)
    out = jnp.dot(h.astype(bf), ops["w_out"], preferred_element_type=f32) + ops["b_out"]
    return out[:n_real, :out_size]


if __name__ == "__main__":
    N, IN, HID, OUT = 64, 16, 32, 8
    NUM_LAYERS = 2
    K = 8  # maxk (<= HID)

    ops = make_operands(jax.random.PRNGKey(0), N, IN, HID, OUT, NUM_LAYERS)

    # TODO(synk): nn.Dropout is identity at inference; training-time dropout not implemented.
    # TODO(synk): LayerNorm branch (norm=True) not implemented (module default norm=False).
    out = gcn_forward(ops, num_layers=NUM_LAYERS, k=K, hid=HID, n_real=N, out_size=OUT)
    out = jax.block_until_ready(out)

    ref = ref_forward(ops, num_layers=NUM_LAYERS, k=K, hid=HID, n_real=N, out_size=OUT)
    assert out.shape == (N, OUT)
    assert jnp.allclose(out, ref, atol=2e-3, rtol=2e-3), "mismatch vs reference"

    print("KERNEL_OK")
</pallas_src>

<mosaic_0001>
module attributes {stable_mosaic.version = 11 : i64} {
  func.func @_gcn_fused_kernel(%arg0: i32, %arg1: i32, %arg2: memref<128x128xbf16, #tpu.memory_space<vmem>>, %arg3: memref<128x128xbf16, #tpu.memory_space<vmem>>, %arg4: memref<1x128xf32, #tpu.memory_space<vmem>>, %arg5: memref<1x128x128xbf16, #tpu.memory_space<vmem>>, %arg6: memref<1x1x128xf32, #tpu.memory_space<vmem>>, %arg7: memref<128x128xbf16, #tpu.memory_space<vmem>>, %arg8: memref<1x128xf32, #tpu.memory_space<vmem>>, %arg9: memref<128x128xbf16, #tpu.memory_space<vmem>>, %arg10: memref<128x128xf32, #tpu.memory_space<vmem>>, %arg11: memref<128x128xbf16, #tpu.memory_space<vmem>>, %arg12: memref<128x128xf32, #tpu.memory_space<vmem>>) attributes {dimension_semantics = [#tpu.dimension_semantics<arbitrary>, #tpu.dimension_semantics<arbitrary>], iteration_bounds = array<i64: 2, 1>, scalar_prefetch = 0 : i64, scratch_operands = 2 : i64, tpu.core_type = #tpu.core_type<tc>, window_params = [{pipeline_mode = #tpu.pipeline_mode<synchronous>, transform_indices = @transform_0, window_bounds = array<i64: 128, 128>}, {pipeline_mode = #tpu.pipeline_mode<synchronous>, transform_indices = @transform_1, window_bounds = array<i64: 128, 128>}, {pipeline_mode = #tpu.pipeline_mode<synchronous>, transform_indices = @transform_2, window_bounds = array<i64: 1, 128>}, {transform_indices = @transform_3, window_bounds = array<i64: 1, 128, 128>}, {transform_indices = @transform_4, window_bounds = array<i64: 1, 1, 128>}, {pipeline_mode = #tpu.pipeline_mode<synchronous>, transform_indices = @transform_5, window_bounds = array<i64: 128, 128>}, {pipeline_mode = #tpu.pipeline_mode<synchronous>, transform_indices = @transform_6, window_bounds = array<i64: 1, 128>}, {transform_indices = @transform_7, window_bounds = array<i64: 128, 128>}, {pipeline_mode = #tpu.pipeline_mode<synchronous>, transform_indices = @transform_8, window_bounds = array<i64: 128, 128>}]} {
    %c0_i32 = arith.constant 0 : i32
    %0 = arith.cmpi eq, %arg0, %c0_i32 : i32
    %c0_i32_0 = arith.constant 0 : i32
    %1 = arith.cmpi eq, %arg1, %c0_i32_0 : i32
    %2 = arith.andi %0, %1 : i1
    %3 = arith.extui %2 : i1 to i32
    %c0_i32_1 = arith.constant 0 : i32
    %4 = arith.cmpi ne, %3, %c0_i32_1 : i32
    scf.if %4 {
      %c0_35 = arith.constant 0 : index
      %c0_36 = arith.constant 0 : index
      %93 = vector.load %arg2[%c0_35, %c0_36] : memref<128x128xbf16, #tpu.memory_space<vmem>>, vector<128x128xbf16>
      %c0_37 = arith.constant 0 : index
      %c0_38 = arith.constant 0 : index
      %94 = vector.load %arg3[%c0_37, %c0_38] : memref<128x128xbf16, #tpu.memory_space<vmem>>, vector<128x128xbf16>
      %cst_39 = arith.constant dense<0.000000e+00> : vector<128x128xf32>
      %95 = tpu.matmul %93, %94, %cst_39 {dimension_numbers = #tpu.dot_dimension_numbers<[1], [0], [0], [1], [0, 0, 1, 1], [], []>} : vector<128x128xbf16>, vector<128x128xbf16>, vector<128x128xf32> -> vector<128x128xf32>
      %c0_40 = arith.constant 0 : index
      %c0_41 = arith.constant 0 : index
      %96 = vector.load %arg4[%c0_40, %c0_41] : memref<1x128xf32, #tpu.memory_space<vmem>>, vector<1x128xf32>
      %97 = vector.broadcast %96 : vector<1x128xf32> to vector<128x128xf32>
      %98 = arith.addf %95, %97 : vector<128x128xf32>
      %cst_42 = arith.constant 0.000000e+00 : f32
      %99 = vector.broadcast %cst_42 : f32 to vector<128x128xf32>
      %100 = arith.maximumf %98, %99 : vector<128x128xf32>
      %101 = arith.truncf %100 : vector<128x128xf32> to vector<128x128xbf16>
      %c0_43 = arith.constant 0 : index
      %c0_44 = arith.constant 0 : index
      %102 = vector.load %arg11[%c0_43, %c0_44] : memref<128x128xbf16, #tpu.memory_space<vmem>>, vector<128x128xbf16>
      tpu.vector_store %arg11[%c0_43, %c0_44], %101 {strides = array<i32>} : memref<128x128xbf16, #tpu.memory_space<vmem>>, vector<128x128xbf16>,
    } else {
    }
    %c0_i32_2 = arith.constant 0 : i32
    %5 = arith.cmpi eq, %arg1, %c0_i32_2 : i32
    %6 = arith.extui %5 : i1 to i32
    %c0_i32_3 = arith.constant 0 : i32
    %7 = arith.cmpi ne, %6, %c0_i32_3 : i32
    scf.if %7 {
      %cst_35 = arith.constant 0.000000e+00 : f32
      %93 = vector.broadcast %cst_35 : f32 to vector<128x128xf32>
      %c0_36 = arith.constant 0 : index
      %c0_37 = arith.constant 0 : index
      %94 = vector.load %arg12[%c0_36, %c0_37] : memref<128x128xf32, #tpu.memory_space<vmem>>, vector<128x128xf32>
      tpu.vector_store %arg12[%c0_36, %c0_37], %93 {strides = array<i32>} : memref<128x128xf32, #tpu.memory_space<vmem>>, vector<128x128xf32>,
    } else {
    }
    %c128_i32 = arith.constant 128 : i32
    %8 = arith.muli %arg1, %c128_i32 : i32
    %9 = tpu.assume_multiple %8, 128 : i32
    %10 = arith.index_cast %9 : i32 to index
    %c0 = arith.constant 0 : index
    %11 = vector.load %arg11[%10, %c0] : memref<128x128xbf16, #tpu.memory_space<vmem>>, vector<128x128xbf16>
    %c0_4 = arith.constant 0 : index
    %c0_5 = arith.constant 0 : index
    %c0_6 = arith.constant 0 : index
    %12 = vector.load %arg5[%c0_4, %c0_5, %c0_6] : memref<1x128x128xbf16, #tpu.memory_space<vmem>>, vector<1x128x128xbf16>
    %13 = vector.shape_cast %12 : vector<1x128x128xbf16> to vector<128x128xbf16>
    %cst = arith.constant dense<0.000000e+00> : vector<128x128xf32>
    %14 = tpu.matmul %11, %13, %cst {dimension_numbers = #tpu.dot_dimension_numbers<[1], [0], [0], [1], [0, 0, 1, 1], [], []>} : vector<128x128xbf16>, vector<128x128xbf16>, vector<128x128xf32> -> vector<128x128xf32>
    %c0_7 = arith.constant 0 : index
    %c0_8 = arith.constant 0 : index
    %c0_9 = arith.constant 0 : index
    %15 = vector.load %arg6[%c0_7, %c0_8, %c0_9] : memref<1x1x128xf32, #tpu.memory_space<vmem>>, vector<1x1x128xf32>
    %16 = vector.shape_cast %15 : vector<1x1x128xf32> to vector<1x128xf32>
    %17 = vector.broadcast %16 : vector<1x128xf32> to vector<128x128xf32>
    %18 = arith.addf %14, %17 : vector<128x128xf32>
    %19 = tpu.iota {dimensions = array<i32: 1>} : vector<1x128xi32>
    %c32_i32 = arith.constant 32 : i32
    %20 = vector.broadcast %c32_i32 : i32 to vector<1x128xi32>
    %21 = arith.cmpi slt, %19, %20 : vector<1x128xi32>
    %cst_10 = arith.constant 0xFF800000 : f32
    %22 = vector.shape_cast %21 : vector<1x128xi1> to vector<1x128xi1>
    %23 = vector.broadcast %22 : vector<1x128xi1> to vector<128x128xi1>
    %24 = vector.broadcast %cst_10 : f32 to vector<128x128xf32>
    %25 = arith.select %23, %18, %24 : vector<128x128xi1>, vector<128x128xf32>
    %cst_11 = arith.constant 0xFF800000 : f32
    %26 = vector.broadcast %cst_11 : f32 to vector<128x1xf32>
    %cst_12 = arith.constant 0xFF800000 : f32
    %c0_i32_13 = arith.constant 0 : i32
    %cst_14 = arith.constant dense<0xFF800000> : vector<128xf32>
    %27 = vector.multi_reduction <maximumf>, %25, %cst_14 [1] : vector<128x128xf32> to vector<128xf32>
    %28 = vector.shape_cast %27 : vector<128xf32> to vector<128x1xf32>
    %29 = vector.broadcast %28 : vector<128x1xf32> to vector<128x128xf32>
    %30 = arith.cmpf oge, %25, %29 : vector<128x128xf32>
    %31 = vector.broadcast %cst_12 : f32 to vector<128x128xf32>
    %32 = arith.select %30, %31, %25 : vector<128x128xi1>, vector<128x128xf32>
    %c1_i32 = arith.constant 1 : i32
    %cst_15 = arith.constant dense<0xFF800000> : vector<128xf32>
    %33 = vector.multi_reduction <maximumf>, %32, %cst_15 [1] : vector<128x128xf32> to vector<128xf32>
    %34 = vector.shape_cast %33 : vector<128xf32> to vector<128x1xf32>
    %35 = vector.broadcast %34 : vector<128x1xf32> to vector<128x128xf32>
    %36 = arith.cmpf oge, %32, %35 : vector<128x128xf32>
    %37 = vector.broadcast %cst_12 : f32 to vector<128x128xf32>
    %38 = arith.select %36, %37, %32 : vector<128x128xi1>, vector<128x128xf32>
    %c2_i32 = arith.constant 2 : i32
    %cst_16 = arith.constant dense<0xFF800000> : vector<128xf32>
    %39 = vector.multi_reduction <maximumf>, %38, %cst_16 [1] : vector<128x128xf32> to vector<128xf32>
    %40 = vector.shape_cast %39 : vector<128xf32> to vector<128x1xf32>
    %41 = vector.broadcast %40 : vector<128x1xf32> to vector<128x128xf32>
    %42 = arith.cmpf oge, %38, %41 : vector<128x128xf32>
    %43 = vector.broadcast %cst_12 : f32 to vector<128x128xf32>
    %44 = arith.select %42, %43, %38 : vector<128x128xi1>, vector<128x128xf32>
    %c3_i32 = arith.constant 3 : i32
    %cst_17 = arith.constant dense<0xFF800000> : vector<128xf32>
    %45 = vector.multi_reduction <maximumf>, %44, %cst_17 [1] : vector<128x128xf32> to vector<128xf32>
    %46 = vector.shape_cast %45 : vector<128xf32> to vector<128x1xf32>
    %47 = vector.broadcast %46 : vector<128x1xf32> to vector<128x128xf32>
    %48 = arith.cmpf oge, %44, %47 : vector<128x128xf32>
    %49 = vector.broadcast %cst_12 : f32 to vector<128x128xf32>
    %50 = arith.select %48, %49, %44 : vector<128x128xi1>, vector<128x128xf32>
    %c4_i32 = arith.constant 4 : i32
    %cst_18 = arith.constant dense<0xFF800000> : vector<128xf32>
    %51 = vector.multi_reduction <maximumf>, %50, %cst_18 [1] : vector<128x128xf32> to vector<128xf32>
    %52 = vector.shape_cast %51 : vector<128xf32> to vector<128x1xf32>
    %53 = vector.broadcast %52 : vector<128x1xf32> to vector<128x128xf32>
    %54 = arith.cmpf oge, %50, %53 : vector<128x128xf32>
    %55 = vector.broadcast %cst_12 : f32 to vector<128x128xf32>
    %56 = arith.select %54, %55, %50 : vector<128x128xi1>, vector<128x128xf32>
    %c5_i32 = arith.constant 5 : i32
    %cst_19 = arith.constant dense<0xFF800000> : vector<128xf32>
    %57 = vector.multi_reduction <maximumf>, %56, %cst_19 [1] : vector<128x128xf32> to vector<128xf32>
    %58 = vector.shape_cast %57 : vector<128xf32> to vector<128x1xf32>
    %59 = vector.broadcast %58 : vector<128x1xf32> to vector<128x128xf32>
    %60 = arith.cmpf oge, %56, %59 : vector<128x128xf32>
    %61 = vector.broadcast %cst_12 : f32 to vector<128x128xf32>
    %62 = arith.select %60, %61, %56 : vector<128x128xi1>, vector<128x128xf32>
    %c6_i32 = arith.constant 6 : i32
    %cst_20 = arith.constant dense<0xFF800000> : vector<128xf32>
    %63 = vector.multi_reduction <maximumf>, %62, %cst_20 [1] : vector<128x128xf32> to vector<128xf32>
    %64 = vector.shape_cast %63 : vector<128xf32> to vector<128x1xf32>
    %65 = vector.broadcast %64 : vector<128x1xf32> to vector<128x128xf32>
    %66 = arith.cmpf oge, %62, %65 : vector<128x128xf32>
    %67 = vector.broadcast %cst_12 : f32 to vector<128x128xf32>
    %68 = arith.select %66, %67, %62 : vector<128x128xi1>, vector<128x128xf32>
    %c7_i32 = arith.constant 7 : i32
    %cst_21 = arith.constant dense<0xFF800000> : vector<128xf32>
    %69 = vector.multi_reduction <maximumf>, %68, %cst_21 [1] : vector<128x128xf32> to vector<128xf32>
    %70 = vector.shape_cast %69 : vector<128xf32> to vector<128x1xf32>
    %71 = vector.broadcast %70 : vector<128x1xf32> to vector<128x128xf32>
    %72 = arith.cmpf oge, %68, %71 : vector<128x128xf32>
    %73 = vector.broadcast %cst_12 : f32 to vector<128x128xf32>
    %74 = arith.select %72, %73, %68 : vector<128x128xi1>, vector<128x128xf32>
    %75 = vector.broadcast %70 : vector<128x1xf32> to vector<128x128xf32>
    %76 = arith.cmpf oge, %25, %75 : vector<128x128xf32>
    %cst_22 = arith.constant 0.000000e+00 : f32
    %77 = vector.broadcast %cst_22 : f32 to vector<128x128xf32>
    %78 = arith.select %76, %25, %77 : vector<128x128xi1>, vector<128x128xf32>
    %79 = arith.truncf %78 : vector<128x128xf32> to vector<128x128xbf16>
    %c0_23 = arith.constant 0 : index
    %c0_24 = arith.constant 0 : index
    %80 = vector.load %arg12[%c0_23, %c0_24] : memref<128x128xf32, #tpu.memory_space<vmem>>, vector<128x128xf32>
    %c0_25 = arith.constant 0 : index
    %c0_26 = arith.constant 0 : index
    %81 = vector.load %arg9[%c0_25, %c0_26] : memref<128x128xbf16, #tpu.memory_space<vmem>>, vector<128x128xbf16>
    %cst_27 = arith.constant dense<0.000000e+00> : vector<128x128xf32>
    %82 = tpu.matmul %81, %79, %cst_27 {dimension_numbers = #tpu.dot_dimension_numbers<[1], [0], [0], [1], [0, 0, 1, 1], [], []>} : vector<128x128xbf16>, vector<128x128xbf16>, vector<128x128xf32> -> vector<128x128xf32>
    %83 = arith.addf %80, %82 : vector<128x128xf32>
    %c0_28 = arith.constant 0 : index
    %c0_29 = arith.constant 0 : index
    %84 = vector.load %arg12[%c0_28, %c0_29] : memref<128x128xf32, #tpu.memory_space<vmem>>, vector<128x128xf32>
    tpu.vector_store %arg12[%c0_28, %c0_29], %83 {strides = array<i32>} : memref<128x128xf32, #tpu.memory_space<vmem>>, vector<128x128xf32>,
    %c0_i32_30 = arith.constant 0 : i32
    %85 = arith.cmpi eq, %arg1, %c0_i32_30 : i32
    %86 = arith.extui %85 : i1 to i32
    %c0_i32_31 = arith.constant 0 : i32
    %87 = arith.cmpi ne, %86, %c0_i32_31 : i32
    scf.if %87 {
      %c0_35 = arith.constant 0 : index
      %c0_36 = arith.constant 0 : index
      %93 = vector.load %arg12[%c0_35, %c0_36] : memref<128x128xf32, #tpu.memory_space<vmem>>, vector<128x128xf32>
      %94 = arith.truncf %93 : vector<128x128xf32> to vector<128x128xbf16>
      %c0_37 = arith.constant 0 : index
      %c0_38 = arith.constant 0 : index
      %95 = vector.load %arg11[%c0_37, %c0_38] : memref<128x128xbf16, #tpu.memory_space<vmem>>, vector<128x128xbf16>
      tpu.vector_store %arg11[%c0_37, %c0_38], %94 {strides = array<i32>} : memref<128x128xbf16, #tpu.memory_space<vmem>>, vector<128x128xbf16>,
    } else {
    }
    %c1_i32_32 = arith.constant 1 : i32
    %88 = arith.cmpi eq, %arg0, %c1_i32_32 : i32
    %c0_i32_33 = arith.constant 0 : i32
    %89 = arith.cmpi eq, %arg1, %c0_i32_33 : i32
    %90 = arith.andi %88, %89 : i1
    %91 = arith.extui %90 : i1 to i32
    %c0_i32_34 = arith.constant 0 : i32
    %92 = arith.cmpi ne, %91, %c0_i32_34 : i32
    scf.if %92 {
      %c0_35 = arith.constant 0 : index
      %c0_36 = arith.constant 0 : index
      %93 = vector.load %arg11[%c0_35, %c0_36] : memref<128x128xbf16, #tpu.memory_space<vmem>>, vector<128x128xbf16>
      %c0_37 = arith.constant 0 : index
      %c0_38 = arith.constant 0 : index
      %94 = vector.load %arg7[%c0_37, %c0_38] : memref<128x128xbf16, #tpu.memory_space<vmem>>, vector<128x128xbf16>
      %cst_39 = arith.constant dense<0.000000e+00> : vector<128x128xf32>
      %95 = tpu.matmul %93, %94, %cst_39 {dimension_numbers = #tpu.dot_dimension_numbers<[1], [0], [0], [1], [0, 0, 1, 1], [], []>} : vector<128x128xbf16>, vector<128x128xbf16>, vector<128x128xf32> -> vector<128x128xf32>
      %c0_40 = arith.constant 0 : index
      %c0_41 = arith.constant 0 : index
      %96 = vector.load %arg8[%c0_40, %c0_41] : memref<1x128xf32, #tpu.memory_space<vmem>>, vector<1x128xf32>
      %97 = vector.broadcast %96 : vector<1x128xf32> to vector<128x128xf32>
      %98 = arith.addf %95, %97 : vector<128x128xf32>
      %c0_42 = arith.constant 0 : index
      %c0_43 = arith.constant 0 : index
      %99 = vector.load %arg10[%c0_42, %c0_43] : memref<128x128xf32, #tpu.memory_space<vmem>>, vector<128x128xf32>
      tpu.vector_store %arg10[%c0_42, %c0_43], %98 {strides = array<i32>} : memref<128x128xf32, #tpu.memory_space<vmem>>, vector<128x128xf32>,
    } else {
    }
    return
  }
  func.func @transform_0(%arg0: i32, %arg1: i32) -> (i32, i32) {
    %c0_i32 = arith.constant 0 : i32
    %c0_i32_0 = arith.constant 0 : i32
    %c0_i32_1 = arith.constant 0 : i32
    return %c0_i32, %c0_i32_0 : i32, i32
  }
  func.func @transform_1(%arg0: i32, %arg1: i32) -> (i32, i32) {
    %c0_i32 = arith.constant 0 : i32
    %c0_i32_0 = arith.constant 0 : i32
    %c0_i32_1 = arith.constant 0 : i32
    return %c0_i32, %c0_i32_0 : i32, i32
  }
  func.func @transform_2(%arg0: i32, %arg1: i32) -> (i32, i32) {
    %c0_i32 = arith.constant 0 : i32
    %c0_i32_0 = arith.constant 0 : i32
    %c0_i32_1 = arith.constant 0 : i32
    return %c0_i32, %c0_i32_0 : i32, i32
  }
  func.func @transform_3(%arg0: i32, %arg1: i32) -> (i32, i32, i32) {
    %c0_i32 = arith.constant 0 : i32
    %c0_i32_0 = arith.constant 0 : i32
    %c0_i32_1 = arith.constant 0 : i32
    return %arg0, %c0_i32, %c0_i32_0 : i32, i32, i32
  }
  func.func @transform_4(%arg0: i32, %arg1: i32) -> (i32, i32, i32) {
    %c0_i32 = arith.constant 0 : i32
    %c0_i32_0 = arith.constant 0 : i32
    %c0_i32_1 = arith.constant 0 : i32
    return %arg0, %c0_i32, %c0_i32_0 : i32, i32, i32
  }
  func.func @transform_5(%arg0: i32, %arg1: i32) -> (i32, i32) {
    %c0_i32 = arith.constant 0 : i32
    %c0_i32_0 = arith.constant 0 : i32
    %c0_i32_1 = arith.constant 0 : i32
    return %c0_i32, %c0_i32_0 : i32, i32
  }
  func.func @transform_6(%arg0: i32, %arg1: i32) -> (i32, i32) {
    %c0_i32 = arith.constant 0 : i32
    %c0_i32_0 = arith.constant 0 : i32
    %c0_i32_1 = arith.constant 0 : i32
    return %c0_i32, %c0_i32_0 : i32, i32
  }
  func.func @transform_7(%arg0: i32, %arg1: i32) -> (i32, i32) {
    %c0_i32 = arith.constant 0 : i32
    %c0_i32_0 = arith.constant 0 : i32
    return %c0_i32, %arg1 : i32, i32
  }
  func.func @transform_8(%arg0: i32, %arg1: i32) -> (i32, i32) {
    %c0_i32 = arith.constant 0 : i32
    %c0_i32_0 = arith.constant 0 : i32
    %c0_i32_1 = arith.constant 0 : i32
    return %c0_i32, %c0_i32_0 : i32, i32
  }
}

module attributes {stable_mosaic.version = 11 : i64} {
  func.func @_gcn_fused_kernel(%arg0: i32, %arg1: i32, %arg2: memref<128x128xbf16, #tpu.memory_space<vmem>>, %arg3: memref<128x128xbf16, #tpu.memory_space<vmem>>, %arg4: memref<1x128xf32, #tpu.memory_space<vmem>>, %arg5: memref<1x128x128xbf16, #tpu.memory_space<vmem>>, %arg6: memref<1x1x128xf32, #tpu.memory_space<vmem>>, %arg7: memref<128x128xbf16, #tpu.memory_space<vmem>>, %arg8: memref<1x128xf32, #tpu.memory_space<vmem>>, %arg9: memref<128x128xbf16, #tpu.memory_space<vmem>>, %arg10: memref<128x128xf32, #tpu.memory_space<vmem>>, %arg11: memref<128x128xbf16, #tpu.memory_space<vmem>>, %arg12: memref<128x128xf32, #tpu.memory_space<vmem>>) attributes {dimension_semantics = [#tpu.dimension_semantics<arbitrary>, #tpu.dimension_semantics<arbitrary>], iteration_bounds = array<i64: 2, 1>, scalar_prefetch = 0 : i64, scratch_operands = 2 : i64, tpu.core_type = #tpu.core_type<tc>, window_params = [{pipeline_mode = #tpu.pipeline_mode<synchronous>, transform_indices = @transform_0, window_bounds = array<i64: 128, 128>}, {pipeline_mode = #tpu.pipeline_mode<synchronous>, transform_indices = @transform_1, window_bounds = array<i64: 128, 128>}, {pipeline_mode = #tpu.pipeline_mode<synchronous>, transform_indices = @transform_2, window_bounds = array<i64: 1, 128>}, {transform_indices = @transform_3, window_bounds = array<i64: 1, 128, 128>}, {transform_indices = @transform_4, window_bounds = array<i64: 1, 1, 128>}, {pipeline_mode = #tpu.pipeline_mode<synchronous>, transform_indices = @transform_5, window_bounds = array<i64: 128, 128>}, {pipeline_mode = #tpu.pipeline_mode<synchronous>, transform_indices = @transform_6, window_bounds = array<i64: 1, 128>}, {transform_indices = @transform_7, window_bounds = array<i64: 128, 128>}, {pipeline_mode = #tpu.pipeline_mode<synchronous>, transform_indices = @transform_8, window_bounds = array<i64: 128, 128>}]} {
    %c0_i32 = arith.constant 0 : i32
    %0 = arith.cmpi eq, %arg0, %c0_i32 : i32
    %c0_i32_0 = arith.constant 0 : i32
    %1 = arith.cmpi eq, %arg1, %c0_i32_0 : i32
    %2 = arith.andi %0, %1 : i1
    %3 = arith.extui %2 : i1 to i32
    %c0_i32_1 = arith.constant 0 : i32
    %4 = arith.cmpi ne, %3, %c0_i32_1 : i32
    scf.if %4 {
      %c0_35 = arith.constant 0 : index
      %c0_36 = arith.constant 0 : index
      %93 = vector.load %arg2[%c0_35, %c0_36] : memref<128x128xbf16, #tpu.memory_space<vmem>>, vector<128x128xbf16>
      %c0_37 = arith.constant 0 : index
      %c0_38 = arith.constant 0 : index
      %94 = vector.load %arg3[%c0_37, %c0_38] : memref<128x128xbf16, #tpu.memory_space<vmem>>, vector<128x128xbf16>
      %cst_39 = arith.constant dense<0.000000e+00> : vector<128x128xf32>
      %95 = tpu.matmul %93, %94, %cst_39 {dimension_numbers = #tpu.dot_dimension_numbers<[1], [0], [0], [1], [0, 0, 1, 1], [], []>} : vector<128x128xbf16>, vector<128x128xbf16>, vector<128x128xf32> -> vector<128x128xf32>
      %c0_40 = arith.constant 0 : index
      %c0_41 = arith.constant 0 : index
      %96 = vector.load %arg4[%c0_40, %c0_41] : memref<1x128xf32, #tpu.memory_space<vmem>>, vector<1x128xf32>
      %97 = vector.broadcast %96 : vector<1x128xf32> to vector<128x128xf32>
      %98 = arith.addf %95, %97 : vector<128x128xf32>
      %cst_42 = arith.constant 0.000000e+00 : f32
      %99 = vector.broadcast %cst_42 : f32 to vector<128x128xf32>
      %100 = arith.maximumf %98, %99 : vector<128x128xf32>
      %101 = arith.truncf %100 : vector<128x128xf32> to vector<128x128xbf16>
      %c0_43 = arith.constant 0 : index
      %c0_44 = arith.constant 0 : index
      %102 = vector.load %arg11[%c0_43, %c0_44] : memref<128x128xbf16, #tpu.memory_space<vmem>>, vector<128x128xbf16>
      tpu.vector_store %arg11[%c0_43, %c0_44], %101 {strides = array<i32>} : memref<128x128xbf16, #tpu.memory_space<vmem>>, vector<128x128xbf16>,
    } else {
    }
    %c0_i32_2 = arith.constant 0 : i32
    %5 = arith.cmpi eq, %arg1, %c0_i32_2 : i32
    %6 = arith.extui %5 : i1 to i32
    %c0_i32_3 = arith.constant 0 : i32
    %7 = arith.cmpi ne, %6, %c0_i32_3 : i32
    scf.if %7 {
      %cst_35 = arith.constant 0.000000e+00 : f32
      %93 = vector.broadcast %cst_35 : f32 to vector<128x128xf32>
      %c0_36 = arith.constant 0 : index
      %c0_37 = arith.constant 0 : index
      %94 = vector.load %arg12[%c0_36, %c0_37] : memref<128x128xf32, #tpu.memory_space<vmem>>, vector<128x128xf32>
      tpu.vector_store %arg12[%c0_36, %c0_37], %93 {strides = array<i32>} : memref<128x128xf32, #tpu.memory_space<vmem>>, vector<128x128xf32>,
    } else {
    }
    %c128_i32 = arith.constant 128 : i32
    %8 = arith.muli %arg1, %c128_i32 : i32
    %9 = tpu.assume_multiple %8, 128 : i32
    %10 = arith.index_cast %9 : i32 to index
    %c0 = arith.constant 0 : index
    %11 = vector.load %arg11[%10, %c0] : memref<128x128xbf16, #tpu.memory_space<vmem>>, vector<128x128xbf16>
    %c0_4 = arith.constant 0 : index
    %c0_5 = arith.constant 0 : index
    %c0_6 = arith.constant 0 : index
    %12 = vector.load %arg5[%c0_4, %c0_5, %c0_6] : memref<1x128x128xbf16, #tpu.memory_space<vmem>>, vector<1x128x128xbf16>
    %13 = vector.shape_cast %12 : vector<1x128x128xbf16> to vector<128x128xbf16>
    %cst = arith.constant dense<0.000000e+00> : vector<128x128xf32>
    %14 = tpu.matmul %11, %13, %cst {dimension_numbers = #tpu.dot_dimension_numbers<[1], [0], [0], [1], [0, 0, 1, 1], [], []>} : vector<128x128xbf16>, vector<128x128xbf16>, vector<128x128xf32> -> vector<128x128xf32>
    %c0_7 = arith.constant 0 : index
    %c0_8 = arith.constant 0 : index
    %c0_9 = arith.constant 0 : index
    %15 = vector.load %arg6[%c0_7, %c0_8, %c0_9] : memref<1x1x128xf32, #tpu.memory_space<vmem>>, vector<1x1x128xf32>
    %16 = vector.shape_cast %15 : vector<1x1x128xf32> to vector<1x128xf32>
    %17 = vector.broadcast %16 : vector<1x128xf32> to vector<128x128xf32>
    %18 = arith.addf %14, %17 : vector<128x128xf32>
    %19 = tpu.iota {dimensions = array<i32: 1>} : vector<1x128xi32>
    %c32_i32 = arith.constant 32 : i32
    %20 = vector.broadcast %c32_i32 : i32 to vector<1x128xi32>
    %21 = arith.cmpi slt, %19, %20 : vector<1x128xi32>
    %cst_10 = arith.constant 0xFF800000 : f32
    %22 = vector.shape_cast %21 : vector<1x128xi1> to vector<1x128xi1>
    %23 = vector.broadcast %22 : vector<1x128xi1> to vector<128x128xi1>
    %24 = vector.broadcast %cst_10 : f32 to vector<128x128xf32>
    %25 = arith.select %23, %18, %24 : vector<128x128xi1>, vector<128x128xf32>
    %cst_11 = arith.constant 0xFF800000 : f32
    %26 = vector.broadcast %cst_11 : f32 to vector<128x1xf32>
    %cst_12 = arith.constant 0xFF800000 : f32
    %c0_i32_13 = arith.constant 0 : i32
    %cst_14 = arith.constant dense<0xFF800000> : vector<128xf32>
    %27 = vector.multi_reduction <maximumf>, %25, %cst_14 [1] : vector<128x128xf32> to vector<128xf32>
    %28 = vector.shape_cast %27 : vector<128xf32> to vector<128x1xf32>
    %29 = vector.broadcast %28 : vector<128x1xf32> to vector<128x128xf32>
    %30 = arith.cmpf oge, %25, %29 : vector<128x128xf32>
    %31 = vector.broadcast %cst_12 : f32 to vector<128x128xf32>
    %32 = arith.select %30, %31, %25 : vector<128x128xi1>, vector<128x128xf32>
    %c1_i32 = arith.constant 1 : i32
    %cst_15 = arith.constant dense<0xFF800000> : vector<128xf32>
    %33 = vector.multi_reduction <maximumf>, %32, %cst_15 [1] : vector<128x128xf32> to vector<128xf32>
    %34 = vector.shape_cast %33 : vector<128xf32> to vector<128x1xf32>
    %35 = vector.broadcast %34 : vector<128x1xf32> to vector<128x128xf32>
    %36 = arith.cmpf oge, %32, %35 : vector<128x128xf32>
    %37 = vector.broadcast %cst_12 : f32 to vector<128x128xf32>
    %38 = arith.select %36, %37, %32 : vector<128x128xi1>, vector<128x128xf32>
    %c2_i32 = arith.constant 2 : i32
    %cst_16 = arith.constant dense<0xFF800000> : vector<128xf32>
    %39 = vector.multi_reduction <maximumf>, %38, %cst_16 [1] : vector<128x128xf32> to vector<128xf32>
    %40 = vector.shape_cast %39 : vector<128xf32> to vector<128x1xf32>
    %41 = vector.broadcast %40 : vector<128x1xf32> to vector<128x128xf32>
    %42 = arith.cmpf oge, %38, %41 : vector<128x128xf32>
    %43 = vector.broadcast %cst_12 : f32 to vector<128x128xf32>
    %44 = arith.select %42, %43, %38 : vector<128x128xi1>, vector<128x128xf32>
    %c3_i32 = arith.constant 3 : i32
    %cst_17 = arith.constant dense<0xFF800000> : vector<128xf32>
    %45 = vector.multi_reduction <maximumf>, %44, %cst_17 [1] : vector<128x128xf32> to vector<128xf32>
    %46 = vector.shape_cast %45 : vector<128xf32> to vector<128x1xf32>
    %47 = vector.broadcast %46 : vector<128x1xf32> to vector<128x128xf32>
    %48 = arith.cmpf oge, %44, %47 : vector<128x128xf32>
    %49 = vector.broadcast %cst_12 : f32 to vector<128x128xf32>
    %50 = arith.select %48, %49, %44 : vector<128x128xi1>, vector<128x128xf32>
    %c4_i32 = arith.constant 4 : i32
    %cst_18 = arith.constant dense<0xFF800000> : vector<128xf32>
    %51 = vector.multi_reduction <maximumf>, %50, %cst_18 [1] : vector<128x128xf32> to vector<128xf32>
    %52 = vector.shape_cast %51 : vector<128xf32> to vector<128x1xf32>
    %53 = vector.broadcast %52 : vector<128x1xf32> to vector<128x128xf32>
    %54 = arith.cmpf oge, %50, %53 : vector<128x128xf32>
    %55 = vector.broadcast %cst_12 : f32 to vector<128x128xf32>
    %56 = arith.select %54, %55, %50 : vector<128x128xi1>, vector<128x128xf32>
    %c5_i32 = arith.constant 5 : i32
    %cst_19 = arith.constant dense<0xFF800000> : vector<128xf32>
    %57 = vector.multi_reduction <maximumf>, %56, %cst_19 [1] : vector<128x128xf32> to vector<128xf32>
    %58 = vector.shape_cast %57 : vector<128xf32> to vector<128x1xf32>
    %59 = vector.broadcast %58 : vector<128x1xf32> to vector<128x128xf32>
    %60 = arith.cmpf oge, %56, %59 : vector<128x128xf32>
    %61 = vector.broadcast %cst_12 : f32 to vector<128x128xf32>
    %62 = arith.select %60, %61, %56 : vector<128x128xi1>, vector<128x128xf32>
    %c6_i32 = arith.constant 6 : i32
    %cst_20 = arith.constant dense<0xFF800000> : vector<128xf32>
    %63 = vector.multi_reduction <maximumf>, %62, %cst_20 [1] : vector<128x128xf32> to vector<128xf32>
    %64 = vector.shape_cast %63 : vector<128xf32> to vector<128x1xf32>
    %65 = vector.broadcast %64 : vector<128x1xf32> to vector<128x128xf32>
    %66 = arith.cmpf oge, %62, %65 : vector<128x128xf32>
    %67 = vector.broadcast %cst_12 : f32 to vector<128x128xf32>
    %68 = arith.select %66, %67, %62 : vector<128x128xi1>, vector<128x128xf32>
    %c7_i32 = arith.constant 7 : i32
    %cst_21 = arith.constant dense<0xFF800000> : vector<128xf32>
    %69 = vector.multi_reduction <maximumf>, %68, %cst_21 [1] : vector<128x128xf32> to vector<128xf32>
    %70 = vector.shape_cast %69 : vector<128xf32> to vector<128x1xf32>
    %71 = vector.broadcast %70 : vector<128x1xf32> to vector<128x128xf32>
    %72 = arith.cmpf oge, %68, %71 : vector<128x128xf32>
    %73 = vector.broadcast %cst_12 : f32 to vector<128x128xf32>
    %74 = arith.select %72, %73, %68 : vector<128x128xi1>, vector<128x128xf32>
    %75 = vector.broadcast %70 : vector<128x1xf32> to vector<128x128xf32>
    %76 = arith.cmpf oge, %25, %75 : vector<128x128xf32>
    %cst_22 = arith.constant 0.000000e+00 : f32
    %77 = vector.broadcast %cst_22 : f32 to vector<128x128xf32>
    %78 = arith.select %76, %25, %77 : vector<128x128xi1>, vector<128x128xf32>
    %79 = arith.truncf %78 : vector<128x128xf32> to vector<128x128xbf16>
    %c0_23 = arith.constant 0 : index
    %c0_24 = arith.constant 0 : index
    %80 = vector.load %arg12[%c0_23, %c0_24] : memref<128x128xf32, #tpu.memory_space<vmem>>, vector<128x128xf32>
    %c0_25 = arith.constant 0 : index
    %c0_26 = arith.constant 0 : index
    %81 = vector.load %arg9[%c0_25, %c0_26] : memref<128x128xbf16, #tpu.memory_space<vmem>>, vector<128x128xbf16>
    %cst_27 = arith.constant dense<0.000000e+00> : vector<128x128xf32>
    %82 = tpu.matmul %81, %79, %cst_27 {dimension_numbers = #tpu.dot_dimension_numbers<[1], [0], [0], [1], [0, 0, 1, 1], [], []>} : vector<128x128xbf16>, vector<128x128xbf16>, vector<128x128xf32> -> vector<128x128xf32>
    %83 = arith.addf %80, %82 : vector<128x128xf32>
    %c0_28 = arith.constant 0 : index
    %c0_29 = arith.constant 0 : index
    %84 = vector.load %arg12[%c0_28, %c0_29] : memref<128x128xf32, #tpu.memory_space<vmem>>, vector<128x128xf32>
    tpu.vector_store %arg12[%c0_28, %c0_29], %83 {strides = array<i32>} : memref<128x128xf32, #tpu.memory_space<vmem>>, vector<128x128xf32>,
    %c0_i32_30 = arith.constant 0 : i32
    %85 = arith.cmpi eq, %arg1, %c0_i32_30 : i32
    %86 = arith.extui %85 : i1 to i32
    %c0_i32_31 = arith.constant 0 : i32
    %87 = arith.cmpi ne, %86, %c0_i32_31 : i32
    scf.if %87 {
      %c0_35 = arith.constant 0 : index
      %c0_36 = arith.constant 0 : index
      %93 = vector.load %arg12[%c0_35, %c0_36] : memref<128x128xf32, #tpu.memory_space<vmem>>, vector<128x128xf32>
      %94 = arith.truncf %93 : vector<128x128xf32> to vector<128x128xbf16>
      %c0_37 = arith.constant 0 : index
      %c0_38 = arith.constant 0 : index
      %95 = vector.load %arg11[%c0_37, %c0_38] : memref<128x128xbf16, #tpu.memory_space<vmem>>, vector<128x128xbf16>
      tpu.vector_store %arg11[%c0_37, %c0_38], %94 {strides = array<i32>} : memref<128x128xbf16, #tpu.memory_space<vmem>>, vector<128x128xbf16>,
    } else {
    }
    %c1_i32_32 = arith.constant 1 : i32
    %88 = arith.cmpi eq, %arg0, %c1_i32_32 : i32
    %c0_i32_33 = arith.constant 0 : i32
    %89 = arith.cmpi eq, %arg1, %c0_i32_33 : i32
    %90 = arith.andi %88, %89 : i1
    %91 = arith.extui %90 : i1 to i32
    %c0_i32_34 = arith.constant 0 : i32
    %92 = arith.cmpi ne, %91, %c0_i32_34 : i32
    scf.if %92 {
      %c0_35 = arith.constant 0 : index
      %c0_36 = arith.constant 0 : index
      %93 = vector.load %arg11[%c0_35, %c0_36] : memref<128x128xbf16, #tpu.memory_space<vmem>>, vector<128x128xbf16>
      %c0_37 = arith.constant 0 : index
      %c0_38 = arith.constant 0 : index
      %94 = vector.load %arg7[%c0_37, %c0_38] : memref<128x128xbf16, #tpu.memory_space<vmem>>, vector<128x128xbf16>
      %cst_39 = arith.constant dense<0.000000e+00> : vector<128x128xf32>
      %95 = tpu.matmul %93, %94, %cst_39 {dimension_numbers = #tpu.dot_dimension_numbers<[1], [0], [0], [1], [0, 0, 1, 1], [], []>} : vector<128x128xbf16>, vector<128x128xbf16>, vector<128x128xf32> -> vector<128x128xf32>
      %c0_40 = arith.constant 0 : index
      %c0_41 = arith.constant 0 : index
      %96 = vector.load %arg8[%c0_40, %c0_41] : memref<1x128xf32, #tpu.memory_space<vmem>>, vector<1x128xf32>
      %97 = vector.broadcast %96 : vector<1x128xf32> to vector<128x128xf32>
      %98 = arith.addf %95, %97 : vector<128x128xf32>
      %c0_42 = arith.constant 0 : index
      %c0_43 = arith.constant 0 : index
      %99 = vector.load %arg10[%c0_42, %c0_43] : memref<128x128xf32, #tpu.memory_space<vmem>>, vector<128x128xf32>
      tpu.vector_store %arg10[%c0_42, %c0_43], %98 {strides = array<i32>} : memref<128x128xf32, #tpu.memory_space<vmem>>, vector<128x128xf32>,
    } else {
    }
    return
  }
  func.func @transform_0(%arg0: i32, %arg1: i32) -> (i32, i32) {
    %c0_i32 = arith.constant 0 : i32
    %c0_i32_0 = arith.constant 0 : i32
    %c0_i32_1 = arith.constant 0 : i32
    return %c0_i32, %c0_i32_0 : i32, i32
  }
  func.func @transform_1(%arg0: i32, %arg1: i32) -> (i32, i32) {
    %c0_i32 = arith.constant 0 : i32
    %c0_i32_0 = arith.constant 0 : i32
    %c0_i32_1 = arith.constant 0 : i32
    return %c0_i32, %c0_i32_0 : i32, i32
  }
  func.func @transform_2(%arg0: i32, %arg1: i32) -> (i32, i32) {
    %c0_i32 = arith.constant 0 : i32
    %c0_i32_0 = arith.constant 0 : i32
    %c0_i32_1 = arith.constant 0 : i32
    return %c0_i32, %c0_i32_0 : i32, i32
  }
  func.func @transform_3(%arg0: i32, %arg1: i32) -> (i32, i32, i32) {
    %c0_i32 = arith.constant 0 : i32
    %c0_i32_0 = arith.constant 0 : i32
    %c0_i32_1 = arith.constant 0 : i32
    return %arg0, %c0_i32, %c0_i32_0 : i32, i32, i32
  }
  func.func @transform_4(%arg0: i32, %arg1: i32) -> (i32, i32, i32) {
    %c0_i32 = arith.constant 0 : i32
    %c0_i32_0 = arith.constant 0 : i32
    %c0_i32_1 = arith.constant 0 : i32
    return %arg0, %c0_i32, %c0_i32_0 : i32, i32, i32
  }
  func.func @transform_5(%arg0: i32, %arg1: i32) -> (i32, i32) {
    %c0_i32 = arith.constant 0 : i32
    %c0_i32_0 = arith.constant 0 : i32
    %c0_i32_1 = arith.constant 0 : i32
    return %c0_i32, %c0_i32_0 : i32, i32
  }
  func.func @transform_6(%arg0: i32, %arg1: i32) -> (i32, i32) {
    %c0_i32 = arith.constant 0 : i32
    %c0_i32_0 = arith.constant 0 : i32
    %c0_i32_1 = arith.constant 0 : i32
    return %c0_i32, %c0_i32_0 : i32, i32
  }
  func.func @transform_7(%arg0: i32, %arg1: i32) -> (i32, i32) {
    %c0_i32 = arith.constant 0 : i32
    %c0_i32_0 = arith.constant 0 : i32
    return %c0_i32, %arg1 : i32, i32
  }
  func.func @transform_8(%arg0: i32, %arg1: i32) -> (i32, i32) {
    %c0_i32 = arith.constant 0 : i32
    %c0_i32_0 = arith.constant 0 : i32
    %c0_i32_1 = arith.constant 0 : i32
    return %c0_i32, %c0_i32_0 : i32, i32
  }
}

</mosaic_0001>

<bundles_post_ra>
// kernel: tpu_custom_call.1
= control target key start
LH: loop header
LB: loop body
LE: loop exit
PB: predicated region body
PF: predicated region fallthrough
CT: control target
= control target key end

     0   :  { %s3585_s0 = inlined_call_operand.hbm [shape: bf16[128,128], index: 0, kind: input, shape index: {}]   ;;  %s3586_s1 = inlined_call_operand.hbm [shape: bf16[128,128], index: 1, kind: input, shape index: {}]   ;;  %s3587_s2 = inlined_call_operand.vmem [shape: f32[1,128], index: 2, kind: input, shape index: {}]   ;;  %s3588_s3 = inlined_call_operand.hbm [shape: bf16[2,128,128], index: 3, kind: input, shape index: {}]   ;;  %s3589_s4 = inlined_call_operand.vmem [shape: f32[2,1,128], index: 4, kind: input, shape index: {}]   ;;  %s3590_s5 = inlined_call_operand.hbm [shape: bf16[128,128], index: 5, kind: input, shape index: {}]   ;;  %s3591_s6 = inlined_call_operand.vmem [shape: f32[1,128], index: 6, kind: input, shape index: {}]   ;;  %s3592_s7 = inlined_call_operand.hbm [shape: bf16[128,128], index: 7, kind: input, shape index: {}]   ;;  %s3593_s8 = inlined_call_operand.hbm [shape: f32[128,128], index: 8, kind: output, shape index: {}]  }
   0x1   :  { %3596 = sst [smem:[#allocation20_spill]] %s3585_s0 }
   0x2   :  { %3597 = sst [smem:[#allocation21_spill]] %s3586_s1 }
   0x3   :  { %3598 = sst [smem:[#allocation22_spill]] %s3590_s5 }
   0x4   :  { %13 = vsyncpa [#allocation5], 0 }
   0x5   :  { %14 = vsyncpa [#allocation8], 0 }
   0x6   :  { %15 = vsyncpa [#allocation12], 0 }
   0x7   :  { %16 = vsyncpa [#allocation6], 0  ;;  %s2828_s27 = smov 0   ;;  %s2830_s28 = smov 0  }
   0x8   :  { %s2832_s29 = smov 0   ;;  %s2834_s30 = smov 0  }
   0x9   :  { %s2836_s9 = smov 0   ;;  %s2838_s10 = smov 0  }
   0xa LB: > { %s2857_s11 = sadd.s32 4294967295, %s2772_s10   ;;  %p117_p0 = scmp.ne.s32.totalorder %s2756_s28, %s2752_s27  ;;  %s2772_s10 = sphi %s2838_s10, %s22_s10   ;;  %s2768_s9 = sphi %s2836_s9, %s3612_s9   ;;  %s2764_s30 = sphi %s2834_s30, %s3611_s30   ;;  %s2760_s29 = sphi %s2832_s29, %s3610_s29   ;;  %s2756_s28 = sphi %s2830_s28, %s3609_s28   ;;  %s2752_s27 = sphi %s2828_s27, %s3608_s27  }
   0xb   : > { %p118_p1 = scmp.eq.s32.totalorder %s2857_s11, 0  ;;  %p1928_p2 = scmp.ge.s32.totalorder %s2772_s10, 1 }
   0xc   : > { %p243_p3 = scmp.lt.s32.totalorder %s2772_s10, 3  ;;  %s3600_s0 = sld [smem:[#allocation20_spill]] }
   0xd   : > { %p2865_p4 = por %p118_p1, %p117_p0  ;;  %s2774_s17 = smov [#allocation4]  }
   0xe   : > { %p2872_p5 = pnand %p1928_p2, %p243_p3  ;;  %s256_s18 = sshll.u32 %s2774_s17, 4  ;;  %s257_s18 = int_to_ptr.vmem [resolvable:$true] %s256_s18 }
   0xf   : > { %s3603_s1 = sld [smem:[#allocation21_spill]]  ;;  %s3594_s23 = smov 64  }
  0x10   : > { %p2436_p6 = pneg %p2872_p5  ;;  %s3595_s24 = smov 4  }
  0x11   : > { %s2777_s25 = smov [#allocation7]   ;;  %s3604_s5 = sld [smem:[#allocation22_spill]] }
  0x12   : > { %s254_s15 = sshll.u32 %s3600_s0, 4  ;;  %p2880_p7 = pnand %p2436_p6, %p118_p1  ;;  %s255_s15 = int_to_ptr.hbm [resolvable:$true] %s254_s15 }
  0x13   : > { %s270_s26 = sshll.u32 %s2777_s25, 4  ;;  %s2778_s20 = smov [#allocation10]   ;;  %s271_s26 = int_to_ptr.vmem [resolvable:$true] %s270_s26 }
  0x14   : > { %2439 = dma.hbm_to_vmem [thread:$0]  (!%p2880_p7), %s255_s15, 1024, %s257_s18, [#allocation5], %s3594_s23, %s3594_s23, %s3595_s24  }
  0x15   : > { %s268_s22 = sshll.u32 %s3603_s1, 4  ;;  %s304_s18 = sshll.u32 %s3592_s7, 4  ;;  %s269_s22 = int_to_ptr.hbm [resolvable:$true] %s268_s22  ;;  %s305_s18 = int_to_ptr.hbm [resolvable:$true] %s304_s18 }
  0x16   : > { %2442 = dma.hbm_to_vmem [thread:$0]  (!%p2880_p7), %s269_s22, 1024, %s271_s26, [#allocation8], %s3594_s23, %s3594_s23, %s3595_s24  }
  0x17   : > { %s285_s14 = sshll.u32 %s3604_s5, 4  ;;  %s287_s21 = sshll.u32 %s2778_s20, 4  ;;  %s286_s14 = int_to_ptr.hbm [resolvable:$true] %s285_s14  ;;  %s288_s21 = int_to_ptr.vmem [resolvable:$true] %s287_s21 }
  0x18   : > { %2445 = dma.hbm_to_vmem [thread:$0]  (!%p2880_p7), %s286_s14, 1024, %s288_s21, [#allocation8], %s3594_s23, %s3594_s23, %s3595_s24  }
  0x19   : > { %s2779_s25 = smov [#allocation11]   ;;  %s34_s22 = sadd.s32 1, %s2768_s9 }
  0x1a   : > { %s306_s27 = sshll.u32 %s2779_s25, 4  ;;  %p36_p8 = scmp.ge.s32.totalorder %s34_s22, 2  ;;  %s307_s27 = int_to_ptr.vmem [resolvable:$true] %s306_s27 }
  0x1b   : > { %2448 = dma.hbm_to_vmem [thread:$0]  (!%p2880_p7), %s305_s18, 1024, %s307_s27, [#allocation12], %s3594_s23, %s3594_s23, %s3595_s24  }
  0x1c   : > { %p111_p9 = scmp.ne.s32.totalorder %s2760_s29, %s2756_s28  ;;  %s104_s26 = sadd.s32 1, %s2760_s29 }
  0x1d   : > { %p112_p10 = scmp.eq.s32.totalorder %s2772_s10, 0  ;;  %s3614_s22 = smov (%p36_p8, %s34_s22), 0 }
  0x1e   : > { %p2457_p12 = scmp.lt.s32.totalorder %s2772_s10, 2  ;;  %s101_s19 = ssub.s32 %s2768_s9, %s3614_s22 }
  0x1f   : > { %p2920_p11 = por %p112_p10, %p111_p9  ;;  %s320_s14 = sand.u32 1, %s2772_s10  }
  0x20   : > { %p102_p13 = scmp.eq.s32.totalorder %s101_s19, 0  ;;  %s322_s15 = sand.u32 1, %s2760_s29  }
  0x21   : > { %s1934_s17 = sshll.u32 %s322_s15, 6  ;;  %s2197_s18 = sshll.u32 %s2768_s9, 6 }
  0x22   : > { %s2931_s20 = scalar_select %p102_p13, %s2760_s29, %s104_s26  }
  0x23   : > { %s329_s27 = scalar_lea.hbm %s3588_s3, %s2197_s18  ;;  %s324_s24 = scalar_lea.vmem [#allocation9], %s1934_s17 }
  0x24   : > { %s330_s23 = sshll.u32 %s329_s27, 4  ;;  %s332_s0 = sshll.u32 %s324_s24, 4  ;;  %s331_s23 = int_to_ptr.hbm [resolvable:$true] %s330_s23  ;;  %s333_s0 = int_to_ptr.vmem [resolvable:$true] %s332_s0 }
  0x25   : > { %p2450_p0 = pnand %p2457_p12, %p2920_p11  ;;  %s321_s1 = scalar_lea.sflag [#allocation5], %s320_s14 }
  0x26   : > { %s3606_s5 = smov 4   ;;  %s3607_s19 = smov 64  }
  0x27   : > { %2452 = dma.hbm_to_vmem [thread:$0]  (!%p2450_p0), %s331_s23, 1024, %s333_s0, %s321_s1, %s3607_s19, %s3607_s19, %s3606_s5  }
  0x28   : > { %350 = sbr.rel (%p2872_p5) target bundleno = 1799 (0x707), region = 52 }
  0x2d   : > { %2727 = dma.done.wait (%p118_p1), [#allocation5], 1024  }
  0x2e   : > { %2729 = vsyncadd (%p118_p1), [#allocation5], 4294966272 }
  0x2f   : > { %2731 = dma.done.wait (%p118_p1), [#allocation8], 1024  }
  0x30   : > { %2733 = vsyncadd (%p118_p1), [#allocation8], 4294966272  ;;  %s362_s24 = sand.u32 1, %s2857_s11   ;;  %s364_s0 = sand.u32 1, %s2756_s28  }
  0x31   : > { %s1940_s1 = sshll.u32 %s364_s0, 6  ;;  %s363_s5 = scalar_lea.sflag [#allocation5], %s362_s24 }
  0x32   : > { %s2955_s16 = scalar_lea.vmem [#allocation9], %s1940_s1 }
  0x33   : > { %2735 = dma.done.wait (%p2865_p4), %s363_s5, 1024  }
  0x34   : > { %2737 = vsyncadd (%p2865_p4), %s363_s5, 4294966272 }
  0x35   : > { %2739 = dma.done.wait (%p118_p1), [#allocation8], 1024  }
  0x36   : > { %2741 = vsyncadd (%p118_p1), [#allocation8], 4294966272 }
  0x37   : > { %2743 = dma.done.wait (%p118_p1), [#allocation12], 1024  }
  0x38   : > { %2745 = vsyncadd (%p118_p1), [#allocation12], 4294966272  ;;  %p408_p2 = scmp.lt.s32.totalorder %s2764_s30, 1  ;;  %p411_p3 = scmp.eq.s32.totalorder %s2764_s30, 0 }
  0x39   : > { %v2214_v0 = vld [vmem:[#allocation7 + $0x38] sm:$0xff] (%p411_p3)  ;;  %v2213_v1 = vld [vmem:[#allocation7 + $0x30] sm:$0xff] (%p411_p3)  ;;  %v2212_v2 = vld [vmem:[#allocation7 + $0x28] sm:$0xff] (%p411_p3) }
  0x3a   : > { %s2972_s23 = scalar_select %p408_p2, %s2764_s30, 1  ;;  %549 = vmatpush.bf16.msra.mxu0 (%p411_p3), %v2214_v0  ;;  %2350 = vmatpush.bf16.msra.mxu1 (%p411_p3), %v2214_v0  ;;  %v2211_v3 = vld [vmem:[#allocation7 + $0x20] sm:$0xff] (%p411_p3)  ;;  %v2210_v4 = vld [vmem:[#allocation7 + $0x18] sm:$0xff] (%p411_p3)  ;;  %v2209_v5 = vld [vmem:[#allocation7 + $0x10] sm:$0xff] (%p411_p3) }
  0x3b   : > { %416 = sbr.rel (!%p411_p3) target bundleno = 254 (0xfe), region = 76  ;;  %2351 = vmatpush.bf16.msra.mxu2 (%p411_p3), %v2214_v0  ;;  %2352 = vmatpush.bf16.msra.mxu3 (%p411_p3), %v2214_v0  ;;  %v2208_v6 = vld [vmem:[#allocation7 + $0x8] sm:$0xff] (%p411_p3)  ;;  %v2207_v7 = vld [vmem:[#allocation7] sm:$0xff] (%p411_p3)  ;;  %v2201_v9 = vld [vmem:[#allocation4 + $0x10] sm:$0xff] (%p411_p3) }
  0x3c   : > { %s410_s13 = scalar_lea.vmem %s3589_s4, %s2972_s23  ;;  %v2199_v8 = vld [vmem:[#allocation4] sm:$0xff] (%p411_p3)  ;;  %v2205_v11 = vld [vmem:[#allocation4 + $0x30] sm:$0xff] (%p411_p3)  ;;  %v2200_v12 = vld [vmem:[#allocation4 + $0x8] sm:$0xff] (%p411_p3) }
  0x3d   : > { %v2203_v10 = vld [vmem:[#allocation4 + $0x20] sm:$0xff] (%p411_p3)  ;;  %v2202_v13 = vld [vmem:[#allocation4 + $0x18] sm:$0xff] (%p411_p3)  ;;  %v2204_v14 = vld [vmem:[#allocation4 + $0x28] sm:$0xff] (%p411_p3) }
  0x3e   : > { %550 = vmatpush.bf16.msra.mxu0 (%p411_p3), %v2213_v1  ;;  %2353 = vmatpush.bf16.msra.mxu1 (%p411_p3), %v2213_v1  ;;  %v2206_v15 = vld [vmem:[#allocation4 + $0x38] sm:$0xff] (%p411_p3)  ;;  %v2521_v18 = vld [vmem:[%s3587_s2] ss:$0 sm:$0xff] (%p411_p3) }
  0x3f   : > { %2354 = vmatpush.bf16.msra.mxu2 (%p411_p3), %v2213_v1  ;;  %2355 = vmatpush.bf16.msra.mxu3 (%p411_p3), %v2213_v1 }
  0x42   : > { %551 = vmatpush.bf16.msra.mxu0 %v2212_v2  ;;  %2356 = vmatpush.bf16.msra.mxu1 %v2212_v2 }
  0x43   : > { %2357 = vmatpush.bf16.msra.mxu2 %v2212_v2  ;;  %2358 = vmatpush.bf16.msra.mxu3 %v2212_v2 }
  0x46   : > { %552 = vmatpush.bf16.msra.mxu0 %v2211_v3  ;;  %2359 = vmatpush.bf16.msra.mxu1 %v2211_v3 }
  0x47   : > { %2360 = vmatpush.bf16.msra.mxu2 %v2211_v3  ;;  %2361 = vmatpush.bf16.msra.mxu3 %v2211_v3 }
  0x4a   : > { %553 = vmatpush.bf16.msra.mxu0 %v2210_v4  ;;  %2362 = vmatpush.bf16.msra.mxu1 %v2210_v4 }
  0x4b   : > { %2363 = vmatpush.bf16.msra.mxu2 %v2210_v4  ;;  %2364 = vmatpush.bf16.msra.mxu3 %v2210_v4 }
  0x4e   : > { %554 = vmatpush.bf16.msra.mxu0 %v2209_v5  ;;  %2365 = vmatpush.bf16.msra.mxu1 %v2209_v5 }
  0x4f   : > { %2366 = vmatpush.bf16.msra.mxu2 %v2209_v5  ;;  %2367 = vmatpush.bf16.msra.mxu3 %v2209_v5 }
  0x52   : > { %555 = vmatpush.bf16.msra.mxu0 %v2208_v6  ;;  %2368 = vmatpush.bf16.msra.mxu1 %v2208_v6 }
  0x53   : > { %2369 = vmatpush.bf16.msra.mxu2 %v2208_v6  ;;  %2370 = vmatpush.bf16.msra.mxu3 %v2208_v6 }
  0x56   : > { %556 = vmatpush.bf16.msra.mxu0 %v2207_v7  ;;  %2371 = vmatpush.bf16.msra.mxu1 %v2207_v7 }
  0x57   : > { %2372 = vmatpush.bf16.msra.mxu2 %v2207_v7  ;;  %2373 = vmatpush.bf16.msra.mxu3 %v2207_v7 }
  0x59   : > { %557 = vmatmul.bf16.vlgmr.msra.gmra.mxu0 %v2199_v8  ;;  %567 = vmatmul.bf16.vlgmr.msra.gmra.mxu1 %v2201_v9 }
  0x5a   : > { %577 = vmatmul.bf16.vlgmr.msra.gmra.mxu2 %v2203_v10  ;;  %587 = vmatmul.bf16.vlgmr.msra.gmra.mxu3 %v2205_v11 }
  0x69   : > { %562 = vmatmul.bf16.gmra.mxu0 %v2200_v12  ;;  %572 = vmatmul.bf16.gmra.mxu1 %v2202_v13 }
  0x6a   : > { %582 = vmatmul.bf16.gmra.mxu2 %v2204_v14  ;;  %592 = vmatmul.bf16.gmra.mxu3 %v2206_v15 }
  0xd6   : > { %v558_v16 = vpop.f32.mrf.mxu0  ;;  %v568_v17 = vpop.f32.mrf.mxu1 }
  0xd7   : > { %v559_v19 = vadd.f32 %v2521_v18, %v558_v16  ;;  %v569_v20 = vadd.f32 %v2521_v18, %v568_v17 }
  0xd9   : > { %v598_v27 = vmax.f32 %v559_v19, 0.0  ;;  %v602_v28 = vmax.f32 %v569_v20, 0.0 }
  0xdd   : > { %v578_v21 = vpop.f32.mrf.mxu2  ;;  %v588_v22 = vpop.f32.mrf.mxu3 }
  0xde   : > { %v560_v23 = vpop.f32.mrf.mxu0  ;;  %v570_v24 = vpop.f32.mrf.mxu1  ;;  %v579_v33 = vadd.f32 %v2521_v18, %v578_v21  ;;  %v589_v34 = vadd.f32 %v2521_v18, %v588_v22 }
  0xdf   : > { %v561_v25 = vadd.f32 %v2521_v18, %v560_v23  ;;  %v571_v26 = vadd.f32 %v2521_v18, %v570_v24 }
  0xe0   : > { %v606_v41 = vmax.f32 %v579_v33, 0.0  ;;  %v610_v42 = vmax.f32 %v589_v34, 0.0 }
  0xe1   : > { %v599_v29 = vmax.f32 %v561_v25, 0.0  ;;  %v603_v30 = vmax.f32 %v571_v26, 0.0 }
  0xe3   : > { %v2259_v31 = vpack.c.bf16 %v599_v29, %v598_v27  ;;  %v2269_v32 = vpack.c.bf16 %v603_v30, %v602_v28 }
  0xe5   : > { %2260 = vst [vmem:[#allocation2 + $0x30] sm:$0xff] %v2259_v31   ;;  %v580_v35 = vpop.f32.mrf.mxu2  ;;  %v590_v36 = vpop.f32.mrf.mxu3 }
  0xe6   : > { %2337 = vst [vmem:[#allocation2 + $0x18] sm:$0xff] %v2269_v32   ;;  %v581_v37 = vadd.f32 %v2521_v18, %v580_v35  ;;  %v591_v38 = vadd.f32 %v2521_v18, %v590_v36  ;;  %v563_v39 = vpop.f32.mrf.mxu0  ;;  %v573_v40 = vpop.f32.mrf.mxu1 }
  0xe7   : > { %v564_v47 = vadd.f32 %v2521_v18, %v563_v39  ;;  %v574_v48 = vadd.f32 %v2521_v18, %v573_v40 }
  0xe8   : > { %v607_v43 = vmax.f32 %v581_v37, 0.0  ;;  %v611_v44 = vmax.f32 %v591_v38, 0.0 }
  0xe9   : > { %v600_v55 = vmax.f32 %v564_v47, 0.0  ;;  %v604_v56 = vmax.f32 %v574_v48, 0.0 }
  0xea   : > { %v2279_v45 = vpack.c.bf16 %v607_v43, %v606_v41  ;;  %v2289_v46 = vpack.c.bf16 %v611_v44, %v610_v42 }
  0xec   : > { %2339 = vst [vmem:[#allocation2 + $0x8] sm:$0xff] %v2279_v45  }
  0xed   : > { %2341 = vst [vmem:[#allocation2 + $0x28] sm:$0xff] %v2289_v46   ;;  %v583_v49 = vpop.f32.mrf.mxu2  ;;  %v593_v50 = vpop.f32.mrf.mxu3 }
  0xee   : > { %v565_v51 = vpop.f32.mrf.mxu0  ;;  %v575_v52 = vpop.f32.mrf.mxu1  ;;  %v584_v61 = vadd.f32 %v2521_v18, %v583_v49  ;;  %v594_v62 = vadd.f32 %v2521_v18, %v593_v50 }
  0xef   : > { %v566_v53 = vadd.f32 %v2521_v18, %v565_v51  ;;  %v576_v54 = vadd.f32 %v2521_v18, %v575_v52 }
  0xf0   : > { %v608_v3 = vmax.f32 %v584_v61, 0.0  ;;  %v612_v4 = vmax.f32 %v594_v62, 0.0 }
  0xf1   : > { %v601_v57 = vmax.f32 %v566_v53, 0.0  ;;  %v605_v58 = vmax.f32 %v576_v54, 0.0 }
  0xf3   : > { %v2264_v59 = vpack.c.bf16 %v601_v57, %v600_v55  ;;  %v2274_v60 = vpack.c.bf16 %v605_v58, %v604_v56 }
  0xf5   : > { %2336 = vst [vmem:[#allocation2] sm:$0xff] %v2264_v59   ;;  %v585_v63 = vpop.f32.mrf.mxu2  ;;  %v595_v0 = vpop.f32.mrf.mxu3 }
  0xf6   : > { %2338 = vst [vmem:[#allocation2 + $0x10] sm:$0xff] %v2274_v60   ;;  %v586_v1 = vadd.f32 %v2521_v18, %v585_v63  ;;  %v596_v2 = vadd.f32 %v2521_v18, %v595_v0 }
  0xf8   : > { %v609_v5 = vmax.f32 %v586_v1, 0.0  ;;  %v613_v6 = vmax.f32 %v596_v2, 0.0 }
  0xfa   : > { %v2284_v7 = vpack.c.bf16 %v609_v5, %v608_v3  ;;  %v2294_v8 = vpack.c.bf16 %v613_v6, %v612_v4 }
  0xfc   : > { %2340 = vst [vmem:[#allocation2 + $0x20] sm:$0xff] %v2284_v7  }
  0xfd   : > { %2342 = vst [vmem:[#allocation2 + $0x38] sm:$0xff] %v2294_v8  }
  0xfe PF: > { %v2230_v9 = vld [vmem:[%s2955_s16 + $0x38] sm:$0xff]  ;;  %v2229_v10 = vld [vmem:[%s2955_s16 + $0x30] sm:$0xff]  ;;  %v2228_v11 = vld [vmem:[%s2955_s16 + $0x28] sm:$0xff]  ;;  %v851_v25 = vlaneseq  ;;  %p1604_p1 = scmp.eq.s32.totalorder %s2764_s30, 1 }
  0xff   : > { %802 = vmatpush.bf16.msra.mxu0 %v2230_v9  ;;  %2374 = vmatpush.bf16.msra.mxu2 %v2230_v9  ;;  %v2227_v12 = vld [vmem:[%s2955_s16 + $0x20] sm:$0xff]  ;;  %v2226_v13 = vld [vmem:[%s2955_s16 + $0x18] sm:$0xff]  ;;  %v2225_v14 = vld [vmem:[%s2955_s16 + $0x10] sm:$0xff] }
 0x100   : > { %v2224_v15 = vld [vmem:[%s2955_s16 + $0x8] sm:$0xff]  ;;  %v2223_v16 = vld [vmem:[%s2955_s16] sm:$0xff]  ;;  %v2215_v17 = vld [vmem:[#allocation2 + $0x30] sm:$0xff]  ;;  %v852_v27 = vand.u32 127, %v851_v25 }
 0x101   : > { %v2219_v18 = vld [vmem:[#allocation2 + $0x8] sm:$0xff]  ;;  %v2216_v19 = vld [vmem:[#allocation2] sm:$0xff]  ;;  %v2217_v21 = vld [vmem:[#allocation2 + $0x18] sm:$0xff] }
 0x102   : > { %v2221_v22 = vld [vmem:[#allocation2 + $0x28] sm:$0xff]  ;;  %v2218_v23 = vld [vmem:[#allocation2 + $0x10] sm:$0xff]  ;;  %v2522_v28 = vld [vmem:[%s410_s13] ss:$0 sm:$0xff]  ;;  %vm853_vm0 = vcmp.lt.s32.totalorder %v852_v27, 32 }
 0x103   : > { %803 = vmatpush.bf16.msra.mxu0 %v2229_v10  ;;  %2375 = vmatpush.bf16.msra.mxu2 %v2229_v10  ;;  %v2220_v20 = vld [vmem:[#allocation2 + $0x20] sm:$0xff] }
 0x104   : > { %v2222_v24 = vld [vmem:[#allocation2 + $0x38] sm:$0xff] }
 0x107   : > { %804 = vmatpush.bf16.msra.mxu0 %v2228_v11  ;;  %2376 = vmatpush.bf16.msra.mxu2 %v2228_v11 }
 0x10b   : > { %805 = vmatpush.bf16.msra.mxu0 %v2227_v12  ;;  %2377 = vmatpush.bf16.msra.mxu2 %v2227_v12 }
 0x10f   : > { %806 = vmatpush.bf16.msra.mxu0 %v2226_v13  ;;  %2378 = vmatpush.bf16.msra.mxu2 %v2226_v13 }
 0x113   : > { %807 = vmatpush.bf16.msra.mxu0 %v2225_v14  ;;  %2379 = vmatpush.bf16.msra.mxu2 %v2225_v14 }
 0x117   : > { %808 = vmatpush.bf16.msra.mxu0 %v2224_v15  ;;  %2380 = vmatpush.bf16.msra.mxu2 %v2224_v15 }
 0x11b   : > { %809 = vmatpush.bf16.msra.mxu0 %v2223_v16  ;;  %2381 = vmatpush.bf16.msra.mxu2 %v2223_v16 }
 0x11e   : > { %810 = vmatmul.bf16.vlgmr.msra.gmra.mxu0 %v2215_v17  ;;  %830 = vmatmul.bf16.vlgmr.msra.gmra.mxu2 %v2219_v18 }
 0x12e   : > { %815 = vmatmul.bf16.gmra.mxu0 %v2216_v19  ;;  %835 = vmatmul.bf16.gmra.mxu2 %v2220_v20 }
 0x13e   : > { %820 = vmatmul.bf16.gmra.mxu0 %v2217_v21  ;;  %840 = vmatmul.bf16.gmra.mxu2 %v2221_v22 }
 0x14e   : > { %825 = vmatmul.bf16.gmra.mxu0 %v2218_v23  ;;  %845 = vmatmul.bf16.gmra.mxu2 %v2222_v24 }
 0x19b   : > { %v811_v26 = vpop.f32.mrf.mxu0 }
 0x19c   : > { %v812_v7 = vadd.f32 %v2522_v28, %v811_v26 }
 0x19e   : > { %v3052_v11 = vsel %vm853_vm0, %v812_v7, -inf }
 0x1a1   : > { %v831_v29 = vpop.f32.mrf.mxu2 }
 0x1a2   : > { %v832_v30 = vadd.f32 %v2522_v28, %v831_v29 }
 0x1a3   : > { %v813_v31 = vpop.f32.mrf.mxu0 }
 0x1a4   : > { %v2995_v32 = vsel %vm853_vm0, %v832_v30, -inf  ;;  %v814_v33 = vadd.f32 %v2522_v28, %v813_v31 }
 0x1a5   : > { %888 = vmax.xlane.f32.xlu0 %v2995_v32 }
 0x1a6   : > { %v2999_v34 = vsel %vm853_vm0, %v814_v33, -inf }
 0x1a9   : > { %v833_v35 = vpop.f32.mrf.mxu2 }
 0x1aa   : > { %v834_v36 = vadd.f32 %v2522_v28, %v833_v35 }
 0x1ab   : > { %v816_v37 = vpop.f32.mrf.mxu0 }
 0x1ac   : > { %v3002_v38 = vsel %vm853_vm0, %v834_v36, -inf  ;;  %v817_v39 = vadd.f32 %v2522_v28, %v816_v37 }
 0x1ad   : > { %890 = vmax.xlane.f32.xlu1 %v3002_v38 }
 0x1ae   : > { %v3006_v40 = vsel %vm853_vm0, %v817_v39, -inf }
 0x1b1   : > { %v836_v41 = vpop.f32.mrf.mxu2 }
 0x1b2   : > { %v837_v42 = vadd.f32 %v2522_v28, %v836_v41 }
 0x1b3   : > { %v818_v43 = vpop.f32.mrf.mxu0 }
 0x1b4   : > { %v3009_v44 = vsel %vm853_vm0, %v837_v42, -inf  ;;  %v819_v5 = vadd.f32 %v2522_v28, %v818_v43 }
 0x1b5   : > { %892 = vmax.xlane.f32.xlu2 %v3009_v44 }
 0x1b6   : > { %v3044_v9 = vsel %vm853_vm0, %v819_v5, -inf }
 0x1b9   : > { %v838_v45 = vpop.f32.mrf.mxu2 }
 0x1ba   : > { %v839_v46 = vadd.f32 %v2522_v28, %v838_v45 }
 0x1bb   : > { %v821_v47 = vpop.f32.mrf.mxu0 }
 0x1bc   : > { %v3013_v48 = vsel %vm853_vm0, %v839_v46, -inf  ;;  %v822_v59 = vadd.f32 %v2522_v28, %v821_v47 }
 0x1bd   : > { %894 = vmax.xlane.f32.xlu2 %v3013_v48 }
 0x1be   : > { %v3029_v0 = vsel %vm853_vm0, %v822_v59, -inf }
 0x1c1   : > { %v841_v49 = vpop.f32.mrf.mxu2 }
 0x1c2   : > { %v842_v50 = vadd.f32 %v2522_v28, %v841_v49 }
 0x1c3   : > { %v823_v51 = vpop.f32.mrf.mxu0 }
 0x1c4   : > { %v3017_v52 = vsel %vm853_vm0, %v842_v50, -inf  ;;  %v824_v61 = vadd.f32 %v2522_v28, %v823_v51 }
 0x1c5   : > { %896 = vmax.xlane.f32.xlu1 %v3017_v52 }
 0x1c6   : > { %v3037_v3 = vsel %vm853_vm0, %v824_v61, -inf }
 0x1c9   : > { %v843_v53 = vpop.f32.mrf.mxu2 }
 0x1ca   : > { %v844_v54 = vadd.f32 %v2522_v28, %v843_v53 }
 0x1cb   : > { %v826_v55 = vpop.f32.mrf.mxu0 }
 0x1cc   : > { %v3021_v56 = vsel %vm853_vm0, %v844_v54, -inf  ;;  %v827_v57 = vadd.f32 %v2522_v28, %v826_v55 }
 0x1cd   : > { %898 = vmax.xlane.f32.xlu1 %v3021_v56 }
 0x1ce   : > { %v3025_v58 = vsel %vm853_vm0, %v827_v57, -inf }
 0x1cf   : > { %884 = vmax.xlane.f32.xlu2 %v3025_v58 }
 0x1d1   : > { %v846_v60 = vpop.f32.mrf.mxu2 }
 0x1d2   : > { %v847_v62 = vadd.f32 %v2522_v28, %v846_v60 }
 0x1d3   : > { %v828_v63 = vpop.f32.mrf.mxu0 }
 0x1d4   : > { %v3032_v1 = vsel %vm853_vm0, %v847_v62, -inf  ;;  %v829_v2 = vadd.f32 %v2522_v28, %v828_v63 }
 0x1d5   : > { %900 = vmax.xlane.f32.xlu0 %v3032_v1  ;;  %880 = vmax.xlane.f32.xlu1 %v3029_v0 }
 0x1d6   : > { %v3040_v4 = vsel %vm853_vm0, %v829_v2, -inf }
 0x1d7   : > { %882 = vmax.xlane.f32.xlu2 %v3037_v3 }
 0x1d9   : > { %v848_v6 = vpop.f32.mrf.mxu2 }
 0x1da   : > { %v849_v8 = vadd.f32 %v2522_v28, %v848_v6 }
 0x1dc   : > { %v3047_v10 = vsel %vm853_vm0, %v849_v8, -inf }
 0x1dd   : > { %902 = vmax.xlane.f32.xlu0 %v3047_v10  ;;  %878 = vmax.xlane.f32.xlu1 %v3044_v9 }
 0x1df   : > { %872 = vmax.xlane.f32.xlu2 %v3052_v11 }
 0x1e5   : > { %886 = vmax.xlane.f32.xlu0 %v3040_v4 }
 0x1ed   : > { %876 = vmax.xlane.f32.xlu0 %v3006_v40 }
 0x1f5   : > { %874 = vmax.xlane.f32.xlu0 %v2999_v34 }
 0x218   : > { %v889_v12 = vpop.xlane.xlu0 %888 }
 0x219   : > { %vm912_vm1 = vcmp.ge.f32.partialorder %v2995_v32, %v889_v12 }
 0x21a   : > { %v3060_v13 = vsel %vm912_vm1, -inf, %v2995_v32 }
 0x21b   : > { %952 = vmax.xlane.f32.xlu1 %v3060_v13 }
 0x220   : > { %v891_v16 = vpop.xlane.xlu1 %890 }
 0x221   : > { %vm913_vm11 = vcmp.ge.f32.partialorder %v3002_v38, %v891_v16 }
 0x222   : > { %v3087_v36 = vsel %vm913_vm11, -inf, %v3002_v38 }
 0x228   : > { %v893_v14 = vpop.xlane.xlu2 %892 }
 0x229   : > { %vm914_vm2 = vcmp.ge.f32.partialorder %v3009_v44, %v893_v14 }
 0x22a   : > { %v930_v15 = vsel %vm914_vm2, -inf, %v3009_v44 }
 0x22b   : > { %956 = vmax.xlane.f32.xlu2 %v930_v15 }
 0x230   : > { %v895_v17 = vpop.xlane.xlu2 %894 }
 0x231   : > { %vm915_vm3 = vcmp.ge.f32.partialorder %v3013_v48, %v895_v17 }
 0x232   : > { %v931_v18 = vsel %vm915_vm3, -inf, %v3013_v48 }
 0x233   : > { %958 = vmax.xlane.f32.xlu0 %v931_v18 }
 0x238   : > { %v897_v19 = vpop.xlane.xlu1 %896 }
 0x239   : > { %vm916_vm4 = vcmp.ge.f32.partialorder %v3017_v52, %v897_v19 }
 0x23a   : > { %v932_v20 = vsel %vm916_vm4, -inf, %v3017_v52 }
 0x23b   : > { %960 = vmax.xlane.f32.xlu0 %v932_v20 }
 0x240   : > { %v899_v21 = vpop.xlane.xlu1 %898 }
 0x241   : > { %vm917_vm5 = vcmp.ge.f32.partialorder %v3021_v56, %v899_v21 }
 0x242   : > { %v933_v22 = vsel %vm917_vm5, -inf, %v3021_v56  ;;  %v885_v23 = vpop.xlane.xlu2 %884 }
 0x243   : > { %vm910_vm6 = vcmp.ge.f32.partialorder %v3025_v58, %v885_v23  ;;  %962 = vmax.xlane.f32.xlu1 %v933_v22 }
 0x244   : > { %v926_v24 = vsel %vm910_vm6, -inf, %v3025_v58 }
 0x245   : > { %948 = vmax.xlane.f32.xlu0 %v926_v24 }
 0x248   : > { %v901_v25 = vpop.xlane.xlu0 %900  ;;  %v881_v37 = vpop.xlane.xlu1 %880 }
 0x249   : > { %vm918_vm7 = vcmp.ge.f32.partialorder %v3032_v1, %v901_v25  ;;  %vm908_vm13 = vcmp.ge.f32.partialorder %v3029_v0, %v881_v37 }
 0x24a   : > { %v934_v26 = vsel %vm918_vm7, -inf, %v3032_v1  ;;  %v883_v27 = vpop.xlane.xlu2 %882  ;;  %v3094_v42 = vsel %vm908_vm13, -inf, %v3029_v0 }
 0x24b   : > { %vm909_vm8 = vcmp.ge.f32.partialorder %v3037_v3, %v883_v27  ;;  %964 = vmax.xlane.f32.xlu1 %v934_v26 }
 0x24c   : > { %v925_v28 = vsel %vm909_vm8, -inf, %v3037_v3 }
 0x24d   : > { %946 = vmax.xlane.f32.xlu0 %v925_v28 }
 0x250   : > { %v903_v29 = vpop.xlane.xlu0 %902  ;;  %v879_v45 = vpop.xlane.xlu1 %878 }
 0x251   : > { %vm919_vm9 = vcmp.ge.f32.partialorder %v3047_v10, %v903_v29  ;;  %vm907_vm15 = vcmp.ge.f32.partialorder %v3044_v9, %v879_v45 }
 0x252   : > { %v935_v30 = vsel %vm919_vm9, -inf, %v3047_v10  ;;  %v873_v31 = vpop.xlane.xlu2 %872  ;;  %v3104_v47 = vsel %vm907_vm15, -inf, %v3044_v9 }
 0x253   : > { %vm904_vm10 = vcmp.ge.f32.partialorder %v3052_v11, %v873_v31  ;;  %966 = vmax.xlane.f32.xlu2 %v935_v30 }
 0x254   : > { %v3081_v33 = vsel %vm904_vm10, -inf, %v3052_v11 }
 0x255   : > { %936 = vmax.xlane.f32.xlu0 %v3081_v33 }
 0x258   : > { %v887_v35 = vpop.xlane.xlu0 %886 }
 0x259   : > { %vm911_vm12 = vcmp.ge.f32.partialorder %v3040_v4, %v887_v35 }
 0x25a   : > { %v927_v39 = vsel %vm911_vm12, -inf, %v3040_v4 }
 0x25b   : > { %950 = vmax.xlane.f32.xlu1 %v927_v39  ;;  %954 = vmax.xlane.f32.xlu2 %v3087_v36 }
 0x260   : > { %v877_v41 = vpop.xlane.xlu0 %876 }
 0x261   : > { %vm906_vm14 = vcmp.ge.f32.partialorder %v3006_v40, %v877_v41 }
 0x262   : > { %v3097_v43 = vsel %vm906_vm14, -inf, %v3006_v40 }
 0x263   : > { %940 = vmax.xlane.f32.xlu1 %v3097_v43  ;;  %944 = vmax.xlane.f32.xlu2 %v3094_v42 }
 0x268   : > { %v875_v46 = vpop.xlane.xlu0 %874 }
 0x269   : > { %vm905_vm0 = vcmp.ge.f32.partialorder %v2999_v34, %v875_v46 }
 0x26a   : > { %v3107_v49 = vsel %vm905_vm0, -inf, %v2999_v34 }
 0x26b   : > { %938 = vmax.xlane.f32.xlu1 %v3107_v49  ;;  %942 = vmax.xlane.f32.xlu2 %v3104_v47 }
 0x28e   : > { %v953_v55 = vpop.xlane.xlu1 %952 }
 0x28f   : > { %vm976_vm8 = vcmp.ge.f32.partialorder %v3060_v13, %v953_v55 }
 0x290   : > { %v3134_v12 = vsel %vm976_vm8, -inf, %v3060_v13 }
 0x29e   : > { %v957_v50 = vpop.xlane.xlu2 %956 }
 0x29f   : > { %vm978_vm1 = vcmp.ge.f32.partialorder %v930_v15, %v957_v50 }
 0x2a0   : > { %v3111_v51 = vsel %vm978_vm1, -inf, %v930_v15 }
 0x2a1   : > { %1020 = vmax.xlane.f32.xlu0 %v3111_v51 }
 0x2a6   : > { %v959_v53 = vpop.xlane.xlu0 %958 }
 0x2a7   : > { %vm979_vm2 = vcmp.ge.f32.partialorder %v931_v18, %v959_v53 }
 0x2a8   : > { %v3114_v54 = vsel %vm979_vm2, -inf, %v931_v18 }
 0x2a9   : > { %1022 = vmax.xlane.f32.xlu1 %v3114_v54 }
 0x2ae   : > { %v961_v57 = vpop.xlane.xlu0 %960 }
 0x2af   : > { %vm980_vm3 = vcmp.ge.f32.partialorder %v932_v20, %v961_v57 }
 0x2b0   : > { %v3117_v59 = vsel %vm980_vm3, -inf, %v932_v20 }
 0x2b1   : > { %1024 = vmax.xlane.f32.xlu1 %v3117_v59 }
 0x2b6   : > { %v963_v60 = vpop.xlane.xlu1 %962 }
 0x2b7   : > { %vm981_vm4 = vcmp.ge.f32.partialorder %v933_v22, %v963_v60 }
 0x2b8   : > { %v3120_v61 = vsel %vm981_vm4, -inf, %v933_v22  ;;  %v949_v62 = vpop.xlane.xlu0 %948 }
 0x2b9   : > { %vm974_vm5 = vcmp.ge.f32.partialorder %v926_v24, %v949_v62  ;;  %1026 = vmax.xlane.f32.xlu2 %v3120_v61 }
 0x2ba   : > { %v3123_v63 = vsel %vm974_vm5, -inf, %v926_v24 }
 0x2bb   : > { %1012 = vmax.xlane.f32.xlu1 %v3123_v63 }
 0x2be   : > { %v965_v2 = vpop.xlane.xlu1 %964 }
 0x2bf   : > { %vm982_vm6 = vcmp.ge.f32.partialorder %v934_v26, %v965_v2 }
 0x2c0   : > { %v3126_v5 = vsel %vm982_vm6, -inf, %v934_v26  ;;  %v947_v6 = vpop.xlane.xlu0 %946 }
 0x2c1   : > { %vm973_vm7 = vcmp.ge.f32.partialorder %v925_v28, %v947_v6  ;;  %1028 = vmax.xlane.f32.xlu2 %v3126_v5 }
 0x2c2   : > { %v3129_v7 = vsel %vm973_vm7, -inf, %v925_v28 }
 0x2c3   : > { %1010 = vmax.xlane.f32.xlu1 %v3129_v7 }
 0x2c6   : > { %v967_v8 = vpop.xlane.xlu2 %966 }
 0x2c7   : > { %vm983_vm9 = vcmp.ge.f32.partialorder %v935_v30, %v967_v8 }
 0x2c8   : > { %v3136_v14 = vsel %vm983_vm9, -inf, %v935_v30  ;;  %v937_v15 = vpop.xlane.xlu0 %936 }
 0x2c9   : > { %vm968_vm10 = vcmp.ge.f32.partialorder %v3081_v33, %v937_v15  ;;  %1016 = vmax.xlane.f32.xlu2 %v3134_v12  ;;  %1030 = vmax.xlane.f32.xlu0 %v3136_v14 }
 0x2ca   : > { %v3142_v16 = vsel %vm968_vm10, -inf, %v3081_v33 }
 0x2cb   : > { %1000 = vmax.xlane.f32.xlu1 %v3142_v16 }
 0x2ce   : > { %v951_v17 = vpop.xlane.xlu1 %950  ;;  %v955_v18 = vpop.xlane.xlu2 %954 }
 0x2cf   : > { %vm975_vm11 = vcmp.ge.f32.partialorder %v927_v39, %v951_v17  ;;  %vm977_vm12 = vcmp.ge.f32.partialorder %v3087_v36, %v955_v18 }
 0x2d0   : > { %v3146_v13 = vsel %vm975_vm11, -inf, %v927_v39  ;;  %v3149_v19 = vsel %vm977_vm12, -inf, %v3087_v36 }
 0x2d1   : > { %1014 = vmax.xlane.f32.xlu2 %v3146_v13  ;;  %1018 = vmax.xlane.f32.xlu0 %v3149_v19 }
 0x2d6   : > { %v941_v20 = vpop.xlane.xlu1 %940  ;;  %v945_v21 = vpop.xlane.xlu2 %944 }
 0x2d7   : > { %vm970_vm13 = vcmp.ge.f32.partialorder %v3097_v43, %v941_v20  ;;  %vm972_vm14 = vcmp.ge.f32.partialorder %v3094_v42, %v945_v21 }
 0x2d8   : > { %v3156_v22 = vsel %vm970_vm13, -inf, %v3097_v43  ;;  %v3159_v23 = vsel %vm972_vm14, -inf, %v3094_v42 }
 0x2d9   : > { %1004 = vmax.xlane.f32.xlu2 %v3156_v22  ;;  %1008 = vmax.xlane.f32.xlu0 %v3159_v23 }
 0x2de   : > { %v939_v24 = vpop.xlane.xlu1 %938  ;;  %v943_v25 = vpop.xlane.xlu2 %942 }
 0x2df   : > { %vm969_vm15 = vcmp.ge.f32.partialorder %v3107_v49, %v939_v24  ;;  %vm971_vm0 = vcmp.ge.f32.partialorder %v3104_v47, %v943_v25 }
 0x2e0   : > { %v3166_v26 = vsel %vm969_vm15, -inf, %v3107_v49  ;;  %v3169_v27 = vsel %vm971_vm0, -inf, %v3104_v47 }
 0x2e1   : > { %1002 = vmax.xlane.f32.xlu2 %v3166_v26  ;;  %1006 = vmax.xlane.f32.xlu0 %v3169_v27 }
 0x314   : > { %v1021_v28 = vpop.xlane.xlu0 %1020 }
 0x315   : > { %vm1042_vm1 = vcmp.ge.f32.partialorder %v3111_v51, %v1021_v28 }
 0x316   : > { %v3175_v29 = vsel %vm1042_vm1, -inf, %v3111_v51 }
 0x317   : > { %1084 = vmax.xlane.f32.xlu1 %v3175_v29 }
 0x31c   : > { %v1023_v30 = vpop.xlane.xlu1 %1022 }
 0x31d   : > { %vm1043_vm2 = vcmp.ge.f32.partialorder %v3114_v54, %v1023_v30 }
 0x31e   : > { %v3180_v31 = vsel %vm1043_vm2, -inf, %v3114_v54 }
 0x31f   : > { %1086 = vmax.xlane.f32.xlu2 %v3180_v31 }
 0x324   : > { %v1025_v33 = vpop.xlane.xlu1 %1024 }
 0x325   : > { %vm1044_vm3 = vcmp.ge.f32.partialorder %v3117_v59, %v1025_v33 }
 0x326   : > { %v3185_v35 = vsel %vm1044_vm3, -inf, %v3117_v59 }
 0x327   : > { %1088 = vmax.xlane.f32.xlu2 %v3185_v35 }
 0x32c   : > { %v1027_v36 = vpop.xlane.xlu2 %1026 }
 0x32d   : > { %vm1045_vm4 = vcmp.ge.f32.partialorder %v3120_v61, %v1027_v36 }
 0x32e   : > { %v3190_v37 = vsel %vm1045_vm4, -inf, %v3120_v61  ;;  %v1013_v39 = vpop.xlane.xlu1 %1012 }
 0x32f   : > { %vm1038_vm5 = vcmp.ge.f32.partialorder %v3123_v63, %v1013_v39  ;;  %1090 = vmax.xlane.f32.xlu0 %v3190_v37 }
 0x330   : > { %v3195_v41 = vsel %vm1038_vm5, -inf, %v3123_v63 }
 0x331   : > { %1076 = vmax.xlane.f32.xlu2 %v3195_v41 }
 0x334   : > { %v1029_v42 = vpop.xlane.xlu2 %1028 }
 0x335   : > { %vm1046_vm6 = vcmp.ge.f32.partialorder %v3126_v5, %v1029_v42 }
 0x336   : > { %v3200_v43 = vsel %vm1046_vm6, -inf, %v3126_v5  ;;  %v1011_v45 = vpop.xlane.xlu1 %1010 }
 0x337   : > { %vm1037_vm7 = vcmp.ge.f32.partialorder %v3129_v7, %v1011_v45  ;;  %1092 = vmax.xlane.f32.xlu0 %v3200_v43 }
 0x338   : > { %v3205_v46 = vsel %vm1037_vm7, -inf, %v3129_v7 }
 0x339   : > { %1074 = vmax.xlane.f32.xlu2 %v3205_v46 }
 0x33c   : > { %v1031_v47 = vpop.xlane.xlu0 %1030  ;;  %v1017_v49 = vpop.xlane.xlu2 %1016 }
 0x33d   : > { %vm1047_vm8 = vcmp.ge.f32.partialorder %v3136_v14, %v1031_v47  ;;  %vm1040_vm9 = vcmp.ge.f32.partialorder %v3134_v12, %v1017_v49 }
 0x33e   : > { %v3211_v50 = vsel %vm1047_vm8, -inf, %v3136_v14  ;;  %v3214_v51 = vsel %vm1040_vm9, -inf, %v3134_v12  ;;  %v1001_v53 = vpop.xlane.xlu1 %1000 }
 0x33f   : > { %vm1032_vm10 = vcmp.ge.f32.partialorder %v3142_v16, %v1001_v53  ;;  %1094 = vmax.xlane.f32.xlu1 %v3211_v50  ;;  %1080 = vmax.xlane.f32.xlu0 %v3214_v51 }
 0x340   : > { %v3220_v54 = vsel %vm1032_vm10, -inf, %v3142_v16 }
 0x341   : > { %1064 = vmax.xlane.f32.xlu2 %v3220_v54 }
 0x344   : > { %v1019_v55 = vpop.xlane.xlu0 %1018  ;;  %v1015_v57 = vpop.xlane.xlu2 %1014 }
 0x345   : > { %vm1041_vm11 = vcmp.ge.f32.partialorder %v3149_v19, %v1019_v55  ;;  %vm1039_vm12 = vcmp.ge.f32.partialorder %v3146_v13, %v1015_v57 }
 0x346   : > { %v3226_v59 = vsel %vm1041_vm11, -inf, %v3149_v19  ;;  %v3229_v60 = vsel %vm1039_vm12, -inf, %v3146_v13 }
 0x347   : > { %1082 = vmax.xlane.f32.xlu1 %v3226_v59  ;;  %1078 = vmax.xlane.f32.xlu0 %v3229_v60 }
 0x34c   : > { %v1009_v61 = vpop.xlane.xlu0 %1008  ;;  %v1005_v62 = vpop.xlane.xlu2 %1004 }
 0x34d   : > { %vm1036_vm13 = vcmp.ge.f32.partialorder %v3159_v23, %v1009_v61  ;;  %vm1034_vm14 = vcmp.ge.f32.partialorder %v3156_v22, %v1005_v62 }
 0x34e   : > { %v3236_v63 = vsel %vm1036_vm13, -inf, %v3159_v23  ;;  %v3239_v2 = vsel %vm1034_vm14, -inf, %v3156_v22 }
 0x34f   : > { %1072 = vmax.xlane.f32.xlu1 %v3236_v63  ;;  %1068 = vmax.xlane.f32.xlu0 %v3239_v2 }
 0x354   : > { %v1007_v5 = vpop.xlane.xlu0 %1006  ;;  %v1003_v6 = vpop.xlane.xlu2 %1002 }
 0x355   : > { %vm1035_vm15 = vcmp.ge.f32.partialorder %v3169_v27, %v1007_v5  ;;  %vm1033_vm0 = vcmp.ge.f32.partialorder %v3166_v26, %v1003_v6 }
 0x356   : > { %v3246_v7 = vsel %vm1035_vm15, -inf, %v3169_v27  ;;  %v3249_v8 = vsel %vm1033_vm0, -inf, %v3166_v26 }
 0x357   : > { %1070 = vmax.xlane.f32.xlu1 %v3246_v7  ;;  %1066 = vmax.xlane.f32.xlu0 %v3249_v8 }
 0x38a   : > { %v1085_v12 = vpop.xlane.xlu1 %1084 }
 0x38b   : > { %vm1106_vm1 = vcmp.ge.f32.partialorder %v3175_v29, %v1085_v12 }
 0x38c   : > { %v3255_v14 = vsel %vm1106_vm1, -inf, %v3175_v29 }
 0x38d   : > { %1148 = vmax.xlane.f32.xlu2 %v3255_v14 }
 0x392   : > { %v1087_v15 = vpop.xlane.xlu2 %1086 }
 0x393   : > { %vm1107_vm2 = vcmp.ge.f32.partialorder %v3180_v31, %v1087_v15 }
 0x394   : > { %v3260_v16 = vsel %vm1107_vm2, -inf, %v3180_v31 }
 0x395   : > { %1150 = vmax.xlane.f32.xlu0 %v3260_v16 }
 0x39a   : > { %v1089_v17 = vpop.xlane.xlu2 %1088 }
 0x39b   : > { %vm1108_vm3 = vcmp.ge.f32.partialorder %v3185_v35, %v1089_v17 }
 0x39c   : > { %v3265_v18 = vsel %vm1108_vm3, -inf, %v3185_v35 }
 0x39d   : > { %1152 = vmax.xlane.f32.xlu0 %v3265_v18 }
 0x3a2   : > { %v1091_v13 = vpop.xlane.xlu0 %1090 }
 0x3a3   : > { %vm1109_vm4 = vcmp.ge.f32.partialorder %v3190_v37, %v1091_v13 }
 0x3a4   : > { %v3270_v19 = vsel %vm1109_vm4, -inf, %v3190_v37  ;;  %v1077_v20 = vpop.xlane.xlu2 %1076 }
 0x3a5   : > { %vm1102_vm5 = vcmp.ge.f32.partialorder %v3195_v41, %v1077_v20  ;;  %1154 = vmax.xlane.f32.xlu1 %v3270_v19 }
 0x3a6   : > { %v3275_v21 = vsel %vm1102_vm5, -inf, %v3195_v41 }
 0x3a7   : > { %1140 = vmax.xlane.f32.xlu0 %v3275_v21 }
 0x3aa   : > { %v1093_v22 = vpop.xlane.xlu0 %1092 }
 0x3ab   : > { %vm1110_vm6 = vcmp.ge.f32.partialorder %v3200_v43, %v1093_v22 }
 0x3ac   : > { %v3280_v23 = vsel %vm1110_vm6, -inf, %v3200_v43  ;;  %v1075_v24 = vpop.xlane.xlu2 %1074 }
 0x3ad   : > { %vm1101_vm7 = vcmp.ge.f32.partialorder %v3205_v46, %v1075_v24  ;;  %1156 = vmax.xlane.f32.xlu1 %v3280_v23 }
 0x3ae   : > { %v3285_v25 = vsel %vm1101_vm7, -inf, %v3205_v46 }
 0x3af   : > { %1138 = vmax.xlane.f32.xlu0 %v3285_v25 }
 0x3b2   : > { %v1095_v26 = vpop.xlane.xlu1 %1094  ;;  %v1081_v27 = vpop.xlane.xlu0 %1080 }
 0x3b3   : > { %vm1111_vm8 = vcmp.ge.f32.partialorder %v3211_v50, %v1095_v26  ;;  %vm1104_vm9 = vcmp.ge.f32.partialorder %v3214_v51, %v1081_v27 }
 0x3b4   : > { %v3291_v28 = vsel %vm1111_vm8, -inf, %v3211_v50  ;;  %v3294_v29 = vsel %vm1104_vm9, -inf, %v3214_v51  ;;  %v1065_v30 = vpop.xlane.xlu2 %1064 }
 0x3b5   : > { %vm1096_vm10 = vcmp.ge.f32.partialorder %v3220_v54, %v1065_v30  ;;  %1158 = vmax.xlane.f32.xlu2 %v3291_v28  ;;  %1144 = vmax.xlane.f32.xlu1 %v3294_v29 }
 0x3b6   : > { %v3300_v31 = vsel %vm1096_vm10, -inf, %v3220_v54 }
 0x3b7   : > { %1128 = vmax.xlane.f32.xlu0 %v3300_v31 }
 0x3ba   : > { %v1083_v33 = vpop.xlane.xlu1 %1082  ;;  %v1079_v35 = vpop.xlane.xlu0 %1078 }
 0x3bb   : > { %vm1105_vm11 = vcmp.ge.f32.partialorder %v3226_v59, %v1083_v33  ;;  %vm1103_vm12 = vcmp.ge.f32.partialorder %v3229_v60, %v1079_v35 }
 0x3bc   : > { %v3306_v36 = vsel %vm1105_vm11, -inf, %v3226_v59  ;;  %v3309_v37 = vsel %vm1103_vm12, -inf, %v3229_v60 }
 0x3bd   : > { %1146 = vmax.xlane.f32.xlu2 %v3306_v36  ;;  %1142 = vmax.xlane.f32.xlu1 %v3309_v37 }
 0x3c2   : > { %v1073_v39 = vpop.xlane.xlu1 %1072  ;;  %v1069_v41 = vpop.xlane.xlu0 %1068 }
 0x3c3   : > { %vm1100_vm13 = vcmp.ge.f32.partialorder %v3236_v63, %v1073_v39  ;;  %vm1098_vm14 = vcmp.ge.f32.partialorder %v3239_v2, %v1069_v41 }
 0x3c4   : > { %v3316_v42 = vsel %vm1100_vm13, -inf, %v3236_v63  ;;  %v3319_v43 = vsel %vm1098_vm14, -inf, %v3239_v2 }
 0x3c5   : > { %1136 = vmax.xlane.f32.xlu2 %v3316_v42  ;;  %1132 = vmax.xlane.f32.xlu1 %v3319_v43 }
 0x3ca   : > { %v1071_v45 = vpop.xlane.xlu1 %1070  ;;  %v1067_v46 = vpop.xlane.xlu0 %1066 }
 0x3cb   : > { %vm1099_vm15 = vcmp.ge.f32.partialorder %v3246_v7, %v1071_v45  ;;  %vm1097_vm0 = vcmp.ge.f32.partialorder %v3249_v8, %v1067_v46 }
 0x3cc   : > { %v3326_v47 = vsel %vm1099_vm15, -inf, %v3246_v7  ;;  %v3329_v49 = vsel %vm1097_vm0, -inf, %v3249_v8 }
 0x3cd   : > { %1134 = vmax.xlane.f32.xlu2 %v3326_v47  ;;  %1130 = vmax.xlane.f32.xlu1 %v3329_v49 }
 0x400   : > { %v1149_v50 = vpop.xlane.xlu2 %1148 }
 0x401   : > { %vm1170_vm1 = vcmp.ge.f32.partialorder %v3255_v14, %v1149_v50 }
 0x402   : > { %v3335_v51 = vsel %vm1170_vm1, -inf, %v3255_v14 }
 0x403   : > { %1212 = vmax.xlane.f32.xlu0 %v3335_v51 }
 0x408   : > { %v1151_v53 = vpop.xlane.xlu0 %1150 }
 0x409   : > { %vm1171_vm2 = vcmp.ge.f32.partialorder %v3260_v16, %v1151_v53 }
 0x40a   : > { %v3340_v54 = vsel %vm1171_vm2, -inf, %v3260_v16 }
 0x40b   : > { %1214 = vmax.xlane.f32.xlu1 %v3340_v54 }
 0x410   : > { %v1153_v55 = vpop.xlane.xlu0 %1152 }
 0x411   : > { %vm1172_vm3 = vcmp.ge.f32.partialorder %v3265_v18, %v1153_v55 }
 0x412   : > { %v3345_v57 = vsel %vm1172_vm3, -inf, %v3265_v18 }
 0x413   : > { %1216 = vmax.xlane.f32.xlu1 %v3345_v57 }
 0x418   : > { %v1155_v59 = vpop.xlane.xlu1 %1154 }
 0x419   : > { %vm1173_vm4 = vcmp.ge.f32.partialorder %v3270_v19, %v1155_v59 }
 0x41a   : > { %v3350_v60 = vsel %vm1173_vm4, -inf, %v3270_v19  ;;  %v1141_v61 = vpop.xlane.xlu0 %1140 }
 0x41b   : > { %vm1166_vm5 = vcmp.ge.f32.partialorder %v3275_v21, %v1141_v61  ;;  %1218 = vmax.xlane.f32.xlu2 %v3350_v60 }
 0x41c   : > { %v3355_v62 = vsel %vm1166_vm5, -inf, %v3275_v21 }
 0x41d   : > { %1204 = vmax.xlane.f32.xlu1 %v3355_v62 }
 0x420   : > { %v1157_v63 = vpop.xlane.xlu1 %1156 }
 0x421   : > { %vm1174_vm6 = vcmp.ge.f32.partialorder %v3280_v23, %v1157_v63 }
 0x422   : > { %v3360_v2 = vsel %vm1174_vm6, -inf, %v3280_v23  ;;  %v1139_v5 = vpop.xlane.xlu0 %1138 }
 0x423   : > { %vm1165_vm7 = vcmp.ge.f32.partialorder %v3285_v25, %v1139_v5  ;;  %1220 = vmax.xlane.f32.xlu2 %v3360_v2 }
 0x424   : > { %v3365_v6 = vsel %vm1165_vm7, -inf, %v3285_v25 }
 0x425   : > { %1202 = vmax.xlane.f32.xlu1 %v3365_v6 }
 0x428   : > { %v1145_v7 = vpop.xlane.xlu1 %1144  ;;  %v1159_v8 = vpop.xlane.xlu2 %1158 }
 0x429   : > { %vm1168_vm8 = vcmp.ge.f32.partialorder %v3294_v29, %v1145_v7  ;;  %vm1175_vm9 = vcmp.ge.f32.partialorder %v3291_v28, %v1159_v8 }
 0x42a   : > { %v3371_v12 = vsel %vm1168_vm8, -inf, %v3294_v29  ;;  %v3374_v14 = vsel %vm1175_vm9, -inf, %v3291_v28  ;;  %v1129_v15 = vpop.xlane.xlu0 %1128 }
 0x42b   : > { %vm1160_vm10 = vcmp.ge.f32.partialorder %v3300_v31, %v1129_v15  ;;  %1208 = vmax.xlane.f32.xlu2 %v3371_v12  ;;  %1222 = vmax.xlane.f32.xlu0 %v3374_v14 }
 0x42c   : > { %v3380_v16 = vsel %vm1160_vm10, -inf, %v3300_v31 }
 0x42d   : > { %1192 = vmax.xlane.f32.xlu1 %v3380_v16 }
 0x430   : > { %v1143_v17 = vpop.xlane.xlu1 %1142  ;;  %v1147_v18 = vpop.xlane.xlu2 %1146 }
 0x431   : > { %vm1167_vm11 = vcmp.ge.f32.partialorder %v3309_v37, %v1143_v17  ;;  %vm1169_vm12 = vcmp.ge.f32.partialorder %v3306_v36, %v1147_v18 }
 0x432   : > { %v3386_v13 = vsel %vm1167_vm11, -inf, %v3309_v37  ;;  %v3389_v19 = vsel %vm1169_vm12, -inf, %v3306_v36 }
 0x433   : > { %1206 = vmax.xlane.f32.xlu2 %v3386_v13  ;;  %1210 = vmax.xlane.f32.xlu0 %v3389_v19 }
 0x438   : > { %v1133_v20 = vpop.xlane.xlu1 %1132  ;;  %v1137_v21 = vpop.xlane.xlu2 %1136 }
 0x439   : > { %vm1162_vm13 = vcmp.ge.f32.partialorder %v3319_v43, %v1133_v20  ;;  %vm1164_vm14 = vcmp.ge.f32.partialorder %v3316_v42, %v1137_v21 }
 0x43a   : > { %v3396_v22 = vsel %vm1162_vm13, -inf, %v3319_v43  ;;  %v3399_v23 = vsel %vm1164_vm14, -inf, %v3316_v42 }
 0x43b   : > { %1196 = vmax.xlane.f32.xlu2 %v3396_v22  ;;  %1200 = vmax.xlane.f32.xlu0 %v3399_v23 }
 0x440   : > { %v1131_v24 = vpop.xlane.xlu1 %1130  ;;  %v1135_v25 = vpop.xlane.xlu2 %1134 }
 0x441   : > { %vm1161_vm15 = vcmp.ge.f32.partialorder %v3329_v49, %v1131_v24  ;;  %vm1163_vm0 = vcmp.ge.f32.partialorder %v3326_v47, %v1135_v25 }
 0x442   : > { %v3406_v26 = vsel %vm1161_vm15, -inf, %v3329_v49  ;;  %v3409_v27 = vsel %vm1163_vm0, -inf, %v3326_v47 }
 0x443   : > { %1194 = vmax.xlane.f32.xlu2 %v3406_v26  ;;  %1198 = vmax.xlane.f32.xlu0 %v3409_v27 }
 0x476   : > { %v1213_v28 = vpop.xlane.xlu0 %1212 }
 0x477   : > { %vm1234_vm1 = vcmp.ge.f32.partialorder %v3335_v51, %v1213_v28 }
 0x478   : > { %v3415_v29 = vsel %vm1234_vm1, -inf, %v3335_v51 }
 0x479   : > { %1276 = vmax.xlane.f32.xlu1 %v3415_v29 }
 0x47e   : > { %v1215_v30 = vpop.xlane.xlu1 %1214 }
 0x47f   : > { %vm1235_vm2 = vcmp.ge.f32.partialorder %v3340_v54, %v1215_v30 }
 0x480   : > { %v3420_v31 = vsel %vm1235_vm2, -inf, %v3340_v54 }
 0x481   : > { %1278 = vmax.xlane.f32.xlu2 %v3420_v31 }
 0x486   : > { %v1217_v33 = vpop.xlane.xlu1 %1216 }
 0x487   : > { %vm1236_vm3 = vcmp.ge.f32.partialorder %v3345_v57, %v1217_v33 }
 0x488   : > { %v3425_v35 = vsel %vm1236_vm3, -inf, %v3345_v57 }
 0x489   : > { %1280 = vmax.xlane.f32.xlu2 %v3425_v35 }
 0x48e   : > { %v1219_v36 = vpop.xlane.xlu2 %1218 }
 0x48f   : > { %vm1237_vm4 = vcmp.ge.f32.partialorder %v3350_v60, %v1219_v36 }
 0x490   : > { %v3430_v37 = vsel %vm1237_vm4, -inf, %v3350_v60  ;;  %v1205_v39 = vpop.xlane.xlu1 %1204 }
 0x491   : > { %vm1230_vm5 = vcmp.ge.f32.partialorder %v3355_v62, %v1205_v39  ;;  %1282 = vmax.xlane.f32.xlu0 %v3430_v37 }
 0x492   : > { %v3435_v41 = vsel %vm1230_vm5, -inf, %v3355_v62 }
 0x493   : > { %1268 = vmax.xlane.f32.xlu2 %v3435_v41 }
 0x496   : > { %v1221_v42 = vpop.xlane.xlu2 %1220 }
 0x497   : > { %vm1238_vm6 = vcmp.ge.f32.partialorder %v3360_v2, %v1221_v42 }
 0x498   : > { %v3440_v43 = vsel %vm1238_vm6, -inf, %v3360_v2  ;;  %v1203_v45 = vpop.xlane.xlu1 %1202 }
 0x499   : > { %vm1229_vm7 = vcmp.ge.f32.partialorder %v3365_v6, %v1203_v45  ;;  %1284 = vmax.xlane.f32.xlu0 %v3440_v43 }
 0x49a   : > { %v3445_v46 = vsel %vm1229_vm7, -inf, %v3365_v6 }
 0x49b   : > { %1266 = vmax.xlane.f32.xlu2 %v3445_v46 }
 0x49e   : > { %v1223_v47 = vpop.xlane.xlu0 %1222  ;;  %v1209_v49 = vpop.xlane.xlu2 %1208 }
 0x49f   : > { %vm1239_vm8 = vcmp.ge.f32.partialorder %v3374_v14, %v1223_v47  ;;  %vm1232_vm9 = vcmp.ge.f32.partialorder %v3371_v12, %v1209_v49 }
 0x4a0   : > { %v3451_v50 = vsel %vm1239_vm8, -inf, %v3374_v14  ;;  %v3454_v51 = vsel %vm1232_vm9, -inf, %v3371_v12  ;;  %v1193_v53 = vpop.xlane.xlu1 %1192 }
 0x4a1   : > { %vm1224_vm10 = vcmp.ge.f32.partialorder %v3380_v16, %v1193_v53  ;;  %1286 = vmax.xlane.f32.xlu1 %v3451_v50  ;;  %1272 = vmax.xlane.f32.xlu0 %v3454_v51 }
 0x4a2   : > { %v3460_v54 = vsel %vm1224_vm10, -inf, %v3380_v16 }
 0x4a3   : > { %1256 = vmax.xlane.f32.xlu2 %v3460_v54 }
 0x4a6   : > { %v1211_v55 = vpop.xlane.xlu0 %1210  ;;  %v1207_v57 = vpop.xlane.xlu2 %1206 }
 0x4a7   : > { %vm1233_vm11 = vcmp.ge.f32.partialorder %v3389_v19, %v1211_v55  ;;  %vm1231_vm12 = vcmp.ge.f32.partialorder %v3386_v13, %v1207_v57 }
 0x4a8   : > { %v3466_v59 = vsel %vm1233_vm11, -inf, %v3389_v19  ;;  %v3469_v60 = vsel %vm1231_vm12, -inf, %v3386_v13 }
 0x4a9   : > { %1274 = vmax.xlane.f32.xlu1 %v3466_v59  ;;  %1270 = vmax.xlane.f32.xlu0 %v3469_v60 }
 0x4ae   : > { %v1201_v61 = vpop.xlane.xlu0 %1200  ;;  %v1197_v62 = vpop.xlane.xlu2 %1196 }
 0x4af   : > { %vm1228_vm13 = vcmp.ge.f32.partialorder %v3399_v23, %v1201_v61  ;;  %vm1226_vm14 = vcmp.ge.f32.partialorder %v3396_v22, %v1197_v62  ;;  %v2108_v61 = vpack.c.bf16 %v3021_v56, %v3017_v52 }
 0x4b0   : > { %v3476_v63 = vsel %vm1228_vm13, -inf, %v3399_v23  ;;  %v3479_v2 = vsel %vm1226_vm14, -inf, %v3396_v22 }
 0x4b1   : > { %1264 = vmax.xlane.f32.xlu1 %v3476_v63  ;;  %1260 = vmax.xlane.f32.xlu0 %v3479_v2 }
 0x4b6   : > { %v1199_v5 = vpop.xlane.xlu0 %1198  ;;  %v1195_v6 = vpop.xlane.xlu2 %1194 }
 0x4b7   : > { %vm1227_vm15 = vcmp.ge.f32.partialorder %v3409_v27, %v1199_v5  ;;  %vm1225_vm0 = vcmp.ge.f32.partialorder %v3406_v26, %v1195_v6  ;;  %v2235_v6 = vld [vmem:[#allocation11 + $0x20] sm:$0xff] }
 0x4b8   : > { %v3486_v7 = vsel %vm1227_vm15, -inf, %v3409_v27  ;;  %v3489_v8 = vsel %vm1225_vm0, -inf, %v3406_v26 }
 0x4b9   : > { %1262 = vmax.xlane.f32.xlu1 %v3486_v7  ;;  %1258 = vmax.xlane.f32.xlu0 %v3489_v8 }
 0x4ec   : > { %v1277_v12 = vpop.xlane.xlu1 %1276 }
 0x4ed   : > { %vm1298_vm1 = vcmp.ge.f32.partialorder %v3415_v29, %v1277_v12  ;;  %v2234_v12 = vld [vmem:[#allocation11 + $0x18] sm:$0xff] }
 0x4ee   : > { %v1314_v14 = vsel %vm1298_vm1, -inf, %v3415_v29 }
 0x4ef   : > { %1340 = vmax.xlane.f32.xlu2 %v1314_v14  ;;  %v2238_v14 = vld [vmem:[#allocation11 + $0x38] sm:$0xff] }
 0x4f4   : > { %v1279_v15 = vpop.xlane.xlu2 %1278 }
 0x4f5   : > { %vm1299_vm2 = vcmp.ge.f32.partialorder %v3420_v31, %v1279_v15 }
 0x4f6   : > { %v1315_v16 = vsel %vm1299_vm2, -inf, %v3420_v31 }
 0x4f7   : > { %1342 = vmax.xlane.f32.xlu0 %v1315_v16 }
 0x4fc   : > { %v1281_v17 = vpop.xlane.xlu2 %1280 }
 0x4fd   : > { %vm1300_vm3 = vcmp.ge.f32.partialorder %v3425_v35, %v1281_v17 }
 0x4fe   : > { %v1316_v18 = vsel %vm1300_vm3, -inf, %v3425_v35 }
 0x4ff   : > { %1344 = vmax.xlane.f32.xlu0 %v1316_v18 }
 0x504   : > { %v1283_v13 = vpop.xlane.xlu0 %1282 }
 0x505   : > { %vm1301_vm4 = vcmp.ge.f32.partialorder %v3430_v37, %v1283_v13 }
 0x506   : > { %v1269_v19 = vpop.xlane.xlu2 %1268  ;;  %v1317_v20 = vsel %vm1301_vm4, -inf, %v3430_v37 }
 0x507   : > { %vm1294_vm5 = vcmp.ge.f32.partialorder %v3435_v41, %v1269_v19  ;;  %1346 = vmax.xlane.f32.xlu1 %v1317_v20 }
 0x508   : > { %v1310_v21 = vsel %vm1294_vm5, -inf, %v3435_v41 }
 0x509   : > { %1332 = vmax.xlane.f32.xlu0 %v1310_v21 }
 0x50c   : > { %v1285_v22 = vpop.xlane.xlu0 %1284 }
 0x50d   : > { %vm1302_vm6 = vcmp.ge.f32.partialorder %v3440_v43, %v1285_v22 }
 0x50e   : > { %v1267_v23 = vpop.xlane.xlu2 %1266  ;;  %v1318_v24 = vsel %vm1302_vm6, -inf, %v3440_v43 }
 0x50f   : > { %vm1293_vm7 = vcmp.ge.f32.partialorder %v3445_v46, %v1267_v23  ;;  %1348 = vmax.xlane.f32.xlu1 %v1318_v24 }
 0x510   : > { %v1309_v25 = vsel %vm1293_vm7, -inf, %v3445_v46 }
 0x511   : > { %1330 = vmax.xlane.f32.xlu0 %v1309_v25 }
 0x514   : > { %v1287_v26 = vpop.xlane.xlu1 %1286  ;;  %v1273_v27 = vpop.xlane.xlu0 %1272 }
 0x515   : > { %vm1303_vm8 = vcmp.ge.f32.partialorder %v3451_v50, %v1287_v26  ;;  %vm1296_vm9 = vcmp.ge.f32.partialorder %v3454_v51, %v1273_v27 }
 0x516   : > { %v1257_v28 = vpop.xlane.xlu2 %1256  ;;  %v1319_v29 = vsel %vm1303_vm8, -inf, %v3451_v50  ;;  %v1312_v30 = vsel %vm1296_vm9, -inf, %v3454_v51 }
 0x517   : > { %vm1288_vm10 = vcmp.ge.f32.partialorder %v3460_v54, %v1257_v28  ;;  %1350 = vmax.xlane.f32.xlu2 %v1319_v29  ;;  %1336 = vmax.xlane.f32.xlu1 %v1312_v30 }
 0x518   : > { %v1304_v31 = vsel %vm1288_vm10, -inf, %v3460_v54 }
 0x519   : > { %1320 = vmax.xlane.f32.xlu0 %v1304_v31 }
 0x51c   : > { %v1275_v33 = vpop.xlane.xlu1 %1274  ;;  %v1271_v35 = vpop.xlane.xlu0 %1270 }
 0x51d   : > { %vm1297_vm11 = vcmp.ge.f32.partialorder %v3466_v59, %v1275_v33  ;;  %vm1295_vm12 = vcmp.ge.f32.partialorder %v3469_v60, %v1271_v35 }
 0x51e   : > { %v1313_v36 = vsel %vm1297_vm11, -inf, %v3466_v59  ;;  %v1311_v37 = vsel %vm1295_vm12, -inf, %v3469_v60  ;;  %v2105_v60 = vpack.c.bf16 %v3047_v10, %v3032_v1 }
 0x51f   : > { %1338 = vmax.xlane.f32.xlu2 %v1313_v36  ;;  %1334 = vmax.xlane.f32.xlu1 %v1311_v37 }
 0x524   : > { %v1265_v39 = vpop.xlane.xlu1 %1264  ;;  %v1261_v41 = vpop.xlane.xlu0 %1260 }
 0x525   : > { %vm1292_vm13 = vcmp.ge.f32.partialorder %v3476_v63, %v1265_v39  ;;  %vm1290_vm14 = vcmp.ge.f32.partialorder %v3479_v2, %v1261_v41  ;;  %v2255_v39 = vld [vmem:[#allocation10 + $0x38] sm:$0xff] (%p1604_p1)  ;;  %v2254_v41 = vld [vmem:[#allocation10 + $0x30] sm:$0xff] (%p1604_p1) }
 0x526   : > { %v1308_v42 = vsel %vm1292_vm13, -inf, %v3476_v63  ;;  %v1306_v43 = vsel %vm1290_vm14, -inf, %v3479_v2  ;;  %1741 = vmatpush.bf16.msra.mxu0 (%p1604_p1), %v2255_v39  ;;  %2391 = vmatpush.bf16.msra.mxu2 (%p1604_p1), %v2255_v39 }
 0x527   : > { %1328 = vmax.xlane.f32.xlu2 %v1308_v42  ;;  %1324 = vmax.xlane.f32.xlu1 %v1306_v43  ;;  %v2253_v42 = vld [vmem:[#allocation10 + $0x28] sm:$0xff] (%p1604_p1)  ;;  %v2252_v43 = vld [vmem:[#allocation10 + $0x20] sm:$0xff] (%p1604_p1) }
 0x52a   : > { %1742 = vmatpush.bf16.msra.mxu0 (%p1604_p1), %v2254_v41  ;;  %2394 = vmatpush.bf16.msra.mxu2 (%p1604_p1), %v2254_v41 }
 0x52c   : > { %v1263_v45 = vpop.xlane.xlu1 %1262  ;;  %v1259_v46 = vpop.xlane.xlu0 %1258 }
 0x52d   : > { %vm1291_vm15 = vcmp.ge.f32.partialorder %v3486_v7, %v1263_v45  ;;  %vm1289_vm0 = vcmp.ge.f32.partialorder %v3489_v8, %v1259_v46  ;;  %v2251_v45 = vld [vmem:[#allocation10 + $0x18] sm:$0xff] (%p1604_p1)  ;;  %v2250_v46 = vld [vmem:[#allocation10 + $0x10] sm:$0xff] (%p1604_p1) }
 0x52e   : > { %v1307_v47 = vsel %vm1291_vm15, -inf, %v3486_v7  ;;  %v1305_v49 = vsel %vm1289_vm0, -inf, %v3489_v8  ;;  %v2233_v7 = vld [vmem:[#allocation11 + $0x10] sm:$0xff]  ;;  %1743 = vmatpush.bf16.msra.mxu0 (%p1604_p1), %v2253_v42  ;;  %2397 = vmatpush.bf16.msra.mxu2 (%p1604_p1), %v2253_v42 }
 0x52f   : > { %1326 = vmax.xlane.f32.xlu2 %v1307_v47  ;;  %1322 = vmax.xlane.f32.xlu1 %v1305_v49  ;;  %v2237_v8 = vld [vmem:[#allocation11 + $0x30] sm:$0xff]  ;;  %v2249_v47 = vld [vmem:[#allocation10 + $0x8] sm:$0xff] (%p1604_p1)  ;;  %v2248_v49 = vld [vmem:[#allocation10] sm:$0xff] (%p1604_p1) }
 0x532   : > { %1744 = vmatpush.bf16.msra.mxu0 (%p1604_p1), %v2252_v43  ;;  %2400 = vmatpush.bf16.msra.mxu2 (%p1604_p1), %v2252_v43 }
 0x536   : > { %1745 = vmatpush.bf16.msra.mxu0 (%p1604_p1), %v2251_v45  ;;  %2403 = vmatpush.bf16.msra.mxu2 (%p1604_p1), %v2251_v45 }
 0x53a   : > { %1746 = vmatpush.bf16.msra.mxu0 (%p1604_p1), %v2250_v46  ;;  %2406 = vmatpush.bf16.msra.mxu2 (%p1604_p1), %v2250_v46 }
 0x53e   : > { %1747 = vmatpush.bf16.msra.mxu0 (%p1604_p1), %v2249_v47  ;;  %2409 = vmatpush.bf16.msra.mxu2 (%p1604_p1), %v2249_v47 }
 0x542   : > { %1748 = vmatpush.bf16.msra.mxu0 (%p1604_p1), %v2248_v49  ;;  %2412 = vmatpush.bf16.msra.mxu2 (%p1604_p1), %v2248_v49 }
 0x562   : > { %v1341_v53 = vpop.xlane.xlu2 %1340 }
 0x563   : > { %vm1362_vm8 = vcmp.ge.f32.partialorder %v3009_v44, %v1341_v53 }
 0x56a   : > { %v1343_v51 = vpop.xlane.xlu0 %1342 }
 0x56b   : > { %vm1363_vm7 = vcmp.ge.f32.partialorder %v3013_v48, %v1343_v51 }
 0x56c   : > { %vm2110_vm9 = vmpackc.low %vm1363_vm7, %vm1362_vm8 }
 0x572   : > { %v1345_v55 = vpop.xlane.xlu0 %1344 }
 0x573   : > { %vm1364_vm5 = vcmp.ge.f32.partialorder %v3017_v52, %v1345_v55  ;;  %v2114_v52 = vpack.c.bf16 %v3002_v38, %v2995_v32 }
 0x57a   : > { %v1347_v50 = vpop.xlane.xlu1 %1346 }
 0x57b   : > { %vm1365_vm4 = vcmp.ge.f32.partialorder %v3021_v56, %v1347_v50 }
 0x57c   : > { %vm2107_vm6 = vmpackc.low %vm1365_vm4, %vm1364_vm5  ;;  %v1333_v62 = vpop.xlane.xlu0 %1332 }
 0x57d   : > { %vm1358_vm14 = vcmp.ge.f32.partialorder %v3025_v58, %v1333_v62 }
 0x582   : > { %v1349_v54 = vpop.xlane.xlu1 %1348 }
 0x583   : > { %vm1366_vm1 = vcmp.ge.f32.partialorder %v3032_v1, %v1349_v54  ;;  %v2111_v1 = vpack.c.bf16 %v3013_v48, %v3009_v44  ;;  %v2117_v48 = vpack.c.bf16 %v3040_v4, %v3025_v58  ;;  %v2123_v58 = vpack.c.bf16 %v3044_v9, %v3006_v40 }
 0x584   : > { %v1331_v44 = vpop.xlane.xlu0 %1330 }
 0x58a   : > { %v1337_v57 = vpop.xlane.xlu1 %1336  ;;  %v1351_v59 = vpop.xlane.xlu2 %1350 }
 0x58b   : > { %vm1367_vm2 = vcmp.ge.f32.partialorder %v3047_v10, %v1351_v59  ;;  %vm1360_vm11 = vcmp.ge.f32.partialorder %v2995_v32, %v1337_v57  ;;  %v2120_v32 = vpack.c.bf16 %v3037_v3, %v3029_v0 }
 0x58c   : > { %vm2104_vm3 = vmpackc.low %vm1367_vm2, %vm1366_vm1  ;;  %vm1357_vm1 = vcmp.ge.f32.partialorder %v3037_v3, %v1331_v44  ;;  %v2231_v3 = vld [vmem:[#allocation11] sm:$0xff] }
 0x58d   : > { %2106 = vmatpush.bf16.msk.msra.mxu1 %vm2104_vm3, %v2105_v60  ;;  %2382 = vmatpush.bf16.msk.msra.mxu3 %vm2104_vm3, %v2105_v60 }
 0x591   : > { %2109 = vmatpush.bf16.msk.msra.mxu1 %vm2107_vm6, %v2108_v61  ;;  %2383 = vmatpush.bf16.msk.msra.mxu3 %vm2107_vm6, %v2108_v61  ;;  %v2523_v61 = vld [vmem:[%s3591_s6] ss:$0 sm:$0xff] (%p1604_p1) }
 0x592   : > { %v1335_v63 = vpop.xlane.xlu1 %1334  ;;  %v1339_v2 = vpop.xlane.xlu2 %1338 }
 0x593   : > { %vm1361_vm10 = vcmp.ge.f32.partialorder %v3002_v38, %v1339_v2  ;;  %vm1359_vm13 = vcmp.ge.f32.partialorder %v3040_v4, %v1335_v63  ;;  %v1321_v4 = vpop.xlane.xlu0 %1320 }
 0x594   : > { %vm2113_vm12 = vmpackc.low %vm1361_vm10, %vm1360_vm11  ;;  %vm1352_vm7 = vcmp.ge.f32.partialorder %v3052_v11, %v1321_v4 }
 0x595   : > { %2112 = vmatpush.bf16.msk.msra.mxu1 %vm2110_vm9, %v2111_v1  ;;  %2384 = vmatpush.bf16.msk.msra.mxu3 %vm2110_vm9, %v2111_v1  ;;  %vm2116_vm15 = vmpackc.low %vm1359_vm13, %vm1358_vm14 }
 0x599   : > { %2115 = vmatpush.bf16.msk.msra.mxu1 %vm2113_vm12, %v2114_v52  ;;  %2385 = vmatpush.bf16.msk.msra.mxu3 %vm2113_vm12, %v2114_v52 }
 0x59a   : > { %v1325_v56 = vpop.xlane.xlu1 %1324  ;;  %v1329_v10 = vpop.xlane.xlu2 %1328 }
 0x59b   : > { %vm1356_vm0 = vcmp.ge.f32.partialorder %v3029_v0, %v1329_v10  ;;  %vm1354_vm4 = vcmp.ge.f32.partialorder %v3006_v40, %v1325_v56  ;;  %v2126_v0 = vpack.c.bf16 %v2999_v34, %v3052_v11  ;;  %v2232_v40 = vld [vmem:[#allocation11 + $0x8] sm:$0xff] }
 0x59c   : > { %vm2119_vm2 = vmpackc.low %vm1357_vm1, %vm1356_vm0 }
 0x59d   : > { %2118 = vmatpush.bf16.msk.msra.mxu1 %vm2116_vm15, %v2117_v48  ;;  %2386 = vmatpush.bf16.msk.msra.mxu3 %vm2116_vm15, %v2117_v48 }
 0x5a1   : > { %2121 = vmatpush.bf16.msk.msra.mxu1 %vm2119_vm2, %v2120_v32  ;;  %2387 = vmatpush.bf16.msk.msra.mxu3 %vm2119_vm2, %v2120_v32 }
 0x5a2   : > { %v1327_v38 = vpop.xlane.xlu2 %1326  ;;  %v1323_v5 = vpop.xlane.xlu1 %1322 }
 0x5a3   : > { %vm1355_vm3 = vcmp.ge.f32.partialorder %v3044_v9, %v1327_v38  ;;  %vm1353_vm6 = vcmp.ge.f32.partialorder %v2999_v34, %v1323_v5  ;;  %v2236_v9 = vld [vmem:[#allocation11 + $0x28] sm:$0xff] }
 0x5a4   : > { %vm2122_vm5 = vmpackc.low %vm1355_vm3, %vm1354_vm4 }
 0x5a5   : > { %2124 = vmatpush.bf16.msk.msra.mxu1 %vm2122_vm5, %v2123_v58  ;;  %2388 = vmatpush.bf16.msk.msra.mxu3 %vm2122_vm5, %v2123_v58  ;;  %vm2125_vm8 = vmpackc.low %vm1353_vm6, %vm1352_vm7 }
 0x5a9   : > { %2127 = vmatpush.bf16.msk.msra.mxu1 %vm2125_vm8, %v2126_v0  ;;  %2389 = vmatpush.bf16.msk.msra.mxu3 %vm2125_vm8, %v2126_v0 }
 0x5ac   : > { %1480 = vmatmul.bf16.vlgmr.msra.gmra.mxu1 %v2231_v3  ;;  %1500 = vmatmul.bf16.vlgmr.msra.gmra.mxu3 %v2235_v6 }
 0x5ad   : > { %2390 = vmatpush.bf16.msra.mxu1 (%p1604_p1), %v2255_v39  ;;  %2392 = vmatpush.bf16.msra.mxu3 (%p1604_p1), %v2255_v39 }
 0x5b1   : > { %2393 = vmatpush.bf16.msra.mxu1 (%p1604_p1), %v2254_v41  ;;  %2395 = vmatpush.bf16.msra.mxu3 (%p1604_p1), %v2254_v41 }
 0x5b5   : > { %2396 = vmatpush.bf16.msra.mxu1 (%p1604_p1), %v2253_v42  ;;  %2398 = vmatpush.bf16.msra.mxu3 (%p1604_p1), %v2253_v42 }
 0x5b9   : > { %2399 = vmatpush.bf16.msra.mxu1 (%p1604_p1), %v2252_v43  ;;  %2401 = vmatpush.bf16.msra.mxu3 (%p1604_p1), %v2252_v43 }
 0x5bc   : > { %1485 = vmatmul.bf16.gmra.mxu1 %v2232_v40  ;;  %1505 = vmatmul.bf16.gmra.mxu3 %v2236_v9 }
 0x5bd   : > { %2402 = vmatpush.bf16.msra.mxu1 (%p1604_p1), %v2251_v45  ;;  %2404 = vmatpush.bf16.msra.mxu3 (%p1604_p1), %v2251_v45 }
 0x5c1   : > { %2405 = vmatpush.bf16.msra.mxu1 (%p1604_p1), %v2250_v46  ;;  %2407 = vmatpush.bf16.msra.mxu3 (%p1604_p1), %v2250_v46 }
 0x5c5   : > { %2408 = vmatpush.bf16.msra.mxu1 (%p1604_p1), %v2249_v47  ;;  %2410 = vmatpush.bf16.msra.mxu3 (%p1604_p1), %v2249_v47 }
 0x5c9   : > { %2411 = vmatpush.bf16.msra.mxu1 (%p1604_p1), %v2248_v49  ;;  %2413 = vmatpush.bf16.msra.mxu3 (%p1604_p1), %v2248_v49 }
 0x5cc   : > { %1490 = vmatmul.bf16.gmra.mxu1 %v2233_v7  ;;  %1510 = vmatmul.bf16.gmra.mxu3 %v2237_v8 }
 0x5dc   : > { %1495 = vmatmul.bf16.gmra.mxu1 %v2234_v12  ;;  %1515 = vmatmul.bf16.gmra.mxu3 %v2238_v14 }
 0x629   : > { %v1481_v34 = vpop.f32.mrf.mxu1 }
 0x62f   : > { %v1501_v11 = vpop.f32.mrf.mxu3 }
 0x631   : > { %v1483_v15 = vpop.f32.mrf.mxu1 }
 0x632   : > { %v2299_v16 = vpack.c.bf16 %v1483_v15, %v1481_v34 }
 0x634   : > { %2300 = vst [vmem:[#allocation2 + $0x30] sm:$0xff] %v2299_v16  }
 0x637   : > { %v1503_v17 = vpop.f32.mrf.mxu3 }
 0x638   : > { %v2319_v18 = vpack.c.bf16 %v1503_v17, %v1501_v11 }
 0x639   : > { %v1486_v13 = vpop.f32.mrf.mxu1 }
 0x63a   : > { %2346 = vst [vmem:[#allocation2 + $0x8] sm:$0xff] %v2319_v18  }
 0x63b   : > { %v2240_v50 = vld [vmem:[#allocation2 + $0x30] sm:$0xff] (%p1604_p1) }
 0x63c   : > { %1749 = vmatmul.bf16.vlgmr.msra.gmra.mxu0 (%p1604_p1), %v2240_v50 }
 0x63f   : > { %v1506_v19 = vpop.f32.mrf.mxu3 }
 0x641   : > { %v1488_v20 = vpop.f32.mrf.mxu1  ;;  %v2244_v53 = vld [vmem:[#allocation2 + $0x8] sm:$0xff] (%p1604_p1) }
 0x642   : > { %v2304_v21 = vpack.c.bf16 %v1488_v20, %v1486_v13  ;;  %1769 = vmatmul.bf16.vlgmr.msra.gmra.mxu2 (%p1604_p1), %v2244_v53 }
 0x644   : > { %2343 = vst [vmem:[#allocation2] sm:$0xff] %v2304_v21  }
 0x647   : > { %v1508_v22 = vpop.f32.mrf.mxu3 }
 0x648   : > { %v2324_v23 = vpack.c.bf16 %v1508_v22, %v1506_v19 }
 0x649   : > { %v1491_v24 = vpop.f32.mrf.mxu1 }
 0x64a   : > { %2347 = vst [vmem:[#allocation2 + $0x20] sm:$0xff] %v2324_v23  }
 0x64b   : > { %v2241_v55 = vld [vmem:[#allocation2] sm:$0xff] (%p1604_p1) }
 0x64c   : > { %1754 = vmatmul.bf16.gmra.mxu0 (%p1604_p1), %v2241_v55 }
 0x64f   : > { %v1511_v25 = vpop.f32.mrf.mxu3 }
 0x651   : > { %v1493_v26 = vpop.f32.mrf.mxu1  ;;  %v2245_v59 = vld [vmem:[#allocation2 + $0x20] sm:$0xff] (%p1604_p1) }
 0x652   : > { %v2309_v27 = vpack.c.bf16 %v1493_v26, %v1491_v24  ;;  %1774 = vmatmul.bf16.gmra.mxu2 (%p1604_p1), %v2245_v59 }
 0x654   : > { %2344 = vst [vmem:[#allocation2 + $0x18] sm:$0xff] %v2309_v27  }
 0x657   : > { %v1513_v28 = vpop.f32.mrf.mxu3 }
 0x658   : > { %v2329_v29 = vpack.c.bf16 %v1513_v28, %v1511_v25 }
 0x659   : > { %v1496_v30 = vpop.f32.mrf.mxu1 }
 0x65a   : > { %2348 = vst [vmem:[#allocation2 + $0x28] sm:$0xff] %v2329_v29  }
 0x65b   : > { %v2242_v51 = vld [vmem:[#allocation2 + $0x18] sm:$0xff] (%p1604_p1) }
 0x65c   : > { %1759 = vmatmul.bf16.vlgmr.msra.gmra.mxu1 (%p1604_p1), %v2242_v51 }
 0x65f   : > { %v1516_v31 = vpop.f32.mrf.mxu3 }
 0x661   : > { %v1498_v33 = vpop.f32.mrf.mxu1  ;;  %v2246_v54 = vld [vmem:[#allocation2 + $0x28] sm:$0xff] (%p1604_p1) }
 0x662   : > { %v2314_v35 = vpack.c.bf16 %v1498_v33, %v1496_v30  ;;  %1779 = vmatmul.bf16.vlgmr.msra.gmra.mxu3 (%p1604_p1), %v2246_v54 }
 0x664   : > { %2345 = vst [vmem:[#allocation2 + $0x10] sm:$0xff] %v2314_v35  }
 0x666   : > { %1608 = sbr.rel (!%p1604_p1) target bundleno = 1793 (0x701), region = 88 }
 0x667   : > { %v1518_v36 = vpop.f32.mrf.mxu3 }
 0x668   : > { %v2334_v37 = vpack.c.bf16 %v1518_v36, %v1516_v31 }
 0x66a   : > { %2349 = vst [vmem:[#allocation2 + $0x38] sm:$0xff] %v2334_v37  }
 0x66b   : > { %v2243_v57 = vld [vmem:[#allocation2 + $0x10] sm:$0xff] }
 0x66c   : > { %1764 = vmatmul.bf16.gmra.mxu1 %v2243_v57 }
 0x671   : > { %v2247_v60 = vld [vmem:[#allocation2 + $0x38] sm:$0xff] }
 0x672   : > { %1784 = vmatmul.bf16.gmra.mxu3 %v2247_v60 }
 0x6b9   : > { %v1750_v62 = vpop.f32.mrf.mxu0 }
 0x6ba   : > { %v1751_v2 = vadd.f32 %v2523_v61, %v1750_v62 }
 0x6bc   : > { %1790 = vst [vmem:[#allocation13] sm:$0xff] %v1751_v2 }
 0x6c1   : > { %v1752_v48 = vpop.f32.mrf.mxu0 }
 0x6c2   : > { %v1753_v38 = vadd.f32 %v2523_v61, %v1752_v48 }
 0x6c4   : > { %1791 = vst [vmem:[#allocation13 + $0x8] sm:$0xff] %v1753_v38 }
 0x6c5   : > { %v1770_v52 = vpop.f32.mrf.mxu2 }
 0x6c6   : > { %v1771_v10 = vadd.f32 %v2523_v61, %v1770_v52 }
 0x6c8   : > { %1798 = vst [vmem:[#allocation13 + $0x40] sm:$0xff] %v1771_v10 }
 0x6c9   : > { %v1755_v6 = vpop.f32.mrf.mxu0 }
 0x6ca   : > { %v1756_v9 = vadd.f32 %v2523_v61, %v1755_v6 }
 0x6cc   : > { %1792 = vst [vmem:[#allocation13 + $0x10] sm:$0xff] %v1756_v9 }
 0x6cd   : > { %v1772_v58 = vpop.f32.mrf.mxu2 }
 0x6ce   : > { %v1773_v0 = vadd.f32 %v2523_v61, %v1772_v58 }
 0x6d0   : > { %1799 = vst [vmem:[#allocation13 + $0x48] sm:$0xff] %v1773_v0 }
 0x6d1   : > { %v1757_v11 = vpop.f32.mrf.mxu0 }
 0x6d2   : > { %v1758_v16 = vadd.f32 %v2523_v61, %v1757_v11 }
 0x6d4   : > { %1793 = vst [vmem:[#allocation13 + $0x18] sm:$0xff] %v1758_v16 }
 0x6d5   : > { %v1775_v8 = vpop.f32.mrf.mxu2 }
 0x6d6   : > { %v1776_v14 = vadd.f32 %v2523_v61, %v1775_v8 }
 0x6d8   : > { %1800 = vst [vmem:[#allocation13 + $0x50] sm:$0xff] %v1776_v14 }
 0x6d9   : > { %v1760_v63 = vpop.f32.mrf.mxu1 }
 0x6da   : > { %v1761_v1 = vadd.f32 %v2523_v61, %v1760_v63 }
 0x6dc   : > { %1794 = vst [vmem:[#allocation13 + $0x20] sm:$0xff] %v1761_v1 }
 0x6dd   : > { %v1777_v18 = vpop.f32.mrf.mxu2 }
 0x6de   : > { %v1778_v19 = vadd.f32 %v2523_v61, %v1777_v18 }
 0x6e0   : > { %1801 = vst [vmem:[#allocation13 + $0x58] sm:$0xff] %v1778_v19 }
 0x6e1   : > { %v1762_v32 = vpop.f32.mrf.mxu1 }
 0x6e2   : > { %v1763_v5 = vadd.f32 %v2523_v61, %v1762_v32 }
 0x6e4   : > { %1795 = vst [vmem:[#allocation13 + $0x28] sm:$0xff] %v1763_v5 }
 0x6e5   : > { %v1780_v56 = vpop.f32.mrf.mxu3 }
 0x6e6   : > { %v1781_v44 = vadd.f32 %v2523_v61, %v1780_v56 }
 0x6e8   : > { %1802 = vst [vmem:[#allocation13 + $0x60] sm:$0xff] %v1781_v44 }
 0x6e9   : > { %v1765_v40 = vpop.f32.mrf.mxu1 }
 0x6ea   : > { %v1766_v7 = vadd.f32 %v2523_v61, %v1765_v40 }
 0x6ec   : > { %1796 = vst [vmem:[#allocation13 + $0x30] sm:$0xff] %v1766_v7 }
 0x6ed   : > { %v1782_v4 = vpop.f32.mrf.mxu3 }
 0x6ee   : > { %v1783_v3 = vadd.f32 %v2523_v61, %v1782_v4 }
 0x6f0   : > { %1803 = vst [vmem:[#allocation13 + $0x68] sm:$0xff] %v1783_v3 }
 0x6f1   : > { %v1767_v15 = vpop.f32.mrf.mxu1 }
 0x6f2   : > { %v1768_v17 = vadd.f32 %v2523_v61, %v1767_v15 }
 0x6f4   : > { %1797 = vst [vmem:[#allocation13 + $0x38] sm:$0xff] %v1768_v17 }
 0x6f5   : > { %v1785_v12 = vpop.f32.mrf.mxu3 }
 0x6f6   : > { %v1786_v34 = vadd.f32 %v2523_v61, %v1785_v12 }
 0x6f8   : > { %1804 = vst [vmem:[#allocation13 + $0x70] sm:$0xff] %v1786_v34 }
 0x6fd   : > { %v1787_v13 = vpop.f32.mrf.mxu3 }
 0x6fe   : > { %v1788_v20 = vadd.f32 %v2523_v61, %v1787_v13 }
 0x700   : > { %1805 = vst [vmem:[#allocation13 + $0x78] sm:$0xff] %v1788_v20 }
 0x701 PF: > { %p2462_p4 = scmp.eq.s32.totalorder %s2857_s11, 1  ;;  %s1813_s19 = sshll.u32 %s3593_s8, 4  ;;  %s1814_s19 = int_to_ptr.hbm [resolvable:$true] %s1813_s19 }
 0x702   : > { %s2780_s24 = smov [#allocation13]   ;;  %s2781_s1 = smov 128  }
 0x703   : > { %s1811_s0 = sshll.u32 %s2780_s24, 4  ;;  %s2782_s5 = smov 8   ;;  %s1812_s0 = int_to_ptr.vmem [resolvable:$true] %s1811_s0 }
 0x704   : > { %2433 = dma.vmem_to_hbm [thread:$0]  (%p2462_p4), %s1812_s0, 2048, %s1814_s19, [#allocation6], %s2781_s1, %s2781_s1, %s2782_s5  }
 0x705   : > { %2747 = dma.done.wait (%p2462_p4), [#allocation6], 2048  }
 0x706   : > { %2749 = vsyncadd (%p2462_p4), [#allocation6], 4294965248 }
 0x707 PF: > { %s22_s10 = sadd.s32 1, %s2772_s10   ;;  %s3608_s27 = smov %s2756_s28 }
 0x708   : > { %p19_p5 = scmp.ge.s32.totalorder %s22_s10, 4   ;;  %s3609_s28 = smov %s2760_s29 }
 0x709   : > { %s3610_s29 = smov %s2931_s20  ;;  %s3611_s30 = smov %s2768_s9 }
 0x70a   : > { %s3612_s9 = smov %s3614_s22  ;;  %21 = sbr.rel (!%p19_p5) target bundleno = 10 (0xa), region = 125 }
 0x70f   :  { %1830 = vsyncpa [#allocation5], 1 }
 0x710   :  { %1832 = vsyncpa [#allocation5 + $0x1], 1 }
 0x711   :  { %1833 = vsyncpa [#allocation8], 1 }
 0x712   :  { %1834 = vsyncpa [#allocation12], 1 }
 0x713   :  { %1835 = vsyncpa [#allocation6], 1 }
 0x714   :  { %1837 = vsyncpa [#allocation6 + $0x1], 1 }

// kernel: tpu_custom_call.1
= control target key start
LH: loop header
LB: loop body
LE: loop exit
PB: predicated region body
PF: predicated region fallthrough
CT: control target
= control target key end

     0   :  { %s3585_s0 = inlined_call_operand.hbm [shape: bf16[128,128], index: 0, kind: input, shape index: {}]   ;;  %s3586_s1 = inlined_call_operand.hbm [shape: bf16[128,128], index: 1, kind: input, shape index: {}]   ;;  %s3587_s2 = inlined_call_operand.vmem [shape: f32[1,128], index: 2, kind: input, shape index: {}]   ;;  %s3588_s3 = inlined_call_operand.hbm [shape: bf16[2,128,128], index: 3, kind: input, shape index: {}]   ;;  %s3589_s4 = inlined_call_operand.vmem [shape: f32[2,1,128], index: 4, kind: input, shape index: {}]   ;;  %s3590_s5 = inlined_call_operand.hbm [shape: bf16[128,128], index: 5, kind: input, shape index: {}]   ;;  %s3591_s6 = inlined_call_operand.vmem [shape: f32[1,128], index: 6, kind: input, shape index: {}]   ;;  %s3592_s7 = inlined_call_operand.hbm [shape: bf16[128,128], index: 7, kind: input, shape index: {}]   ;;  %s3593_s8 = inlined_call_operand.hbm [shape: f32[128,128], index: 8, kind: output, shape index: {}]  }
   0x1   :  { %3596 = sst [smem:[#allocation20_spill]] %s3585_s0 }
   0x2   :  { %3597 = sst [smem:[#allocation21_spill]] %s3586_s1 }
   0x3   :  { %3598 = sst [smem:[#allocation22_spill]] %s3590_s5 }
   0x4   :  { %13 = vsyncpa [#allocation5], 0 }
   0x5   :  { %14 = vsyncpa [#allocation8], 0 }
   0x6   :  { %15 = vsyncpa [#allocation12], 0 }
   0x7   :  { %16 = vsyncpa [#allocation6], 0  ;;  %s2828_s27 = smov 0   ;;  %s2830_s28 = smov 0  }
   0x8   :  { %s2832_s29 = smov 0   ;;  %s2834_s30 = smov 0  }
   0x9   :  { %s2836_s9 = smov 0   ;;  %s2838_s10 = smov 0  }
   0xa LB: > { %s2857_s11 = sadd.s32 4294967295, %s2772_s10   ;;  %p117_p0 = scmp.ne.s32.totalorder %s2756_s28, %s2752_s27  ;;  %s2772_s10 = sphi %s2838_s10, %s22_s10   ;;  %s2768_s9 = sphi %s2836_s9, %s3612_s9   ;;  %s2764_s30 = sphi %s2834_s30, %s3611_s30   ;;  %s2760_s29 = sphi %s2832_s29, %s3610_s29   ;;  %s2756_s28 = sphi %s2830_s28, %s3609_s28   ;;  %s2752_s27 = sphi %s2828_s27, %s3608_s27  }
   0xb   : > { %p118_p1 = scmp.eq.s32.totalorder %s2857_s11, 0  ;;  %p1928_p2 = scmp.ge.s32.totalorder %s2772_s10, 1 }
   0xc   : > { %p243_p3 = scmp.lt.s32.totalorder %s2772_s10, 3  ;;  %s3600_s0 = sld [smem:[#allocation20_spill]] }
   0xd   : > { %p2865_p4 = por %p118_p1, %p117_p0  ;;  %s2774_s17 = smov [#allocation4]  }
   0xe   : > { %p2872_p5 = pnand %p1928_p2, %p243_p3  ;;  %s256_s18 = sshll.u32 %s2774_s17, 4  ;;  %s257_s18 = int_to_ptr.vmem [resolvable:$true] %s256_s18 }
   0xf   : > { %s3603_s1 = sld [smem:[#allocation21_spill]]  ;;  %s3594_s23 = smov 64  }
  0x10   : > { %p2436_p6 = pneg %p2872_p5  ;;  %s3595_s24 = smov 4  }
  0x11   : > { %s2777_s25 = smov [#allocation7]   ;;  %s3604_s5 = sld [smem:[#allocation22_spill]] }
  0x12   : > { %s254_s15 = sshll.u32 %s3600_s0, 4  ;;  %p2880_p7 = pnand %p2436_p6, %p118_p1  ;;  %s255_s15 = int_to_ptr.hbm [resolvable:$true] %s254_s15 }
  0x13   : > { %s270_s26 = sshll.u32 %s2777_s25, 4  ;;  %s2778_s20 = smov [#allocation10]   ;;  %s271_s26 = int_to_ptr.vmem [resolvable:$true] %s270_s26 }
  0x14   : > { %2439 = dma.hbm_to_vmem [thread:$0]  (!%p2880_p7), %s255_s15, 1024, %s257_s18, [#allocation5], %s3594_s23, %s3594_s23, %s3595_s24  }
  0x15   : > { %s268_s22 = sshll.u32 %s3603_s1, 4  ;;  %s304_s18 = sshll.u32 %s3592_s7, 4  ;;  %s269_s22 = int_to_ptr.hbm [resolvable:$true] %s268_s22  ;;  %s305_s18 = int_to_ptr.hbm [resolvable:$true] %s304_s18 }
  0x16   : > { %2442 = dma.hbm_to_vmem [thread:$0]  (!%p2880_p7), %s269_s22, 1024, %s271_s26, [#allocation8], %s3594_s23, %s3594_s23, %s3595_s24  }
  0x17   : > { %s285_s14 = sshll.u32 %s3604_s5, 4  ;;  %s287_s21 = sshll.u32 %s2778_s20, 4  ;;  %s286_s14 = int_to_ptr.hbm [resolvable:$true] %s285_s14  ;;  %s288_s21 = int_to_ptr.vmem [resolvable:$true] %s287_s21 }
  0x18   : > { %2445 = dma.hbm_to_vmem [thread:$0]  (!%p2880_p7), %s286_s14, 1024, %s288_s21, [#allocation8], %s3594_s23, %s3594_s23, %s3595_s24  }
  0x19   : > { %s2779_s25 = smov [#allocation11]   ;;  %s34_s22 = sadd.s32 1, %s2768_s9 }
  0x1a   : > { %s306_s27 = sshll.u32 %s2779_s25, 4  ;;  %p36_p8 = scmp.ge.s32.totalorder %s34_s22, 2  ;;  %s307_s27 = int_to_ptr.vmem [resolvable:$true] %s306_s27 }
  0x1b   : > { %2448 = dma.hbm_to_vmem [thread:$0]  (!%p2880_p7), %s305_s18, 1024, %s307_s27, [#allocation12], %s3594_s23, %s3594_s23, %s3595_s24  }
  0x1c   : > { %p111_p9 = scmp.ne.s32.totalorder %s2760_s29, %s2756_s28  ;;  %s104_s26 = sadd.s32 1, %s2760_s29 }
  0x1d   : > { %p112_p10 = scmp.eq.s32.totalorder %s2772_s10, 0  ;;  %s3614_s22 = smov (%p36_p8, %s34_s22), 0 }
  0x1e   : > { %p2457_p12 = scmp.lt.s32.totalorder %s2772_s10, 2  ;;  %s101_s19 = ssub.s32 %s2768_s9, %s3614_s22 }
  0x1f   : > { %p2920_p11 = por %p112_p10, %p111_p9  ;;  %s320_s14 = sand.u32 1, %s2772_s10  }
  0x20   : > { %p102_p13 = scmp.eq.s32.totalorder %s101_s19, 0  ;;  %s322_s15 = sand.u32 1, %s2760_s29  }
  0x21   : > { %s1934_s17 = sshll.u32 %s322_s15, 6  ;;  %s2197_s18 = sshll.u32 %s2768_s9, 6 }
  0x22   : > { %s2931_s20 = scalar_select %p102_p13, %s2760_s29, %s104_s26  }
  0x23   : > { %s329_s27 = scalar_lea.hbm %s3588_s3, %s2197_s18  ;;  %s324_s24 = scalar_lea.vmem [#allocation9], %s1934_s17 }
  0x24   : > { %s330_s23 = sshll.u32 %s329_s27, 4  ;;  %s332_s0 = sshll.u32 %s324_s24, 4  ;;  %s331_s23 = int_to_ptr.hbm [resolvable:$true] %s330_s23  ;;  %s333_s0 = int_to_ptr.vmem [resolvable:$true] %s332_s0 }
  0x25   : > { %p2450_p0 = pnand %p2457_p12, %p2920_p11  ;;  %s321_s1 = scalar_lea.sflag [#allocation5], %s320_s14 }
  0x26   : > { %s3606_s5 = smov 4   ;;  %s3607_s19 = smov 64  }
  0x27   : > { %2452 = dma.hbm_to_vmem [thread:$0]  (!%p2450_p0), %s331_s23, 1024, %s333_s0, %s321_s1, %s3607_s19, %s3607_s19, %s3606_s5  }
  0x28   : > { %350 = sbr.rel (%p2872_p5) target bundleno = 1799 (0x707), region = 52 }
  0x2d   : > { %2727 = dma.done.wait (%p118_p1), [#allocation5], 1024  }
  0x2e   : > { %2729 = vsyncadd (%p118_p1), [#allocation5], 4294966272 }
  0x2f   : > { %2731 = dma.done.wait (%p118_p1), [#allocation8], 1024  }
  0x30   : > { %2733 = vsyncadd (%p118_p1), [#allocation8], 4294966272  ;;  %s362_s24 = sand.u32 1, %s2857_s11   ;;  %s364_s0 = sand.u32 1, %s2756_s28  }
  0x31   : > { %s1940_s1 = sshll.u32 %s364_s0, 6  ;;  %s363_s5 = scalar_lea.sflag [#allocation5], %s362_s24 }
  0x32   : > { %s2955_s16 = scalar_lea.vmem [#allocation9], %s1940_s1 }
  0x33   : > { %2735 = dma.done.wait (%p2865_p4), %s363_s5, 1024  }
  0x34   : > { %2737 = vsyncadd (%p2865_p4), %s363_s5, 4294966272 }
  0x35   : > { %2739 = dma.done.wait (%p118_p1), [#allocation8], 1024  }
  0x36   : > { %2741 = vsyncadd (%p118_p1), [#allocation8], 4294966272 }
  0x37   : > { %2743 = dma.done.wait (%p118_p1), [#allocation12], 1024  }
  0x38   : > { %2745 = vsyncadd (%p118_p1), [#allocation12], 4294966272  ;;  %p408_p2 = scmp.lt.s32.totalorder %s2764_s30, 1  ;;  %p411_p3 = scmp.eq.s32.totalorder %s2764_s30, 0 }
  0x39   : > { %v2214_v0 = vld [vmem:[#allocation7 + $0x38] sm:$0xff] (%p411_p3)  ;;  %v2213_v1 = vld [vmem:[#allocation7 + $0x30] sm:$0xff] (%p411_p3)  ;;  %v2212_v2 = vld [vmem:[#allocation7 + $0x28] sm:$0xff] (%p411_p3) }
  0x3a   : > { %s2972_s23 = scalar_select %p408_p2, %s2764_s30, 1  ;;  %549 = vmatpush.bf16.msra.mxu0 (%p411_p3), %v2214_v0  ;;  %2350 = vmatpush.bf16.msra.mxu1 (%p411_p3), %v2214_v0  ;;  %v2211_v3 = vld [vmem:[#allocation7 + $0x20] sm:$0xff] (%p411_p3)  ;;  %v2210_v4 = vld [vmem:[#allocation7 + $0x18] sm:$0xff] (%p411_p3)  ;;  %v2209_v5 = vld [vmem:[#allocation7 + $0x10] sm:$0xff] (%p411_p3) }
  0x3b   : > { %416 = sbr.rel (!%p411_p3) target bundleno = 254 (0xfe), region = 76  ;;  %2351 = vmatpush.bf16.msra.mxu2 (%p411_p3), %v2214_v0  ;;  %2352 = vmatpush.bf16.msra.mxu3 (%p411_p3), %v2214_v0  ;;  %v2208_v6 = vld [vmem:[#allocation7 + $0x8] sm:$0xff] (%p411_p3)  ;;  %v2207_v7 = vld [vmem:[#allocation7] sm:$0xff] (%p411_p3)  ;;  %v2201_v9 = vld [vmem:[#allocation4 + $0x10] sm:$0xff] (%p411_p3) }
  0x3c   : > { %s410_s13 = scalar_lea.vmem %s3589_s4, %s2972_s23  ;;  %v2199_v8 = vld [vmem:[#allocation4] sm:$0xff] (%p411_p3)  ;;  %v2205_v11 = vld [vmem:[#allocation4 + $0x30] sm:$0xff] (%p411_p3)  ;;  %v2200_v12 = vld [vmem:[#allocation4 + $0x8] sm:$0xff] (%p411_p3) }
  0x3d   : > { %v2203_v10 = vld [vmem:[#allocation4 + $0x20] sm:$0xff] (%p411_p3)  ;;  %v2202_v13 = vld [vmem:[#allocation4 + $0x18] sm:$0xff] (%p411_p3)  ;;  %v2204_v14 = vld [vmem:[#allocation4 + $0x28] sm:$0xff] (%p411_p3) }
  0x3e   : > { %550 = vmatpush.bf16.msra.mxu0 (%p411_p3), %v2213_v1  ;;  %2353 = vmatpush.bf16.msra.mxu1 (%p411_p3), %v2213_v1  ;;  %v2206_v15 = vld [vmem:[#allocation4 + $0x38] sm:$0xff] (%p411_p3)  ;;  %v2521_v18 = vld [vmem:[%s3587_s2] ss:$0 sm:$0xff] (%p411_p3) }
  0x3f   : > { %2354 = vmatpush.bf16.msra.mxu2 (%p411_p3), %v2213_v1  ;;  %2355 = vmatpush.bf16.msra.mxu3 (%p411_p3), %v2213_v1 }
  0x42   : > { %551 = vmatpush.bf16.msra.mxu0 %v2212_v2  ;;  %2356 = vmatpush.bf16.msra.mxu1 %v2212_v2 }
  0x43   : > { %2357 = vmatpush.bf16.msra.mxu2 %v2212_v2  ;;  %2358 = vmatpush.bf16.msra.mxu3 %v2212_v2 }
  0x46   : > { %552 = vmatpush.bf16.msra.mxu0 %v2211_v3  ;;  %2359 = vmatpush.bf16.msra.mxu1 %v2211_v3 }
  0x47   : > { %2360 = vmatpush.bf16.msra.mxu2 %v2211_v3  ;;  %2361 = vmatpush.bf16.msra.mxu3 %v2211_v3 }
  0x4a   : > { %553 = vmatpush.bf16.msra.mxu0 %v2210_v4  ;;  %2362 = vmatpush.bf16.msra.mxu1 %v2210_v4 }
  0x4b   : > { %2363 = vmatpush.bf16.msra.mxu2 %v2210_v4  ;;  %2364 = vmatpush.bf16.msra.mxu3 %v2210_v4 }
  0x4e   : > { %554 = vmatpush.bf16.msra.mxu0 %v2209_v5  ;;  %2365 = vmatpush.bf16.msra.mxu1 %v2209_v5 }
  0x4f   : > { %2366 = vmatpush.bf16.msra.mxu2 %v2209_v5  ;;  %2367 = vmatpush.bf16.msra.mxu3 %v2209_v5 }
  0x52   : > { %555 = vmatpush.bf16.msra.mxu0 %v2208_v6  ;;  %2368 = vmatpush.bf16.msra.mxu1 %v2208_v6 }
  0x53   : > { %2369 = vmatpush.bf16.msra.mxu2 %v2208_v6  ;;  %2370 = vmatpush.bf16.msra.mxu3 %v2208_v6 }
  0x56   : > { %556 = vmatpush.bf16.msra.mxu0 %v2207_v7  ;;  %2371 = vmatpush.bf16.msra.mxu1 %v2207_v7 }
  0x57   : > { %2372 = vmatpush.bf16.msra.mxu2 %v2207_v7  ;;  %2373 = vmatpush.bf16.msra.mxu3 %v2207_v7 }
  0x59   : > { %557 = vmatmul.bf16.vlgmr.msra.gmra.mxu0 %v2199_v8  ;;  %567 = vmatmul.bf16.vlgmr.msra.gmra.mxu1 %v2201_v9 }
  0x5a   : > { %577 = vmatmul.bf16.vlgmr.msra.gmra.mxu2 %v2203_v10  ;;  %587 = vmatmul.bf16.vlgmr.msra.gmra.mxu3 %v2205_v11 }
  0x69   : > { %562 = vmatmul.bf16.gmra.mxu0 %v2200_v12  ;;  %572 = vmatmul.bf16.gmra.mxu1 %v2202_v13 }
  0x6a   : > { %582 = vmatmul.bf16.gmra.mxu2 %v2204_v14  ;;  %592 = vmatmul.bf16.gmra.mxu3 %v2206_v15 }
  0xd6   : > { %v558_v16 = vpop.f32.mrf.mxu0  ;;  %v568_v17 = vpop.f32.mrf.mxu1 }
  0xd7   : > { %v559_v19 = vadd.f32 %v2521_v18, %v558_v16  ;;  %v569_v20 = vadd.f32 %v2521_v18, %v568_v17 }
  0xd9   : > { %v598_v27 = vmax.f32 %v559_v19, 0.0  ;;  %v602_v28 = vmax.f32 %v569_v20, 0.0 }
  0xdd   : > { %v578_v21 = vpop.f32.mrf.mxu2  ;;  %v588_v22 = vpop.f32.mrf.mxu3 }
  0xde   : > { %v560_v23 = vpop.f32.mrf.mxu0  ;;  %v570_v24 = vpop.f32.mrf.mxu1  ;;  %v579_v33 = vadd.f32 %v2521_v18, %v578_v21  ;;  %v589_v34 = vadd.f32 %v2521_v18, %v588_v22 }
  0xdf   : > { %v561_v25 = vadd.f32 %v2521_v18, %v560_v23  ;;  %v571_v26 = vadd.f32 %v2521_v18, %v570_v24 }
  0xe0   : > { %v606_v41 = vmax.f32 %v579_v33, 0.0  ;;  %v610_v42 = vmax.f32 %v589_v34, 0.0 }
  0xe1   : > { %v599_v29 = vmax.f32 %v561_v25, 0.0  ;;  %v603_v30 = vmax.f32 %v571_v26, 0.0 }
  0xe3   : > { %v2259_v31 = vpack.c.bf16 %v599_v29, %v598_v27  ;;  %v2269_v32 = vpack.c.bf16 %v603_v30, %v602_v28 }
  0xe5   : > { %2260 = vst [vmem:[#allocation2 + $0x30] sm:$0xff] %v2259_v31   ;;  %v580_v35 = vpop.f32.mrf.mxu2  ;;  %v590_v36 = vpop.f32.mrf.mxu3 }
  0xe6   : > { %2337 = vst [vmem:[#allocation2 + $0x18] sm:$0xff] %v2269_v32   ;;  %v581_v37 = vadd.f32 %v2521_v18, %v580_v35  ;;  %v591_v38 = vadd.f32 %v2521_v18, %v590_v36  ;;  %v563_v39 = vpop.f32.mrf.mxu0  ;;  %v573_v40 = vpop.f32.mrf.mxu1 }
  0xe7   : > { %v564_v47 = vadd.f32 %v2521_v18, %v563_v39  ;;  %v574_v48 = vadd.f32 %v2521_v18, %v573_v40 }
  0xe8   : > { %v607_v43 = vmax.f32 %v581_v37, 0.0  ;;  %v611_v44 = vmax.f32 %v591_v38, 0.0 }
  0xe9   : > { %v600_v55 = vmax.f32 %v564_v47, 0.0  ;;  %v604_v56 = vmax.f32 %v574_v48, 0.0 }
  0xea   : > { %v2279_v45 = vpack.c.bf16 %v607_v43, %v606_v41  ;;  %v2289_v46 = vpack.c.bf16 %v611_v44, %v610_v42 }
  0xec   : > { %2339 = vst [vmem:[#allocation2 + $0x8] sm:$0xff] %v2279_v45  }
  0xed   : > { %2341 = vst [vmem:[#allocation2 + $0x28] sm:$0xff] %v2289_v46   ;;  %v583_v49 = vpop.f32.mrf.mxu2  ;;  %v593_v50 = vpop.f32.mrf.mxu3 }
  0xee   : > { %v565_v51 = vpop.f32.mrf.mxu0  ;;  %v575_v52 = vpop.f32.mrf.mxu1  ;;  %v584_v61 = vadd.f32 %v2521_v18, %v583_v49  ;;  %v594_v62 = vadd.f32 %v2521_v18, %v593_v50 }
  0xef   : > { %v566_v53 = vadd.f32 %v2521_v18, %v565_v51  ;;  %v576_v54 = vadd.f32 %v2521_v18, %v575_v52 }
  0xf0   : > { %v608_v3 = vmax.f32 %v584_v61, 0.0  ;;  %v612_v4 = vmax.f32 %v594_v62, 0.0 }
  0xf1   : > { %v601_v57 = vmax.f32 %v566_v53, 0.0  ;;  %v605_v58 = vmax.f32 %v576_v54, 0.0 }
  0xf3   : > { %v2264_v59 = vpack.c.bf16 %v601_v57, %v600_v55  ;;  %v2274_v60 = vpack.c.bf16 %v605_v58, %v604_v56 }
  0xf5   : > { %2336 = vst [vmem:[#allocation2] sm:$0xff] %v2264_v59   ;;  %v585_v63 = vpop.f32.mrf.mxu2  ;;  %v595_v0 = vpop.f32.mrf.mxu3 }
  0xf6   : > { %2338 = vst [vmem:[#allocation2 + $0x10] sm:$0xff] %v2274_v60   ;;  %v586_v1 = vadd.f32 %v2521_v18, %v585_v63  ;;  %v596_v2 = vadd.f32 %v2521_v18, %v595_v0 }
  0xf8   : > { %v609_v5 = vmax.f32 %v586_v1, 0.0  ;;  %v613_v6 = vmax.f32 %v596_v2, 0.0 }
  0xfa   : > { %v2284_v7 = vpack.c.bf16 %v609_v5, %v608_v3  ;;  %v2294_v8 = vpack.c.bf16 %v613_v6, %v612_v4 }
  0xfc   : > { %2340 = vst [vmem:[#allocation2 + $0x20] sm:$0xff] %v2284_v7  }
  0xfd   : > { %2342 = vst [vmem:[#allocation2 + $0x38] sm:$0xff] %v2294_v8  }
  0xfe PF: > { %v2230_v9 = vld [vmem:[%s2955_s16 + $0x38] sm:$0xff]  ;;  %v2229_v10 = vld [vmem:[%s2955_s16 + $0x30] sm:$0xff]  ;;  %v2228_v11 = vld [vmem:[%s2955_s16 + $0x28] sm:$0xff]  ;;  %v851_v25 = vlaneseq  ;;  %p1604_p1 = scmp.eq.s32.totalorder %s2764_s30, 1 }
  0xff   : > { %802 = vmatpush.bf16.msra.mxu0 %v2230_v9  ;;  %2374 = vmatpush.bf16.msra.mxu2 %v2230_v9  ;;  %v2227_v12 = vld [vmem:[%s2955_s16 + $0x20] sm:$0xff]  ;;  %v2226_v13 = vld [vmem:[%s2955_s16 + $0x18] sm:$0xff]  ;;  %v2225_v14 = vld [vmem:[%s2955_s16 + $0x10] sm:$0xff] }
 0x100   : > { %v2224_v15 = vld [vmem:[%s2955_s16 + $0x8] sm:$0xff]  ;;  %v2223_v16 = vld [vmem:[%s2955_s16] sm:$0xff]  ;;  %v2215_v17 = vld [vmem:[#allocation2 + $0x30] sm:$0xff]  ;;  %v852_v27 = vand.u32 127, %v851_v25 }
 0x101   : > { %v2219_v18 = vld [vmem:[#allocation2 + $0x8] sm:$0xff]  ;;  %v2216_v19 = vld [vmem:[#allocation2] sm:$0xff]  ;;  %v2217_v21 = vld [vmem:[#allocation2 + $0x18] sm:$0xff] }
 0x102   : > { %v2221_v22 = vld [vmem:[#allocation2 + $0x28] sm:$0xff]  ;;  %v2218_v23 = vld [vmem:[#allocation2 + $0x10] sm:$0xff]  ;;  %v2522_v28 = vld [vmem:[%s410_s13] ss:$0 sm:$0xff]  ;;  %vm853_vm0 = vcmp.lt.s32.totalorder %v852_v27, 32 }
 0x103   : > { %803 = vmatpush.bf16.msra.mxu0 %v2229_v10  ;;  %2375 = vmatpush.bf16.msra.mxu2 %v2229_v10  ;;  %v2220_v20 = vld [vmem:[#allocation2 + $0x20] sm:$0xff] }
 0x104   : > { %v2222_v24 = vld [vmem:[#allocation2 + $0x38] sm:$0xff] }
 0x107   : > { %804 = vmatpush.bf16.msra.mxu0 %v2228_v11  ;;  %2376 = vmatpush.bf16.msra.mxu2 %v2228_v11 }
 0x10b   : > { %805 = vmatpush.bf16.msra.mxu0 %v2227_v12  ;;  %2377 = vmatpush.bf16.msra.mxu2 %v2227_v12 }
 0x10f   : > { %806 = vmatpush.bf16.msra.mxu0 %v2226_v13  ;;  %2378 = vmatpush.bf16.msra.mxu2 %v2226_v13 }
 0x113   : > { %807 = vmatpush.bf16.msra.mxu0 %v2225_v14  ;;  %2379 = vmatpush.bf16.msra.mxu2 %v2225_v14 }
 0x117   : > { %808 = vmatpush.bf16.msra.mxu0 %v2224_v15  ;;  %2380 = vmatpush.bf16.msra.mxu2 %v2224_v15 }
 0x11b   : > { %809 = vmatpush.bf16.msra.mxu0 %v2223_v16  ;;  %2381 = vmatpush.bf16.msra.mxu2 %v2223_v16 }
 0x11e   : > { %810 = vmatmul.bf16.vlgmr.msra.gmra.mxu0 %v2215_v17  ;;  %830 = vmatmul.bf16.vlgmr.msra.gmra.mxu2 %v2219_v18 }
 0x12e   : > { %815 = vmatmul.bf16.gmra.mxu0 %v2216_v19  ;;  %835 = vmatmul.bf16.gmra.mxu2 %v2220_v20 }
 0x13e   : > { %820 = vmatmul.bf16.gmra.mxu0 %v2217_v21  ;;  %840 = vmatmul.bf16.gmra.mxu2 %v2221_v22 }
 0x14e   : > { %825 = vmatmul.bf16.gmra.mxu0 %v2218_v23  ;;  %845 = vmatmul.bf16.gmra.mxu2 %v2222_v24 }
 0x19b   : > { %v811_v26 = vpop.f32.mrf.mxu0 }
 0x19c   : > { %v812_v7 = vadd.f32 %v2522_v28, %v811_v26 }
 0x19e   : > { %v3052_v11 = vsel %vm853_vm0, %v812_v7, -inf }
 0x1a1   : > { %v831_v29 = vpop.f32.mrf.mxu2 }
 0x1a2   : > { %v832_v30 = vadd.f32 %v2522_v28, %v831_v29 }
 0x1a3   : > { %v813_v31 = vpop.f32.mrf.mxu0 }
 0x1a4   : > { %v2995_v32 = vsel %vm853_vm0, %v832_v30, -inf  ;;  %v814_v33 = vadd.f32 %v2522_v28, %v813_v31 }
 0x1a5   : > { %888 = vmax.xlane.f32.xlu0 %v2995_v32 }
 0x1a6   : > { %v2999_v34 = vsel %vm853_vm0, %v814_v33, -inf }
 0x1a9   : > { %v833_v35 = vpop.f32.mrf.mxu2 }
 0x1aa   : > { %v834_v36 = vadd.f32 %v2522_v28, %v833_v35 }
 0x1ab   : > { %v816_v37 = vpop.f32.mrf.mxu0 }
 0x1ac   : > { %v3002_v38 = vsel %vm853_vm0, %v834_v36, -inf  ;;  %v817_v39 = vadd.f32 %v2522_v28, %v816_v37 }
 0x1ad   : > { %890 = vmax.xlane.f32.xlu1 %v3002_v38 }
 0x1ae   : > { %v3006_v40 = vsel %vm853_vm0, %v817_v39, -inf }
 0x1b1   : > { %v836_v41 = vpop.f32.mrf.mxu2 }
 0x1b2   : > { %v837_v42 = vadd.f32 %v2522_v28, %v836_v41 }
 0x1b3   : > { %v818_v43 = vpop.f32.mrf.mxu0 }
 0x1b4   : > { %v3009_v44 = vsel %vm853_vm0, %v837_v42, -inf  ;;  %v819_v5 = vadd.f32 %v2522_v28, %v818_v43 }
 0x1b5   : > { %892 = vmax.xlane.f32.xlu2 %v3009_v44 }
 0x1b6   : > { %v3044_v9 = vsel %vm853_vm0, %v819_v5, -inf }
 0x1b9   : > { %v838_v45 = vpop.f32.mrf.mxu2 }
 0x1ba   : > { %v839_v46 = vadd.f32 %v2522_v28, %v838_v45 }
 0x1bb   : > { %v821_v47 = vpop.f32.mrf.mxu0 }
 0x1bc   : > { %v3013_v48 = vsel %vm853_vm0, %v839_v46, -inf  ;;  %v822_v59 = vadd.f32 %v2522_v28, %v821_v47 }
 0x1bd   : > { %894 = vmax.xlane.f32.xlu2 %v3013_v48 }
 0x1be   : > { %v3029_v0 = vsel %vm853_vm0, %v822_v59, -inf }
 0x1c1   : > { %v841_v49 = vpop.f32.mrf.mxu2 }
 0x1c2   : > { %v842_v50 = vadd.f32 %v2522_v28, %v841_v49 }
 0x1c3   : > { %v823_v51 = vpop.f32.mrf.mxu0 }
 0x1c4   : > { %v3017_v52 = vsel %vm853_vm0, %v842_v50, -inf  ;;  %v824_v61 = vadd.f32 %v2522_v28, %v823_v51 }
 0x1c5   : > { %896 = vmax.xlane.f32.xlu1 %v3017_v52 }
 0x1c6   : > { %v3037_v3 = vsel %vm853_vm0, %v824_v61, -inf }
 0x1c9   : > { %v843_v53 = vpop.f32.mrf.mxu2 }
 0x1ca   : > { %v844_v54 = vadd.f32 %v2522_v28, %v843_v53 }
 0x1cb   : > { %v826_v55 = vpop.f32.mrf.mxu0 }
 0x1cc   : > { %v3021_v56 = vsel %vm853_vm0, %v844_v54, -inf  ;;  %v827_v57 = vadd.f32 %v2522_v28, %v826_v55 }
 0x1cd   : > { %898 = vmax.xlane.f32.xlu1 %v3021_v56 }
 0x1ce   : > { %v3025_v58 = vsel %vm853_vm0, %v827_v57, -inf }
 0x1cf   : > { %884 = vmax.xlane.f32.xlu2 %v3025_v58 }
 0x1d1   : > { %v846_v60 = vpop.f32.mrf.mxu2 }
 0x1d2   : > { %v847_v62 = vadd.f32 %v2522_v28, %v846_v60 }
 0x1d3   : > { %v828_v63 = vpop.f32.mrf.mxu0 }
 0x1d4   : > { %v3032_v1 = vsel %vm853_vm0, %v847_v62, -inf  ;;  %v829_v2 = vadd.f32 %v2522_v28, %v828_v63 }
 0x1d5   : > { %900 = vmax.xlane.f32.xlu0 %v3032_v1  ;;  %880 = vmax.xlane.f32.xlu1 %v3029_v0 }
 0x1d6   : > { %v3040_v4 = vsel %vm853_vm0, %v829_v2, -inf }
 0x1d7   : > { %882 = vmax.xlane.f32.xlu2 %v3037_v3 }
 0x1d9   : > { %v848_v6 = vpop.f32.mrf.mxu2 }
 0x1da   : > { %v849_v8 = vadd.f32 %v2522_v28, %v848_v6 }
 0x1dc   : > { %v3047_v10 = vsel %vm853_vm0, %v849_v8, -inf }
 0x1dd   : > { %902 = vmax.xlane.f32.xlu0 %v3047_v10  ;;  %878 = vmax.xlane.f32.xlu1 %v3044_v9 }
 0x1df   : > { %872 = vmax.xlane.f32.xlu2 %v3052_v11 }
 0x1e5   : > { %886 = vmax.xlane.f32.xlu0 %v3040_v4 }
 0x1ed   : > { %876 = vmax.xlane.f32.xlu0 %v3006_v40 }
 0x1f5   : > { %874 = vmax.xlane.f32.xlu0 %v2999_v34 }
 0x218   : > { %v889_v12 = vpop.xlane.xlu0 %888 }
 0x219   : > { %vm912_vm1 = vcmp.ge.f32.partialorder %v2995_v32, %v889_v12 }
 0x21a   : > { %v3060_v13 = vsel %vm912_vm1, -inf, %v2995_v32 }
 0x21b   : > { %952 = vmax.xlane.f32.xlu1 %v3060_v13 }
 0x220   : > { %v891_v16 = vpop.xlane.xlu1 %890 }
 0x221   : > { %vm913_vm11 = vcmp.ge.f32.partialorder %v3002_v38, %v891_v16 }
 0x222   : > { %v3087_v36 = vsel %vm913_vm11, -inf, %v3002_v38 }
 0x228   : > { %v893_v14 = vpop.xlane.xlu2 %892 }
 0x229   : > { %vm914_vm2 = vcmp.ge.f32.partialorder %v3009_v44, %v893_v14 }
 0x22a   : > { %v930_v15 = vsel %vm914_vm2, -inf, %v3009_v44 }
 0x22b   : > { %956 = vmax.xlane.f32.xlu2 %v930_v15 }
 0x230   : > { %v895_v17 = vpop.xlane.xlu2 %894 }
 0x231   : > { %vm915_vm3 = vcmp.ge.f32.partialorder %v3013_v48, %v895_v17 }
 0x232   : > { %v931_v18 = vsel %vm915_vm3, -inf, %v3013_v48 }
 0x233   : > { %958 = vmax.xlane.f32.xlu0 %v931_v18 }
 0x238   : > { %v897_v19 = vpop.xlane.xlu1 %896 }
 0x239   : > { %vm916_vm4 = vcmp.ge.f32.partialorder %v3017_v52, %v897_v19 }
 0x23a   : > { %v932_v20 = vsel %vm916_vm4, -inf, %v3017_v52 }
 0x23b   : > { %960 = vmax.xlane.f32.xlu0 %v932_v20 }
 0x240   : > { %v899_v21 = vpop.xlane.xlu1 %898 }
 0x241   : > { %vm917_vm5 = vcmp.ge.f32.partialorder %v3021_v56, %v899_v21 }
 0x242   : > { %v933_v22 = vsel %vm917_vm5, -inf, %v3021_v56  ;;  %v885_v23 = vpop.xlane.xlu2 %884 }
 0x243   : > { %vm910_vm6 = vcmp.ge.f32.partialorder %v3025_v58, %v885_v23  ;;  %962 = vmax.xlane.f32.xlu1 %v933_v22 }
 0x244   : > { %v926_v24 = vsel %vm910_vm6, -inf, %v3025_v58 }
 0x245   : > { %948 = vmax.xlane.f32.xlu0 %v926_v24 }
 0x248   : > { %v901_v25 = vpop.xlane.xlu0 %900  ;;  %v881_v37 = vpop.xlane.xlu1 %880 }
 0x249   : > { %vm918_vm7 = vcmp.ge.f32.partialorder %v3032_v1, %v901_v25  ;;  %vm908_vm13 = vcmp.ge.f32.partialorder %v3029_v0, %v881_v37 }
 0x24a   : > { %v934_v26 = vsel %vm918_vm7, -inf, %v3032_v1  ;;  %v883_v27 = vpop.xlane.xlu2 %882  ;;  %v3094_v42 = vsel %vm908_vm13, -inf, %v3029_v0 }
 0x24b   : > { %vm909_vm8 = vcmp.ge.f32.partialorder %v3037_v3, %v883_v27  ;;  %964 = vmax.xlane.f32.xlu1 %v934_v26 }
 0x24c   : > { %v925_v28 = vsel %vm909_vm8, -inf, %v3037_v3 }
 0x24d   : > { %946 = vmax.xlane.f32.xlu0 %v925_v28 }
 0x250   : > { %v903_v29 = vpop.xlane.xlu0 %902  ;;  %v879_v45 = vpop.xlane.xlu1 %878 }
 0x251   : > { %vm919_vm9 = vcmp.ge.f32.partialorder %v3047_v10, %v903_v29  ;;  %vm907_vm15 = vcmp.ge.f32.partialorder %v3044_v9, %v879_v45 }
 0x252   : > { %v935_v30 = vsel %vm919_vm9, -inf, %v3047_v10  ;;  %v873_v31 = vpop.xlane.xlu2 %872  ;;  %v3104_v47 = vsel %vm907_vm15, -inf, %v3044_v9 }
 0x253   : > { %vm904_vm10 = vcmp.ge.f32.partialorder %v3052_v11, %v873_v31  ;;  %966 = vmax.xlane.f32.xlu2 %v935_v30 }
 0x254   : > { %v3081_v33 = vsel %vm904_vm10, -inf, %v3052_v11 }
 0x255   : > { %936 = vmax.xlane.f32.xlu0 %v3081_v33 }
 0x258   : > { %v887_v35 = vpop.xlane.xlu0 %886 }
 0x259   : > { %vm911_vm12 = vcmp.ge.f32.partialorder %v3040_v4, %v887_v35 }
 0x25a   : > { %v927_v39 = vsel %vm911_vm12, -inf, %v3040_v4 }
 0x25b   : > { %950 = vmax.xlane.f32.xlu1 %v927_v39  ;;  %954 = vmax.xlane.f32.xlu2 %v3087_v36 }
 0x260   : > { %v877_v41 = vpop.xlane.xlu0 %876 }
 0x261   : > { %vm906_vm14 = vcmp.ge.f32.partialorder %v3006_v40, %v877_v41 }
 0x262   : > { %v3097_v43 = vsel %vm906_vm14, -inf, %v3006_v40 }
 0x263   : > { %940 = vmax.xlane.f32.xlu1 %v3097_v43  ;;  %944 = vmax.xlane.f32.xlu2 %v3094_v42 }
 0x268   : > { %v875_v46 = vpop.xlane.xlu0 %874 }
 0x269   : > { %vm905_vm0 = vcmp.ge.f32.partialorder %v2999_v34, %v875_v46 }
 0x26a   : > { %v3107_v49 = vsel %vm905_vm0, -inf, %v2999_v34 }
 0x26b   : > { %938 = vmax.xlane.f32.xlu1 %v3107_v49  ;;  %942 = vmax.xlane.f32.xlu2 %v3104_v47 }
 0x28e   : > { %v953_v55 = vpop.xlane.xlu1 %952 }
 0x28f   : > { %vm976_vm8 = vcmp.ge.f32.partialorder %v3060_v13, %v953_v55 }
 0x290   : > { %v3134_v12 = vsel %vm976_vm8, -inf, %v3060_v13 }
 0x29e   : > { %v957_v50 = vpop.xlane.xlu2 %956 }
 0x29f   : > { %vm978_vm1 = vcmp.ge.f32.partialorder %v930_v15, %v957_v50 }
 0x2a0   : > { %v3111_v51 = vsel %vm978_vm1, -inf, %v930_v15 }
 0x2a1   : > { %1020 = vmax.xlane.f32.xlu0 %v3111_v51 }
 0x2a6   : > { %v959_v53 = vpop.xlane.xlu0 %958 }
 0x2a7   : > { %vm979_vm2 = vcmp.ge.f32.partialorder %v931_v18, %v959_v53 }
 0x2a8   : > { %v3114_v54 = vsel %vm979_vm2, -inf, %v931_v18 }
 0x2a9   : > { %1022 = vmax.xlane.f32.xlu1 %v3114_v54 }
 0x2ae   : > { %v961_v57 = vpop.xlane.xlu0 %960 }
 0x2af   : > { %vm980_vm3 = vcmp.ge.f32.partialorder %v932_v20, %v961_v57 }
 0x2b0   : > { %v3117_v59 = vsel %vm980_vm3, -inf, %v932_v20 }
 0x2b1   : > { %1024 = vmax.xlane.f32.xlu1 %v3117_v59 }
 0x2b6   : > { %v963_v60 = vpop.xlane.xlu1 %962 }
 0x2b7   : > { %vm981_vm4 = vcmp.ge.f32.partialorder %v933_v22, %v963_v60 }
 0x2b8   : > { %v3120_v61 = vsel %vm981_vm4, -inf, %v933_v22  ;;  %v949_v62 = vpop.xlane.xlu0 %948 }
 0x2b9   : > { %vm974_vm5 = vcmp.ge.f32.partialorder %v926_v24, %v949_v62  ;;  %1026 = vmax.xlane.f32.xlu2 %v3120_v61 }
 0x2ba   : > { %v3123_v63 = vsel %vm974_vm5, -inf, %v926_v24 }
 0x2bb   : > { %1012 = vmax.xlane.f32.xlu1 %v3123_v63 }
 0x2be   : > { %v965_v2 = vpop.xlane.xlu1 %964 }
 0x2bf   : > { %vm982_vm6 = vcmp.ge.f32.partialorder %v934_v26, %v965_v2 }
 0x2c0   : > { %v3126_v5 = vsel %vm982_vm6, -inf, %v934_v26  ;;  %v947_v6 = vpop.xlane.xlu0 %946 }
 0x2c1   : > { %vm973_vm7 = vcmp.ge.f32.partialorder %v925_v28, %v947_v6  ;;  %1028 = vmax.xlane.f32.xlu2 %v3126_v5 }
 0x2c2   : > { %v3129_v7 = vsel %vm973_vm7, -inf, %v925_v28 }
 0x2c3   : > { %1010 = vmax.xlane.f32.xlu1 %v3129_v7 }
 0x2c6   : > { %v967_v8 = vpop.xlane.xlu2 %966 }
 0x2c7   : > { %vm983_vm9 = vcmp.ge.f32.partialorder %v935_v30, %v967_v8 }
 0x2c8   : > { %v3136_v14 = vsel %vm983_vm9, -inf, %v935_v30  ;;  %v937_v15 = vpop.xlane.xlu0 %936 }
 0x2c9   : > { %vm968_vm10 = vcmp.ge.f32.partialorder %v3081_v33, %v937_v15  ;;  %1016 = vmax.xlane.f32.xlu2 %v3134_v12  ;;  %1030 = vmax.xlane.f32.xlu0 %v3136_v14 }
 0x2ca   : > { %v3142_v16 = vsel %vm968_vm10, -inf, %v3081_v33 }
 0x2cb   : > { %1000 = vmax.xlane.f32.xlu1 %v3142_v16 }
 0x2ce   : > { %v951_v17 = vpop.xlane.xlu1 %950  ;;  %v955_v18 = vpop.xlane.xlu2 %954 }
 0x2cf   : > { %vm975_vm11 = vcmp.ge.f32.partialorder %v927_v39, %v951_v17  ;;  %vm977_vm12 = vcmp.ge.f32.partialorder %v3087_v36, %v955_v18 }
 0x2d0   : > { %v3146_v13 = vsel %vm975_vm11, -inf, %v927_v39  ;;  %v3149_v19 = vsel %vm977_vm12, -inf, %v3087_v36 }
 0x2d1   : > { %1014 = vmax.xlane.f32.xlu2 %v3146_v13  ;;  %1018 = vmax.xlane.f32.xlu0 %v3149_v19 }
 0x2d6   : > { %v941_v20 = vpop.xlane.xlu1 %940  ;;  %v945_v21 = vpop.xlane.xlu2 %944 }
 0x2d7   : > { %vm970_vm13 = vcmp.ge.f32.partialorder %v3097_v43, %v941_v20  ;;  %vm972_vm14 = vcmp.ge.f32.partialorder %v3094_v42, %v945_v21 }
 0x2d8   : > { %v3156_v22 = vsel %vm970_vm13, -inf, %v3097_v43  ;;  %v3159_v23 = vsel %vm972_vm14, -inf, %v3094_v42 }
 0x2d9   : > { %1004 = vmax.xlane.f32.xlu2 %v3156_v22  ;;  %1008 = vmax.xlane.f32.xlu0 %v3159_v23 }
 0x2de   : > { %v939_v24 = vpop.xlane.xlu1 %938  ;;  %v943_v25 = vpop.xlane.xlu2 %942 }
 0x2df   : > { %vm969_vm15 = vcmp.ge.f32.partialorder %v3107_v49, %v939_v24  ;;  %vm971_vm0 = vcmp.ge.f32.partialorder %v3104_v47, %v943_v25 }
 0x2e0   : > { %v3166_v26 = vsel %vm969_vm15, -inf, %v3107_v49  ;;  %v3169_v27 = vsel %vm971_vm0, -inf, %v3104_v47 }
 0x2e1   : > { %1002 = vmax.xlane.f32.xlu2 %v3166_v26  ;;  %1006 = vmax.xlane.f32.xlu0 %v3169_v27 }
 0x314   : > { %v1021_v28 = vpop.xlane.xlu0 %1020 }
 0x315   : > { %vm1042_vm1 = vcmp.ge.f32.partialorder %v3111_v51, %v1021_v28 }
 0x316   : > { %v3175_v29 = vsel %vm1042_vm1, -inf, %v3111_v51 }
 0x317   : > { %1084 = vmax.xlane.f32.xlu1 %v3175_v29 }
 0x31c   : > { %v1023_v30 = vpop.xlane.xlu1 %1022 }
 0x31d   : > { %vm1043_vm2 = vcmp.ge.f32.partialorder %v3114_v54, %v1023_v30 }
 0x31e   : > { %v3180_v31 = vsel %vm1043_vm2, -inf, %v3114_v54 }
 0x31f   : > { %1086 = vmax.xlane.f32.xlu2 %v3180_v31 }
 0x324   : > { %v1025_v33 = vpop.xlane.xlu1 %1024 }
 0x325   : > { %vm1044_vm3 = vcmp.ge.f32.partialorder %v3117_v59, %v1025_v33 }
 0x326   : > { %v3185_v35 = vsel %vm1044_vm3, -inf, %v3117_v59 }
 0x327   : > { %1088 = vmax.xlane.f32.xlu2 %v3185_v35 }
 0x32c   : > { %v1027_v36 = vpop.xlane.xlu2 %1026 }
 0x32d   : > { %vm1045_vm4 = vcmp.ge.f32.partialorder %v3120_v61, %v1027_v36 }
 0x32e   : > { %v3190_v37 = vsel %vm1045_vm4, -inf, %v3120_v61  ;;  %v1013_v39 = vpop.xlane.xlu1 %1012 }
 0x32f   : > { %vm1038_vm5 = vcmp.ge.f32.partialorder %v3123_v63, %v1013_v39  ;;  %1090 = vmax.xlane.f32.xlu0 %v3190_v37 }
 0x330   : > { %v3195_v41 = vsel %vm1038_vm5, -inf, %v3123_v63 }
 0x331   : > { %1076 = vmax.xlane.f32.xlu2 %v3195_v41 }
 0x334   : > { %v1029_v42 = vpop.xlane.xlu2 %1028 }
 0x335   : > { %vm1046_vm6 = vcmp.ge.f32.partialorder %v3126_v5, %v1029_v42 }
 0x336   : > { %v3200_v43 = vsel %vm1046_vm6, -inf, %v3126_v5  ;;  %v1011_v45 = vpop.xlane.xlu1 %1010 }
 0x337   : > { %vm1037_vm7 = vcmp.ge.f32.partialorder %v3129_v7, %v1011_v45  ;;  %1092 = vmax.xlane.f32.xlu0 %v3200_v43 }
 0x338   : > { %v3205_v46 = vsel %vm1037_vm7, -inf, %v3129_v7 }
 0x339   : > { %1074 = vmax.xlane.f32.xlu2 %v3205_v46 }
 0x33c   : > { %v1031_v47 = vpop.xlane.xlu0 %1030  ;;  %v1017_v49 = vpop.xlane.xlu2 %1016 }
 0x33d   : > { %vm1047_vm8 = vcmp.ge.f32.partialorder %v3136_v14, %v1031_v47  ;;  %vm1040_vm9 = vcmp.ge.f32.partialorder %v3134_v12, %v1017_v49 }
 0x33e   : > { %v3211_v50 = vsel %vm1047_vm8, -inf, %v3136_v14  ;;  %v3214_v51 = vsel %vm1040_vm9, -inf, %v3134_v12  ;;  %v1001_v53 = vpop.xlane.xlu1 %1000 }
 0x33f   : > { %vm1032_vm10 = vcmp.ge.f32.partialorder %v3142_v16, %v1001_v53  ;;  %1094 = vmax.xlane.f32.xlu1 %v3211_v50  ;;  %1080 = vmax.xlane.f32.xlu0 %v3214_v51 }
 0x340   : > { %v3220_v54 = vsel %vm1032_vm10, -inf, %v3142_v16 }
 0x341   : > { %1064 = vmax.xlane.f32.xlu2 %v3220_v54 }
 0x344   : > { %v1019_v55 = vpop.xlane.xlu0 %1018  ;;  %v1015_v57 = vpop.xlane.xlu2 %1014 }
 0x345   : > { %vm1041_vm11 = vcmp.ge.f32.partialorder %v3149_v19, %v1019_v55  ;;  %vm1039_vm12 = vcmp.ge.f32.partialorder %v3146_v13, %v1015_v57 }
 0x346   : > { %v3226_v59 = vsel %vm1041_vm11, -inf, %v3149_v19  ;;  %v3229_v60 = vsel %vm1039_vm12, -inf, %v3146_v13 }
 0x347   : > { %1082 = vmax.xlane.f32.xlu1 %v3226_v59  ;;  %1078 = vmax.xlane.f32.xlu0 %v3229_v60 }
 0x34c   : > { %v1009_v61 = vpop.xlane.xlu0 %1008  ;;  %v1005_v62 = vpop.xlane.xlu2 %1004 }
 0x34d   : > { %vm1036_vm13 = vcmp.ge.f32.partialorder %v3159_v23, %v1009_v61  ;;  %vm1034_vm14 = vcmp.ge.f32.partialorder %v3156_v22, %v1005_v62 }
 0x34e   : > { %v3236_v63 = vsel %vm1036_vm13, -inf, %v3159_v23  ;;  %v3239_v2 = vsel %vm1034_vm14, -inf, %v3156_v22 }
 0x34f   : > { %1072 = vmax.xlane.f32.xlu1 %v3236_v63  ;;  %1068 = vmax.xlane.f32.xlu0 %v3239_v2 }
 0x354   : > { %v1007_v5 = vpop.xlane.xlu0 %1006  ;;  %v1003_v6 = vpop.xlane.xlu2 %1002 }
 0x355   : > { %vm1035_vm15 = vcmp.ge.f32.partialorder %v3169_v27, %v1007_v5  ;;  %vm1033_vm0 = vcmp.ge.f32.partialorder %v3166_v26, %v1003_v6 }
 0x356   : > { %v3246_v7 = vsel %vm1035_vm15, -inf, %v3169_v27  ;;  %v3249_v8 = vsel %vm1033_vm0, -inf, %v3166_v26 }
 0x357   : > { %1070 = vmax.xlane.f32.xlu1 %v3246_v7  ;;  %1066 = vmax.xlane.f32.xlu0 %v3249_v8 }
 0x38a   : > { %v1085_v12 = vpop.xlane.xlu1 %1084 }
 0x38b   : > { %vm1106_vm1 = vcmp.ge.f32.partialorder %v3175_v29, %v1085_v12 }
 0x38c   : > { %v3255_v14 = vsel %vm1106_vm1, -inf, %v3175_v29 }
 0x38d   : > { %1148 = vmax.xlane.f32.xlu2 %v3255_v14 }
 0x392   : > { %v1087_v15 = vpop.xlane.xlu2 %1086 }
 0x393   : > { %vm1107_vm2 = vcmp.ge.f32.partialorder %v3180_v31, %v1087_v15 }
 0x394   : > { %v3260_v16 = vsel %vm1107_vm2, -inf, %v3180_v31 }
 0x395   : > { %1150 = vmax.xlane.f32.xlu0 %v3260_v16 }
 0x39a   : > { %v1089_v17 = vpop.xlane.xlu2 %1088 }
 0x39b   : > { %vm1108_vm3 = vcmp.ge.f32.partialorder %v3185_v35, %v1089_v17 }
 0x39c   : > { %v3265_v18 = vsel %vm1108_vm3, -inf, %v3185_v35 }
 0x39d   : > { %1152 = vmax.xlane.f32.xlu0 %v3265_v18 }
 0x3a2   : > { %v1091_v13 = vpop.xlane.xlu0 %1090 }
 0x3a3   : > { %vm1109_vm4 = vcmp.ge.f32.partialorder %v3190_v37, %v1091_v13 }
 0x3a4   : > { %v3270_v19 = vsel %vm1109_vm4, -inf, %v3190_v37  ;;  %v1077_v20 = vpop.xlane.xlu2 %1076 }
 0x3a5   : > { %vm1102_vm5 = vcmp.ge.f32.partialorder %v3195_v41, %v1077_v20  ;;  %1154 = vmax.xlane.f32.xlu1 %v3270_v19 }
 0x3a6   : > { %v3275_v21 = vsel %vm1102_vm5, -inf, %v3195_v41 }
 0x3a7   : > { %1140 = vmax.xlane.f32.xlu0 %v3275_v21 }
 0x3aa   : > { %v1093_v22 = vpop.xlane.xlu0 %1092 }
 0x3ab   : > { %vm1110_vm6 = vcmp.ge.f32.partialorder %v3200_v43, %v1093_v22 }
 0x3ac   : > { %v3280_v23 = vsel %vm1110_vm6, -inf, %v3200_v43  ;;  %v1075_v24 = vpop.xlane.xlu2 %1074 }
 0x3ad   : > { %vm1101_vm7 = vcmp.ge.f32.partialorder %v3205_v46, %v1075_v24  ;;  %1156 = vmax.xlane.f32.xlu1 %v3280_v23 }
 0x3ae   : > { %v3285_v25 = vsel %vm1101_vm7, -inf, %v3205_v46 }
 0x3af   : > { %1138 = vmax.xlane.f32.xlu0 %v3285_v25 }
 0x3b2   : > { %v1095_v26 = vpop.xlane.xlu1 %1094  ;;  %v1081_v27 = vpop.xlane.xlu0 %1080 }
 0x3b3   : > { %vm1111_vm8 = vcmp.ge.f32.partialorder %v3211_v50, %v1095_v26  ;;  %vm1104_vm9 = vcmp.ge.f32.partialorder %v3214_v51, %v1081_v27 }
 0x3b4   : > { %v3291_v28 = vsel %vm1111_vm8, -inf, %v3211_v50  ;;  %v3294_v29 = vsel %vm1104_vm9, -inf, %v3214_v51  ;;  %v1065_v30 = vpop.xlane.xlu2 %1064 }
 0x3b5   : > { %vm1096_vm10 = vcmp.ge.f32.partialorder %v3220_v54, %v1065_v30  ;;  %1158 = vmax.xlane.f32.xlu2 %v3291_v28  ;;  %1144 = vmax.xlane.f32.xlu1 %v3294_v29 }
 0x3b6   : > { %v3300_v31 = vsel %vm1096_vm10, -inf, %v3220_v54 }
 0x3b7   : > { %1128 = vmax.xlane.f32.xlu0 %v3300_v31 }
 0x3ba   : > { %v1083_v33 = vpop.xlane.xlu1 %1082  ;;  %v1079_v35 = vpop.xlane.xlu0 %1078 }
 0x3bb   : > { %vm1105_vm11 = vcmp.ge.f32.partialorder %v3226_v59, %v1083_v33  ;;  %vm1103_vm12 = vcmp.ge.f32.partialorder %v3229_v60, %v1079_v35 }
 0x3bc   : > { %v3306_v36 = vsel %vm1105_vm11, -inf, %v3226_v59  ;;  %v3309_v37 = vsel %vm1103_vm12, -inf, %v3229_v60 }
 0x3bd   : > { %1146 = vmax.xlane.f32.xlu2 %v3306_v36  ;;  %1142 = vmax.xlane.f32.xlu1 %v3309_v37 }
 0x3c2   : > { %v1073_v39 = vpop.xlane.xlu1 %1072  ;;  %v1069_v41 = vpop.xlane.xlu0 %1068 }
 0x3c3   : > { %vm1100_vm13 = vcmp.ge.f32.partialorder %v3236_v63, %v1073_v39  ;;  %vm1098_vm14 = vcmp.ge.f32.partialorder %v3239_v2, %v1069_v41 }
 0x3c4   : > { %v3316_v42 = vsel %vm1100_vm13, -inf, %v3236_v63  ;;  %v3319_v43 = vsel %vm1098_vm14, -inf, %v3239_v2 }
 0x3c5   : > { %1136 = vmax.xlane.f32.xlu2 %v3316_v42  ;;  %1132 = vmax.xlane.f32.xlu1 %v3319_v43 }
 0x3ca   : > { %v1071_v45 = vpop.xlane.xlu1 %1070  ;;  %v1067_v46 = vpop.xlane.xlu0 %1066 }
 0x3cb   : > { %vm1099_vm15 = vcmp.ge.f32.partialorder %v3246_v7, %v1071_v45  ;;  %vm1097_vm0 = vcmp.ge.f32.partialorder %v3249_v8, %v1067_v46 }
 0x3cc   : > { %v3326_v47 = vsel %vm1099_vm15, -inf, %v3246_v7  ;;  %v3329_v49 = vsel %vm1097_vm0, -inf, %v3249_v8 }
 0x3cd   : > { %1134 = vmax.xlane.f32.xlu2 %v3326_v47  ;;  %1130 = vmax.xlane.f32.xlu1 %v3329_v49 }
 0x400   : > { %v1149_v50 = vpop.xlane.xlu2 %1148 }
 0x401   : > { %vm1170_vm1 = vcmp.ge.f32.partialorder %v3255_v14, %v1149_v50 }
 0x402   : > { %v3335_v51 = vsel %vm1170_vm1, -inf, %v3255_v14 }
 0x403   : > { %1212 = vmax.xlane.f32.xlu0 %v3335_v51 }
 0x408   : > { %v1151_v53 = vpop.xlane.xlu0 %1150 }
 0x409   : > { %vm1171_vm2 = vcmp.ge.f32.partialorder %v3260_v16, %v1151_v53 }
 0x40a   : > { %v3340_v54 = vsel %vm1171_vm2, -inf, %v3260_v16 }
 0x40b   : > { %1214 = vmax.xlane.f32.xlu1 %v3340_v54 }
 0x410   : > { %v1153_v55 = vpop.xlane.xlu0 %1152 }
 0x411   : > { %vm1172_vm3 = vcmp.ge.f32.partialorder %v3265_v18, %v1153_v55 }
 0x412   : > { %v3345_v57 = vsel %vm1172_vm3, -inf, %v3265_v18 }
 0x413   : > { %1216 = vmax.xlane.f32.xlu1 %v3345_v57 }
 0x418   : > { %v1155_v59 = vpop.xlane.xlu1 %1154 }
 0x419   : > { %vm1173_vm4 = vcmp.ge.f32.partialorder %v3270_v19, %v1155_v59 }
 0x41a   : > { %v3350_v60 = vsel %vm1173_vm4, -inf, %v3270_v19  ;;  %v1141_v61 = vpop.xlane.xlu0 %1140 }
 0x41b   : > { %vm1166_vm5 = vcmp.ge.f32.partialorder %v3275_v21, %v1141_v61  ;;  %1218 = vmax.xlane.f32.xlu2 %v3350_v60 }
 0x41c   : > { %v3355_v62 = vsel %vm1166_vm5, -inf, %v3275_v21 }
 0x41d   : > { %1204 = vmax.xlane.f32.xlu1 %v3355_v62 }
 0x420   : > { %v1157_v63 = vpop.xlane.xlu1 %1156 }
 0x421   : > { %vm1174_vm6 = vcmp.ge.f32.partialorder %v3280_v23, %v1157_v63 }
 0x422   : > { %v3360_v2 = vsel %vm1174_vm6, -inf, %v3280_v23  ;;  %v1139_v5 = vpop.xlane.xlu0 %1138 }
 0x423   : > { %vm1165_vm7 = vcmp.ge.f32.partialorder %v3285_v25, %v1139_v5  ;;  %1220 = vmax.xlane.f32.xlu2 %v3360_v2 }
 0x424   : > { %v3365_v6 = vsel %vm1165_vm7, -inf, %v3285_v25 }
 0x425   : > { %1202 = vmax.xlane.f32.xlu1 %v3365_v6 }
 0x428   : > { %v1145_v7 = vpop.xlane.xlu1 %1144  ;;  %v1159_v8 = vpop.xlane.xlu2 %1158 }
 0x429   : > { %vm1168_vm8 = vcmp.ge.f32.partialorder %v3294_v29, %v1145_v7  ;;  %vm1175_vm9 = vcmp.ge.f32.partialorder %v3291_v28, %v1159_v8 }
 0x42a   : > { %v3371_v12 = vsel %vm1168_vm8, -inf, %v3294_v29  ;;  %v3374_v14 = vsel %vm1175_vm9, -inf, %v3291_v28  ;;  %v1129_v15 = vpop.xlane.xlu0 %1128 }
 0x42b   : > { %vm1160_vm10 = vcmp.ge.f32.partialorder %v3300_v31, %v1129_v15  ;;  %1208 = vmax.xlane.f32.xlu2 %v3371_v12  ;;  %1222 = vmax.xlane.f32.xlu0 %v3374_v14 }
 0x42c   : > { %v3380_v16 = vsel %vm1160_vm10, -inf, %v3300_v31 }
 0x42d   : > { %1192 = vmax.xlane.f32.xlu1 %v3380_v16 }
 0x430   : > { %v1143_v17 = vpop.xlane.xlu1 %1142  ;;  %v1147_v18 = vpop.xlane.xlu2 %1146 }
 0x431   : > { %vm1167_vm11 = vcmp.ge.f32.partialorder %v3309_v37, %v1143_v17  ;;  %vm1169_vm12 = vcmp.ge.f32.partialorder %v3306_v36, %v1147_v18 }
 0x432   : > { %v3386_v13 = vsel %vm1167_vm11, -inf, %v3309_v37  ;;  %v3389_v19 = vsel %vm1169_vm12, -inf, %v3306_v36 }
 0x433   : > { %1206 = vmax.xlane.f32.xlu2 %v3386_v13  ;;  %1210 = vmax.xlane.f32.xlu0 %v3389_v19 }
 0x438   : > { %v1133_v20 = vpop.xlane.xlu1 %1132  ;;  %v1137_v21 = vpop.xlane.xlu2 %1136 }
 0x439   : > { %vm1162_vm13 = vcmp.ge.f32.partialorder %v3319_v43, %v1133_v20  ;;  %vm1164_vm14 = vcmp.ge.f32.partialorder %v3316_v42, %v1137_v21 }
 0x43a   : > { %v3396_v22 = vsel %vm1162_vm13, -inf, %v3319_v43  ;;  %v3399_v23 = vsel %vm1164_vm14, -inf, %v3316_v42 }
 0x43b   : > { %1196 = vmax.xlane.f32.xlu2 %v3396_v22  ;;  %1200 = vmax.xlane.f32.xlu0 %v3399_v23 }
 0x440   : > { %v1131_v24 = vpop.xlane.xlu1 %1130  ;;  %v1135_v25 = vpop.xlane.xlu2 %1134 }
 0x441   : > { %vm1161_vm15 = vcmp.ge.f32.partialorder %v3329_v49, %v1131_v24  ;;  %vm1163_vm0 = vcmp.ge.f32.partialorder %v3326_v47, %v1135_v25 }
 0x442   : > { %v3406_v26 = vsel %vm1161_vm15, -inf, %v3329_v49  ;;  %v3409_v27 = vsel %vm1163_vm0, -inf, %v3326_v47 }
 0x443   : > { %1194 = vmax.xlane.f32.xlu2 %v3406_v26  ;;  %1198 = vmax.xlane.f32.xlu0 %v3409_v27 }
 0x476   : > { %v1213_v28 = vpop.xlane.xlu0 %1212 }
 0x477   : > { %vm1234_vm1 = vcmp.ge.f32.partialorder %v3335_v51, %v1213_v28 }
 0x478   : > { %v3415_v29 = vsel %vm1234_vm1, -inf, %v3335_v51 }
 0x479   : > { %1276 = vmax.xlane.f32.xlu1 %v3415_v29 }
 0x47e   : > { %v1215_v30 = vpop.xlane.xlu1 %1214 }
 0x47f   : > { %vm1235_vm2 = vcmp.ge.f32.partialorder %v3340_v54, %v1215_v30 }
 0x480   : > { %v3420_v31 = vsel %vm1235_vm2, -inf, %v3340_v54 }
 0x481   : > { %1278 = vmax.xlane.f32.xlu2 %v3420_v31 }
 0x486   : > { %v1217_v33 = vpop.xlane.xlu1 %1216 }
 0x487   : > { %vm1236_vm3 = vcmp.ge.f32.partialorder %v3345_v57, %v1217_v33 }
 0x488   : > { %v3425_v35 = vsel %vm1236_vm3, -inf, %v3345_v57 }
 0x489   : > { %1280 = vmax.xlane.f32.xlu2 %v3425_v35 }
 0x48e   : > { %v1219_v36 = vpop.xlane.xlu2 %1218 }
 0x48f   : > { %vm1237_vm4 = vcmp.ge.f32.partialorder %v3350_v60, %v1219_v36 }
 0x490   : > { %v3430_v37 = vsel %vm1237_vm4, -inf, %v3350_v60  ;;  %v1205_v39 = vpop.xlane.xlu1 %1204 }
 0x491   : > { %vm1230_vm5 = vcmp.ge.f32.partialorder %v3355_v62, %v1205_v39  ;;  %1282 = vmax.xlane.f32.xlu0 %v3430_v37 }
 0x492   : > { %v3435_v41 = vsel %vm1230_vm5, -inf, %v3355_v62 }
 0x493   : > { %1268 = vmax.xlane.f32.xlu2 %v3435_v41 }
 0x496   : > { %v1221_v42 = vpop.xlane.xlu2 %1220 }
 0x497   : > { %vm1238_vm6 = vcmp.ge.f32.partialorder %v3360_v2, %v1221_v42 }
 0x498   : > { %v3440_v43 = vsel %vm1238_vm6, -inf, %v3360_v2  ;;  %v1203_v45 = vpop.xlane.xlu1 %1202 }
 0x499   : > { %vm1229_vm7 = vcmp.ge.f32.partialorder %v3365_v6, %v1203_v45  ;;  %1284 = vmax.xlane.f32.xlu0 %v3440_v43 }
 0x49a   : > { %v3445_v46 = vsel %vm1229_vm7, -inf, %v3365_v6 }
 0x49b   : > { %1266 = vmax.xlane.f32.xlu2 %v3445_v46 }
 0x49e   : > { %v1223_v47 = vpop.xlane.xlu0 %1222  ;;  %v1209_v49 = vpop.xlane.xlu2 %1208 }
 0x49f   : > { %vm1239_vm8 = vcmp.ge.f32.partialorder %v3374_v14, %v1223_v47  ;;  %vm1232_vm9 = vcmp.ge.f32.partialorder %v3371_v12, %v1209_v49 }
 0x4a0   : > { %v3451_v50 = vsel %vm1239_vm8, -inf, %v3374_v14  ;;  %v3454_v51 = vsel %vm1232_vm9, -inf, %v3371_v12  ;;  %v1193_v53 = vpop.xlane.xlu1 %1192 }
 0x4a1   : > { %vm1224_vm10 = vcmp.ge.f32.partialorder %v3380_v16, %v1193_v53  ;;  %1286 = vmax.xlane.f32.xlu1 %v3451_v50  ;;  %1272 = vmax.xlane.f32.xlu0 %v3454_v51 }
 0x4a2   : > { %v3460_v54 = vsel %vm1224_vm10, -inf, %v3380_v16 }
 0x4a3   : > { %1256 = vmax.xlane.f32.xlu2 %v3460_v54 }
 0x4a6   : > { %v1211_v55 = vpop.xlane.xlu0 %1210  ;;  %v1207_v57 = vpop.xlane.xlu2 %1206 }
 0x4a7   : > { %vm1233_vm11 = vcmp.ge.f32.partialorder %v3389_v19, %v1211_v55  ;;  %vm1231_vm12 = vcmp.ge.f32.partialorder %v3386_v13, %v1207_v57 }
 0x4a8   : > { %v3466_v59 = vsel %vm1233_vm11, -inf, %v3389_v19  ;;  %v3469_v60 = vsel %vm1231_vm12, -inf, %v3386_v13 }
 0x4a9   : > { %1274 = vmax.xlane.f32.xlu1 %v3466_v59  ;;  %1270 = vmax.xlane.f32.xlu0 %v3469_v60 }
 0x4ae   : > { %v1201_v61 = vpop.xlane.xlu0 %1200  ;;  %v1197_v62 = vpop.xlane.xlu2 %1196 }
 0x4af   : > { %vm1228_vm13 = vcmp.ge.f32.partialorder %v3399_v23, %v1201_v61  ;;  %vm1226_vm14 = vcmp.ge.f32.partialorder %v3396_v22, %v1197_v62  ;;  %v2108_v61 = vpack.c.bf16 %v3021_v56, %v3017_v52 }
 0x4b0   : > { %v3476_v63 = vsel %vm1228_vm13, -inf, %v3399_v23  ;;  %v3479_v2 = vsel %vm1226_vm14, -inf, %v3396_v22 }
 0x4b1   : > { %1264 = vmax.xlane.f32.xlu1 %v3476_v63  ;;  %1260 = vmax.xlane.f32.xlu0 %v3479_v2 }
 0x4b6   : > { %v1199_v5 = vpop.xlane.xlu0 %1198  ;;  %v1195_v6 = vpop.xlane.xlu2 %1194 }
 0x4b7   : > { %vm1227_vm15 = vcmp.ge.f32.partialorder %v3409_v27, %v1199_v5  ;;  %vm1225_vm0 = vcmp.ge.f32.partialorder %v3406_v26, %v1195_v6  ;;  %v2235_v6 = vld [vmem:[#allocation11 + $0x20] sm:$0xff] }
 0x4b8   : > { %v3486_v7 = vsel %vm1227_vm15, -inf, %v3409_v27  ;;  %v3489_v8 = vsel %vm1225_vm0, -inf, %v3406_v26 }
 0x4b9   : > { %1262 = vmax.xlane.f32.xlu1 %v3486_v7  ;;  %1258 = vmax.xlane.f32.xlu0 %v3489_v8 }
 0x4ec   : > { %v1277_v12 = vpop.xlane.xlu1 %1276 }
 0x4ed   : > { %vm1298_vm1 = vcmp.ge.f32.partialorder %v3415_v29, %v1277_v12  ;;  %v2234_v12 = vld [vmem:[#allocation11 + $0x18] sm:$0xff] }
 0x4ee   : > { %v1314_v14 = vsel %vm1298_vm1, -inf, %v3415_v29 }
 0x4ef   : > { %1340 = vmax.xlane.f32.xlu2 %v1314_v14  ;;  %v2238_v14 = vld [vmem:[#allocation11 + $0x38] sm:$0xff] }
 0x4f4   : > { %v1279_v15 = vpop.xlane.xlu2 %1278 }
 0x4f5   : > { %vm1299_vm2 = vcmp.ge.f32.partialorder %v3420_v31, %v1279_v15 }
 0x4f6   : > { %v1315_v16 = vsel %vm1299_vm2, -inf, %v3420_v31 }
 0x4f7   : > { %1342 = vmax.xlane.f32.xlu0 %v1315_v16 }
 0x4fc   : > { %v1281_v17 = vpop.xlane.xlu2 %1280 }
 0x4fd   : > { %vm1300_vm3 = vcmp.ge.f32.partialorder %v3425_v35, %v1281_v17 }
 0x4fe   : > { %v1316_v18 = vsel %vm1300_vm3, -inf, %v3425_v35 }
 0x4ff   : > { %1344 = vmax.xlane.f32.xlu0 %v1316_v18 }
 0x504   : > { %v1283_v13 = vpop.xlane.xlu0 %1282 }
 0x505   : > { %vm1301_vm4 = vcmp.ge.f32.partialorder %v3430_v37, %v1283_v13 }
 0x506   : > { %v1269_v19 = vpop.xlane.xlu2 %1268  ;;  %v1317_v20 = vsel %vm1301_vm4, -inf, %v3430_v37 }
 0x507   : > { %vm1294_vm5 = vcmp.ge.f32.partialorder %v3435_v41, %v1269_v19  ;;  %1346 = vmax.xlane.f32.xlu1 %v1317_v20 }
 0x508   : > { %v1310_v21 = vsel %vm1294_vm5, -inf, %v3435_v41 }
 0x509   : > { %1332 = vmax.xlane.f32.xlu0 %v1310_v21 }
 0x50c   : > { %v1285_v22 = vpop.xlane.xlu0 %1284 }
 0x50d   : > { %vm1302_vm6 = vcmp.ge.f32.partialorder %v3440_v43, %v1285_v22 }
 0x50e   : > { %v1267_v23 = vpop.xlane.xlu2 %1266  ;;  %v1318_v24 = vsel %vm1302_vm6, -inf, %v3440_v43 }
 0x50f   : > { %vm1293_vm7 = vcmp.ge.f32.partialorder %v3445_v46, %v1267_v23  ;;  %1348 = vmax.xlane.f32.xlu1 %v1318_v24 }
 0x510   : > { %v1309_v25 = vsel %vm1293_vm7, -inf, %v3445_v46 }
 0x511   : > { %1330 = vmax.xlane.f32.xlu0 %v1309_v25 }
 0x514   : > { %v1287_v26 = vpop.xlane.xlu1 %1286  ;;  %v1273_v27 = vpop.xlane.xlu0 %1272 }
 0x515   : > { %vm1303_vm8 = vcmp.ge.f32.partialorder %v3451_v50, %v1287_v26  ;;  %vm1296_vm9 = vcmp.ge.f32.partialorder %v3454_v51, %v1273_v27 }
 0x516   : > { %v1257_v28 = vpop.xlane.xlu2 %1256  ;;  %v1319_v29 = vsel %vm1303_vm8, -inf, %v3451_v50  ;;  %v1312_v30 = vsel %vm1296_vm9, -inf, %v3454_v51 }
 0x517   : > { %vm1288_vm10 = vcmp.ge.f32.partialorder %v3460_v54, %v1257_v28  ;;  %1350 = vmax.xlane.f32.xlu2 %v1319_v29  ;;  %1336 = vmax.xlane.f32.xlu1 %v1312_v30 }
 0x518   : > { %v1304_v31 = vsel %vm1288_vm10, -inf, %v3460_v54 }
 0x519   : > { %1320 = vmax.xlane.f32.xlu0 %v1304_v31 }
 0x51c   : > { %v1275_v33 = vpop.xlane.xlu1 %1274  ;;  %v1271_v35 = vpop.xlane.xlu0 %1270 }
 0x51d   : > { %vm1297_vm11 = vcmp.ge.f32.partialorder %v3466_v59, %v1275_v33  ;;  %vm1295_vm12 = vcmp.ge.f32.partialorder %v3469_v60, %v1271_v35 }
 0x51e   : > { %v1313_v36 = vsel %vm1297_vm11, -inf, %v3466_v59  ;;  %v1311_v37 = vsel %vm1295_vm12, -inf, %v3469_v60  ;;  %v2105_v60 = vpack.c.bf16 %v3047_v10, %v3032_v1 }
 0x51f   : > { %1338 = vmax.xlane.f32.xlu2 %v1313_v36  ;;  %1334 = vmax.xlane.f32.xlu1 %v1311_v37 }
 0x524   : > { %v1265_v39 = vpop.xlane.xlu1 %1264  ;;  %v1261_v41 = vpop.xlane.xlu0 %1260 }
 0x525   : > { %vm1292_vm13 = vcmp.ge.f32.partialorder %v3476_v63, %v1265_v39  ;;  %vm1290_vm14 = vcmp.ge.f32.partialorder %v3479_v2, %v1261_v41  ;;  %v2255_v39 = vld [vmem:[#allocation10 + $0x38] sm:$0xff] (%p1604_p1)  ;;  %v2254_v41 = vld [vmem:[#allocation10 + $0x30] sm:$0xff] (%p1604_p1) }
 0x526   : > { %v1308_v42 = vsel %vm1292_vm13, -inf, %v3476_v63  ;;  %v1306_v43 = vsel %vm1290_vm14, -inf, %v3479_v2  ;;  %1741 = vmatpush.bf16.msra.mxu0 (%p1604_p1), %v2255_v39  ;;  %2391 = vmatpush.bf16.msra.mxu2 (%p1604_p1), %v2255_v39 }
 0x527   : > { %1328 = vmax.xlane.f32.xlu2 %v1308_v42  ;;  %1324 = vmax.xlane.f32.xlu1 %v1306_v43  ;;  %v2253_v42 = vld [vmem:[#allocation10 + $0x28] sm:$0xff] (%p1604_p1)  ;;  %v2252_v43 = vld [vmem:[#allocation10 + $0x20] sm:$0xff] (%p1604_p1) }
 0x52a   : > { %1742 = vmatpush.bf16.msra.mxu0 (%p1604_p1), %v2254_v41  ;;  %2394 = vmatpush.bf16.msra.mxu2 (%p1604_p1), %v2254_v41 }
 0x52c   : > { %v1263_v45 = vpop.xlane.xlu1 %1262  ;;  %v1259_v46 = vpop.xlane.xlu0 %1258 }
 0x52d   : > { %vm1291_vm15 = vcmp.ge.f32.partialorder %v3486_v7, %v1263_v45  ;;  %vm1289_vm0 = vcmp.ge.f32.partialorder %v3489_v8, %v1259_v46  ;;  %v2251_v45 = vld [vmem:[#allocation10 + $0x18] sm:$0xff] (%p1604_p1)  ;;  %v2250_v46 = vld [vmem:[#allocation10 + $0x10] sm:$0xff] (%p1604_p1) }
 0x52e   : > { %v1307_v47 = vsel %vm1291_vm15, -inf, %v3486_v7  ;;  %v1305_v49 = vsel %vm1289_vm0, -inf, %v3489_v8  ;;  %v2233_v7 = vld [vmem:[#allocation11 + $0x10] sm:$0xff]  ;;  %1743 = vmatpush.bf16.msra.mxu0 (%p1604_p1), %v2253_v42  ;;  %2397 = vmatpush.bf16.msra.mxu2 (%p1604_p1), %v2253_v42 }
 0x52f   : > { %1326 = vmax.xlane.f32.xlu2 %v1307_v47  ;;  %1322 = vmax.xlane.f32.xlu1 %v1305_v49  ;;  %v2237_v8 = vld [vmem:[#allocation11 + $0x30] sm:$0xff]  ;;  %v2249_v47 = vld [vmem:[#allocation10 + $0x8] sm:$0xff] (%p1604_p1)  ;;  %v2248_v49 = vld [vmem:[#allocation10] sm:$0xff] (%p1604_p1) }
 0x532   : > { %1744 = vmatpush.bf16.msra.mxu0 (%p1604_p1), %v2252_v43  ;;  %2400 = vmatpush.bf16.msra.mxu2 (%p1604_p1), %v2252_v43 }
 0x536   : > { %1745 = vmatpush.bf16.msra.mxu0 (%p1604_p1), %v2251_v45  ;;  %2403 = vmatpush.bf16.msra.mxu2 (%p1604_p1), %v2251_v45 }
 0x53a   : > { %1746 = vmatpush.bf16.msra.mxu0 (%p1604_p1), %v2250_v46  ;;  %2406 = vmatpush.bf16.msra.mxu2 (%p1604_p1), %v2250_v46 }
 0x53e   : > { %1747 = vmatpush.bf16.msra.mxu0 (%p1604_p1), %v2249_v47  ;;  %2409 = vmatpush.bf16.msra.mxu2 (%p1604_p1), %v2249_v47 }
 0x542   : > { %1748 = vmatpush.bf16.msra.mxu0 (%p1604_p1), %v2248_v49  ;;  %2412 = vmatpush.bf16.msra.mxu2 (%p1604_p1), %v2248_v49 }
 0x562   : > { %v1341_v53 = vpop.xlane.xlu2 %1340 }
 0x563   : > { %vm1362_vm8 = vcmp.ge.f32.partialorder %v3009_v44, %v1341_v53 }
 0x56a   : > { %v1343_v51 = vpop.xlane.xlu0 %1342 }
 0x56b   : > { %vm1363_vm7 = vcmp.ge.f32.partialorder %v3013_v48, %v1343_v51 }
 0x56c   : > { %vm2110_vm9 = vmpackc.low %vm1363_vm7, %vm1362_vm8 }
 0x572   : > { %v1345_v55 = vpop.xlane.xlu0 %1344 }
 0x573   : > { %vm1364_vm5 = vcmp.ge.f32.partialorder %v3017_v52, %v1345_v55  ;;  %v2114_v52 = vpack.c.bf16 %v3002_v38, %v2995_v32 }
 0x57a   : > { %v1347_v50 = vpop.xlane.xlu1 %1346 }
 0x57b   : > { %vm1365_vm4 = vcmp.ge.f32.partialorder %v3021_v56, %v1347_v50 }
 0x57c   : > { %vm2107_vm6 = vmpackc.low %vm1365_vm4, %vm1364_vm5  ;;  %v1333_v62 = vpop.xlane.xlu0 %1332 }
 0x57d   : > { %vm1358_vm14 = vcmp.ge.f32.partialorder %v3025_v58, %v1333_v62 }
 0x582   : > { %v1349_v54 = vpop.xlane.xlu1 %1348 }
 0x583   : > { %vm1366_vm1 = vcmp.ge.f32.partialorder %v3032_v1, %v1349_v54  ;;  %v2111_v1 = vpack.c.bf16 %v3013_v48, %v3009_v44  ;;  %v2117_v48 = vpack.c.bf16 %v3040_v4, %v3025_v58  ;;  %v2123_v58 = vpack.c.bf16 %v3044_v9, %v3006_v40 }
 0x584   : > { %v1331_v44 = vpop.xlane.xlu0 %1330 }
 0x58a   : > { %v1337_v57 = vpop.xlane.xlu1 %1336  ;;  %v1351_v59 = vpop.xlane.xlu2 %1350 }
 0x58b   : > { %vm1367_vm2 = vcmp.ge.f32.partialorder %v3047_v10, %v1351_v59  ;;  %vm1360_vm11 = vcmp.ge.f32.partialorder %v2995_v32, %v1337_v57  ;;  %v2120_v32 = vpack.c.bf16 %v3037_v3, %v3029_v0 }
 0x58c   : > { %vm2104_vm3 = vmpackc.low %vm1367_vm2, %vm1366_vm1  ;;  %vm1357_vm1 = vcmp.ge.f32.partialorder %v3037_v3, %v1331_v44  ;;  %v2231_v3 = vld [vmem:[#allocation11] sm:$0xff] }
 0x58d   : > { %2106 = vmatpush.bf16.msk.msra.mxu1 %vm2104_vm3, %v2105_v60  ;;  %2382 = vmatpush.bf16.msk.msra.mxu3 %vm2104_vm3, %v2105_v60 }
 0x591   : > { %2109 = vmatpush.bf16.msk.msra.mxu1 %vm2107_vm6, %v2108_v61  ;;  %2383 = vmatpush.bf16.msk.msra.mxu3 %vm2107_vm6, %v2108_v61  ;;  %v2523_v61 = vld [vmem:[%s3591_s6] ss:$0 sm:$0xff] (%p1604_p1) }
 0x592   : > { %v1335_v63 = vpop.xlane.xlu1 %1334  ;;  %v1339_v2 = vpop.xlane.xlu2 %1338 }
 0x593   : > { %vm1361_vm10 = vcmp.ge.f32.partialorder %v3002_v38, %v1339_v2  ;;  %vm1359_vm13 = vcmp.ge.f32.partialorder %v3040_v4, %v1335_v63  ;;  %v1321_v4 = vpop.xlane.xlu0 %1320 }
 0x594   : > { %vm2113_vm12 = vmpackc.low %vm1361_vm10, %vm1360_vm11  ;;  %vm1352_vm7 = vcmp.ge.f32.partialorder %v3052_v11, %v1321_v4 }
 0x595   : > { %2112 = vmatpush.bf16.msk.msra.mxu1 %vm2110_vm9, %v2111_v1  ;;  %2384 = vmatpush.bf16.msk.msra.mxu3 %vm2110_vm9, %v2111_v1  ;;  %vm2116_vm15 = vmpackc.low %vm1359_vm13, %vm1358_vm14 }
 0x599   : > { %2115 = vmatpush.bf16.msk.msra.mxu1 %vm2113_vm12, %v2114_v52  ;;  %2385 = vmatpush.bf16.msk.msra.mxu3 %vm2113_vm12, %v2114_v52 }
 0x59a   : > { %v1325_v56 = vpop.xlane.xlu1 %1324  ;;  %v1329_v10 = vpop.xlane.xlu2 %1328 }
 0x59b   : > { %vm1356_vm0 = vcmp.ge.f32.partialorder %v3029_v0, %v1329_v10  ;;  %vm1354_vm4 = vcmp.ge.f32.partialorder %v3006_v40, %v1325_v56  ;;  %v2126_v0 = vpack.c.bf16 %v2999_v34, %v3052_v11  ;;  %v2232_v40 = vld [vmem:[#allocation11 + $0x8] sm:$0xff] }
 0x59c   : > { %vm2119_vm2 = vmpackc.low %vm1357_vm1, %vm1356_vm0 }
 0x59d   : > { %2118 = vmatpush.bf16.msk.msra.mxu1 %vm2116_vm15, %v2117_v48  ;;  %2386 = vmatpush.bf16.msk.msra.mxu3 %vm2116_vm15, %v2117_v48 }
 0x5a1   : > { %2121 = vmatpush.bf16.msk.msra.mxu1 %vm2119_vm2, %v2120_v32  ;;  %2387 = vmatpush.bf16.msk.msra.mxu3 %vm2119_vm2, %v2120_v32 }
 0x5a2   : > { %v1327_v38 = vpop.xlane.xlu2 %1326  ;;  %v1323_v5 = vpop.xlane.xlu1 %1322 }
 0x5a3   : > { %vm1355_vm3 = vcmp.ge.f32.partialorder %v3044_v9, %v1327_v38  ;;  %vm1353_vm6 = vcmp.ge.f32.partialorder %v2999_v34, %v1323_v5  ;;  %v2236_v9 = vld [vmem:[#allocation11 + $0x28] sm:$0xff] }
 0x5a4   : > { %vm2122_vm5 = vmpackc.low %vm1355_vm3, %vm1354_vm4 }
 0x5a5   : > { %2124 = vmatpush.bf16.msk.msra.mxu1 %vm2122_vm5, %v2123_v58  ;;  %2388 = vmatpush.bf16.msk.msra.mxu3 %vm2122_vm5, %v2123_v58  ;;  %vm2125_vm8 = vmpackc.low %vm1353_vm6, %vm1352_vm7 }
 0x5a9   : > { %2127 = vmatpush.bf16.msk.msra.mxu1 %vm2125_vm8, %v2126_v0  ;;  %2389 = vmatpush.bf16.msk.msra.mxu3 %vm2125_vm8, %v2126_v0 }
 0x5ac   : > { %1480 = vmatmul.bf16.vlgmr.msra.gmra.mxu1 %v2231_v3  ;;  %1500 = vmatmul.bf16.vlgmr.msra.gmra.mxu3 %v2235_v6 }
 0x5ad   : > { %2390 = vmatpush.bf16.msra.mxu1 (%p1604_p1), %v2255_v39  ;;  %2392 = vmatpush.bf16.msra.mxu3 (%p1604_p1), %v2255_v39 }
 0x5b1   : > { %2393 = vmatpush.bf16.msra.mxu1 (%p1604_p1), %v2254_v41  ;;  %2395 = vmatpush.bf16.msra.mxu3 (%p1604_p1), %v2254_v41 }
 0x5b5   : > { %2396 = vmatpush.bf16.msra.mxu1 (%p1604_p1), %v2253_v42  ;;  %2398 = vmatpush.bf16.msra.mxu3 (%p1604_p1), %v2253_v42 }
 0x5b9   : > { %2399 = vmatpush.bf16.msra.mxu1 (%p1604_p1), %v2252_v43  ;;  %2401 = vmatpush.bf16.msra.mxu3 (%p1604_p1), %v2252_v43 }
 0x5bc   : > { %1485 = vmatmul.bf16.gmra.mxu1 %v2232_v40  ;;  %1505 = vmatmul.bf16.gmra.mxu3 %v2236_v9 }
 0x5bd   : > { %2402 = vmatpush.bf16.msra.mxu1 (%p1604_p1), %v2251_v45  ;;  %2404 = vmatpush.bf16.msra.mxu3 (%p1604_p1), %v2251_v45 }
 0x5c1   : > { %2405 = vmatpush.bf16.msra.mxu1 (%p1604_p1), %v2250_v46  ;;  %2407 = vmatpush.bf16.msra.mxu3 (%p1604_p1), %v2250_v46 }
 0x5c5   : > { %2408 = vmatpush.bf16.msra.mxu1 (%p1604_p1), %v2249_v47  ;;  %2410 = vmatpush.bf16.msra.mxu3 (%p1604_p1), %v2249_v47 }
 0x5c9   : > { %2411 = vmatpush.bf16.msra.mxu1 (%p1604_p1), %v2248_v49  ;;  %2413 = vmatpush.bf16.msra.mxu3 (%p1604_p1), %v2248_v49 }
 0x5cc   : > { %1490 = vmatmul.bf16.gmra.mxu1 %v2233_v7  ;;  %1510 = vmatmul.bf16.gmra.mxu3 %v2237_v8 }
 0x5dc   : > { %1495 = vmatmul.bf16.gmra.mxu1 %v2234_v12  ;;  %1515 = vmatmul.bf16.gmra.mxu3 %v2238_v14 }
 0x629   : > { %v1481_v34 = vpop.f32.mrf.mxu1 }
 0x62f   : > { %v1501_v11 = vpop.f32.mrf.mxu3 }
 0x631   : > { %v1483_v15 = vpop.f32.mrf.mxu1 }
 0x632   : > { %v2299_v16 = vpack.c.bf16 %v1483_v15, %v1481_v34 }
 0x634   : > { %2300 = vst [vmem:[#allocation2 + $0x30] sm:$0xff] %v2299_v16  }
 0x637   : > { %v1503_v17 = vpop.f32.mrf.mxu3 }
 0x638   : > { %v2319_v18 = vpack.c.bf16 %v1503_v17, %v1501_v11 }
 0x639   : > { %v1486_v13 = vpop.f32.mrf.mxu1 }
 0x63a   : > { %2346 = vst [vmem:[#allocation2 + $0x8] sm:$0xff] %v2319_v18  }
 0x63b   : > { %v2240_v50 = vld [vmem:[#allocation2 + $0x30] sm:$0xff] (%p1604_p1) }
 0x63c   : > { %1749 = vmatmul.bf16.vlgmr.msra.gmra.mxu0 (%p1604_p1), %v2240_v50 }
 0x63f   : > { %v1506_v19 = vpop.f32.mrf.mxu3 }
 0x641   : > { %v1488_v20 = vpop.f32.mrf.mxu1  ;;  %v2244_v53 = vld [vmem:[#allocation2 + $0x8] sm:$0xff] (%p1604_p1) }
 0x642   : > { %v2304_v21 = vpack.c.bf16 %v1488_v20, %v1486_v13  ;;  %1769 = vmatmul.bf16.vlgmr.msra.gmra.mxu2 (%p1604_p1), %v2244_v53 }
 0x644   : > { %2343 = vst [vmem:[#allocation2] sm:$0xff] %v2304_v21  }
 0x647   : > { %v1508_v22 = vpop.f32.mrf.mxu3 }
 0x648   : > { %v2324_v23 = vpack.c.bf16 %v1508_v22, %v1506_v19 }
 0x649   : > { %v1491_v24 = vpop.f32.mrf.mxu1 }
 0x64a   : > { %2347 = vst [vmem:[#allocation2 + $0x20] sm:$0xff] %v2324_v23  }
 0x64b   : > { %v2241_v55 = vld [vmem:[#allocation2] sm:$0xff] (%p1604_p1) }
 0x64c   : > { %1754 = vmatmul.bf16.gmra.mxu0 (%p1604_p1), %v2241_v55 }
 0x64f   : > { %v1511_v25 = vpop.f32.mrf.mxu3 }
 0x651   : > { %v1493_v26 = vpop.f32.mrf.mxu1  ;;  %v2245_v59 = vld [vmem:[#allocation2 + $0x20] sm:$0xff] (%p1604_p1) }
 0x652   : > { %v2309_v27 = vpack.c.bf16 %v1493_v26, %v1491_v24  ;;  %1774 = vmatmul.bf16.gmra.mxu2 (%p1604_p1), %v2245_v59 }
 0x654   : > { %2344 = vst [vmem:[#allocation2 + $0x18] sm:$0xff] %v2309_v27  }
 0x657   : > { %v1513_v28 = vpop.f32.mrf.mxu3 }
 0x658   : > { %v2329_v29 = vpack.c.bf16 %v1513_v28, %v1511_v25 }
 0x659   : > { %v1496_v30 = vpop.f32.mrf.mxu1 }
 0x65a   : > { %2348 = vst [vmem:[#allocation2 + $0x28] sm:$0xff] %v2329_v29  }
 0x65b   : > { %v2242_v51 = vld [vmem:[#allocation2 + $0x18] sm:$0xff] (%p1604_p1) }
 0x65c   : > { %1759 = vmatmul.bf16.vlgmr.msra.gmra.mxu1 (%p1604_p1), %v2242_v51 }
 0x65f   : > { %v1516_v31 = vpop.f32.mrf.mxu3 }
 0x661   : > { %v1498_v33 = vpop.f32.mrf.mxu1  ;;  %v2246_v54 = vld [vmem:[#allocation2 + $0x28] sm:$0xff] (%p1604_p1) }
 0x662   : > { %v2314_v35 = vpack.c.bf16 %v1498_v33, %v1496_v30  ;;  %1779 = vmatmul.bf16.vlgmr.msra.gmra.mxu3 (%p1604_p1), %v2246_v54 }
 0x664   : > { %2345 = vst [vmem:[#allocation2 + $0x10] sm:$0xff] %v2314_v35  }
 0x666   : > { %1608 = sbr.rel (!%p1604_p1) target bundleno = 1793 (0x701), region = 88 }
 0x667   : > { %v1518_v36 = vpop.f32.mrf.mxu3 }
 0x668   : > { %v2334_v37 = vpack.c.bf16 %v1518_v36, %v1516_v31 }
 0x66a   : > { %2349 = vst [vmem:[#allocation2 + $0x38] sm:$0xff] %v2334_v37  }
 0x66b   : > { %v2243_v57 = vld [vmem:[#allocation2 + $0x10] sm:$0xff] }
 0x66c   : > { %1764 = vmatmul.bf16.gmra.mxu1 %v2243_v57 }
 0x671   : > { %v2247_v60 = vld [vmem:[#allocation2 + $0x38] sm:$0xff] }
 0x672   : > { %1784 = vmatmul.bf16.gmra.mxu3 %v2247_v60 }
 0x6b9   : > { %v1750_v62 = vpop.f32.mrf.mxu0 }
 0x6ba   : > { %v1751_v2 = vadd.f32 %v2523_v61, %v1750_v62 }
 0x6bc   : > { %1790 = vst [vmem:[#allocation13] sm:$0xff] %v1751_v2 }
 0x6c1   : > { %v1752_v48 = vpop.f32.mrf.mxu0 }
 0x6c2   : > { %v1753_v38 = vadd.f32 %v2523_v61, %v1752_v48 }
 0x6c4   : > { %1791 = vst [vmem:[#allocation13 + $0x8] sm:$0xff] %v1753_v38 }
 0x6c5   : > { %v1770_v52 = vpop.f32.mrf.mxu2 }
 0x6c6   : > { %v1771_v10 = vadd.f32 %v2523_v61, %v1770_v52 }
 0x6c8   : > { %1798 = vst [vmem:[#allocation13 + $0x40] sm:$0xff] %v1771_v10 }
 0x6c9   : > { %v1755_v6 = vpop.f32.mrf.mxu0 }
 0x6ca   : > { %v1756_v9 = vadd.f32 %v2523_v61, %v1755_v6 }
 0x6cc   : > { %1792 = vst [vmem:[#allocation13 + $0x10] sm:$0xff] %v1756_v9 }
 0x6cd   : > { %v1772_v58 = vpop.f32.mrf.mxu2 }
 0x6ce   : > { %v1773_v0 = vadd.f32 %v2523_v61, %v1772_v58 }
 0x6d0   : > { %1799 = vst [vmem:[#allocation13 + $0x48] sm:$0xff] %v1773_v0 }
 0x6d1   : > { %v1757_v11 = vpop.f32.mrf.mxu0 }
 0x6d2   : > { %v1758_v16 = vadd.f32 %v2523_v61, %v1757_v11 }
 0x6d4   : > { %1793 = vst [vmem:[#allocation13 + $0x18] sm:$0xff] %v1758_v16 }
 0x6d5   : > { %v1775_v8 = vpop.f32.mrf.mxu2 }
 0x6d6   : > { %v1776_v14 = vadd.f32 %v2523_v61, %v1775_v8 }
 0x6d8   : > { %1800 = vst [vmem:[#allocation13 + $0x50] sm:$0xff] %v1776_v14 }
 0x6d9   : > { %v1760_v63 = vpop.f32.mrf.mxu1 }
 0x6da   : > { %v1761_v1 = vadd.f32 %v2523_v61, %v1760_v63 }
 0x6dc   : > { %1794 = vst [vmem:[#allocation13 + $0x20] sm:$0xff] %v1761_v1 }
 0x6dd   : > { %v1777_v18 = vpop.f32.mrf.mxu2 }
 0x6de   : > { %v1778_v19 = vadd.f32 %v2523_v61, %v1777_v18 }
 0x6e0   : > { %1801 = vst [vmem:[#allocation13 + $0x58] sm:$0xff] %v1778_v19 }
 0x6e1   : > { %v1762_v32 = vpop.f32.mrf.mxu1 }
 0x6e2   : > { %v1763_v5 = vadd.f32 %v2523_v61, %v1762_v32 }
 0x6e4   : > { %1795 = vst [vmem:[#allocation13 + $0x28] sm:$0xff] %v1763_v5 }
 0x6e5   : > { %v1780_v56 = vpop.f32.mrf.mxu3 }
 0x6e6   : > { %v1781_v44 = vadd.f32 %v2523_v61, %v1780_v56 }
 0x6e8   : > { %1802 = vst [vmem:[#allocation13 + $0x60] sm:$0xff] %v1781_v44 }
 0x6e9   : > { %v1765_v40 = vpop.f32.mrf.mxu1 }
 0x6ea   : > { %v1766_v7 = vadd.f32 %v2523_v61, %v1765_v40 }
 0x6ec   : > { %1796 = vst [vmem:[#allocation13 + $0x30] sm:$0xff] %v1766_v7 }
 0x6ed   : > { %v1782_v4 = vpop.f32.mrf.mxu3 }
 0x6ee   : > { %v1783_v3 = vadd.f32 %v2523_v61, %v1782_v4 }
 0x6f0   : > { %1803 = vst [vmem:[#allocation13 + $0x68] sm:$0xff] %v1783_v3 }
 0x6f1   : > { %v1767_v15 = vpop.f32.mrf.mxu1 }
 0x6f2   : > { %v1768_v17 = vadd.f32 %v2523_v61, %v1767_v15 }
 0x6f4   : > { %1797 = vst [vmem:[#allocation13 + $0x38] sm:$0xff] %v1768_v17 }
 0x6f5   : > { %v1785_v12 = vpop.f32.mrf.mxu3 }
 0x6f6   : > { %v1786_v34 = vadd.f32 %v2523_v61, %v1785_v12 }
 0x6f8   : > { %1804 = vst [vmem:[#allocation13 + $0x70] sm:$0xff] %v1786_v34 }
 0x6fd   : > { %v1787_v13 = vpop.f32.mrf.mxu3 }
 0x6fe   : > { %v1788_v20 = vadd.f32 %v2523_v61, %v1787_v13 }
 0x700   : > { %1805 = vst [vmem:[#allocation13 + $0x78] sm:$0xff] %v1788_v20 }
 0x701 PF: > { %p2462_p4 = scmp.eq.s32.totalorder %s2857_s11, 1  ;;  %s1813_s19 = sshll.u32 %s3593_s8, 4  ;;  %s1814_s19 = int_to_ptr.hbm [resolvable:$true] %s1813_s19 }
 0x702   : > { %s2780_s24 = smov [#allocation13]   ;;  %s2781_s1 = smov 128  }
 0x703   : > { %s1811_s0 = sshll.u32 %s2780_s24, 4  ;;  %s2782_s5 = smov 8   ;;  %s1812_s0 = int_to_ptr.vmem [resolvable:$true] %s1811_s0 }
 0x704   : > { %2433 = dma.vmem_to_hbm [thread:$0]  (%p2462_p4), %s1812_s0, 2048, %s1814_s19, [#allocation6], %s2781_s1, %s2781_s1, %s2782_s5  }
 0x705   : > { %2747 = dma.done.wait (%p2462_p4), [#allocation6], 2048  }
 0x706   : > { %2749 = vsyncadd (%p2462_p4), [#allocation6], 4294965248 }
 0x707 PF: > { %s22_s10 = sadd.s32 1, %s2772_s10   ;;  %s3608_s27 = smov %s2756_s28 }
 0x708   : > { %p19_p5 = scmp.ge.s32.totalorder %s22_s10, 4   ;;  %s3609_s28 = smov %s2760_s29 }
 0x709   : > { %s3610_s29 = smov %s2931_s20  ;;  %s3611_s30 = smov %s2768_s9 }
 0x70a   : > { %s3612_s9 = smov %s3614_s22  ;;  %21 = sbr.rel (!%p19_p5) target bundleno = 10 (0xa), region = 125 }
 0x70f   :  { %1830 = vsyncpa [#allocation5], 1 }
 0x710   :  { %1832 = vsyncpa [#allocation5 + $0x1], 1 }
 0x711   :  { %1833 = vsyncpa [#allocation8], 1 }
 0x712   :  { %1834 = vsyncpa [#allocation12], 1 }
 0x713   :  { %1835 = vsyncpa [#allocation6], 1 }
 0x714   :  { %1837 = vsyncpa [#allocation6 + $0x1], 1 }

</bundles_post_ra>
